<compile_context>
chip_gen: v6e
topology: v6e:2x2x1
jax: 0.10.0
libtpu: 0.0.40
codegen_flags: <defaults>
</compile_context>

<pallas_src>
import math
from functools import partial

import jax
import jax.numpy as jnp
import numpy as np
from jax.experimental import pallas as pl
from jax.experimental.pallas import tpu as pltpu

_BIG = 1e30  # large finite "minus infinity" for additive attention masking


def _bf16(a):
    return a.astype(jnp.bfloat16)


def decoder_block_kernel(n_heads, d_k, d_v,
                         x_ref, ctx_ref, cmask_ref, pmask_ref,
                         wqkv1, bqkv1, wo1, bo1, g1, be1,
                         wq2, bq2, wkv2, bkv2, wo2, bo2, g2, be2,
                         wf1, bf1, wf2, bf2, g3, be3,
                         o_ref):
    bb, Ld, D = x_ref.shape
    Le = ctx_ref.shape[1]
    H, dk, dv = n_heads, d_k, d_v

    # flatten (batch_block, seq) onto the sublane/row axis for all row-wise ops
    x = x_ref[...].astype(jnp.float32).reshape(bb * Ld, D)
    ctx = ctx_ref[...].astype(jnp.float32).reshape(bb * Le, D)

    # additive attention biases: 0 where attended, -_BIG where masked.
    # NOTE: fully-masked rows produce a uniform attention over V (finite bias),
    # not the NaN of true -inf masking.
    causal_bias = (cmask_ref[...].astype(jnp.float32) - 1.0) * _BIG   # (bb, Ld, Ld)
    pad_bias = (pmask_ref[...].astype(jnp.float32) - 1.0) * _BIG      # (bb, Ld, Le)

    def linear(rows, w_ref, b_ref):
        # bf16 MXU inputs, f32 accumulation, f32 bias add
        return jnp.dot(_bf16(rows), w_ref[...],
                       preferred_element_type=jnp.float32) + b_ref[...]

    def layer_norm(rows, g_ref, b_ref):
        m = jnp.mean(rows, axis=-1, keepdims=True)
        var = jnp.mean(jnp.square(rows - m), axis=-1, keepdims=True)  # biased, like torch
        return (rows - m) * jax.lax.rsqrt(var + 1e-5) * g_ref[...] + b_ref[...]

    def attention(q_lin, k_lin, v_lin, bias, nq, nk, wo_ref, bo_ref):
        # 1/sqrt(d_k) is already folded into the Q weights/bias (fuse_params).
        q3 = _bf16(q_lin).reshape(bb, nq, H * dk)
        k3 = _bf16(k_lin).reshape(bb, nk, H * dk)
        v3 = _bf16(v_lin).reshape(bb, nk, H * dv)
        ctx_heads = []
        for h in range(H):                                 # static unroll over heads
            # TODO(synk): for production head sizes, pad d_k/d_v (or move heads onto a
            # leading batch axis) so these lane slices land on 128-aligned offsets.
            qh = q3[:, :, h * dk:(h + 1) * dk]
            kh = k3[:, :, h * dk:(h + 1) * dk]
            vh = v3[:, :, h * dv:(h + 1) * dv]
            # batched (over bb) score matmul, f32 accumulation, additive mask bias
            s = jnp.einsum('bqd,bkd->bqk', qh, kh,
                           preferred_element_type=jnp.float32) + bias
            s = s - jnp.max(s, axis=-1, keepdims=True)     # finite bias -> NaN-safe
            e = jnp.exp(s)
            p = e * pl.reciprocal(jnp.sum(e, axis=-1, keepdims=True), approx=True)
            ctx_heads.append(_bf16(jnp.einsum('bqk,bkv->bqv', _bf16(p), vh,
                                              preferred_element_type=jnp.float32)))
        # single fat output projection over all heads: one matmul with K = H*dv
        # instead of H small-K matmuls accumulated into a running sum.
        ctx_all = jnp.concatenate(ctx_heads, axis=-1).reshape(bb * nq, H * dv)
        return jnp.dot(ctx_all, wo_ref[...],
                       preferred_element_type=jnp.float32) + bo_ref[...]

    # ---- causal self-attention + residual + LN -------------------------------
    qkv = linear(x, wqkv1, bqkv1)                          # (bb*Ld, 2*H*dk + H*dv)
    attn1 = attention(qkv[:, :H * dk],
                      qkv[:, H * dk:2 * H * dk],
                      qkv[:, 2 * H * dk:],
                      causal_bias, Ld, Ld, wo1, bo1)
    h1 = layer_norm(attn1 + x, g1, be1)

    # ---- cross-attention + residual + LN --------------------------------------
    q2 = linear(h1, wq2, bq2)                              # (bb*Ld, H*dk)
    kv2 = linear(ctx, wkv2, bkv2)                          # (bb*Le, H*dk + H*dv)
    attn2 = attention(q2, kv2[:, :H * dk], kv2[:, H * dk:],
                      pad_bias, Ld, Le, wo2, bo2)
    h2 = layer_norm(attn2 + h1, g2, be2)

    # ---- FFN + residual + LN (dropout = 0.0 -> identity) ----------------------
    # TODO(synk): tile d_ff and stream wf1/wf2 from HBM (pl.ANY + emit_pipeline)
    # for realistic sizes; tile attention flash-style over KV for long sequences.
    ff = linear(jnp.maximum(linear(h2, wf1, bf1), 0.0), wf2, bf2)
    out = layer_norm(ff + h2, g3, be3)

    o_ref[...] = out.reshape(bb, Ld, D).astype(o_ref.dtype)


def _pick_block_batch(B, Ld, target_rows=512):
    """Largest divisor of B whose block covers >= target_rows rows, while keeping
    at least 2 parallel grid iterations when the batch allows it (v7x megacore)."""
    bb = max(1, min(B, target_rows // max(Ld, 1)))
    while B % bb:
        bb -= 1
    if B // bb < 2 and B >= 2:
        bb = max(1, B // 2)
        while B % bb:
            bb -= 1
    return bb


def _vmem_limit_bytes():
    """~3/4 of physical VMEM: ~96 MiB on v5e/v6e (128 MiB), ~48 MiB on v7x (64 MiB)."""
    try:
        cap = int(getattr(pltpu.get_tpu_info(), "vmem_capacity_bytes", 128 << 20))
    except Exception:
        cap = 128 << 20
    return (cap * 3) // 4


def _cost_estimate(x, ctx, cmask, pmask, params, H, dk, dv):
    B, Ld, D = x.shape
    Le = ctx.shape[1]
    d_ff = params[14].shape[1]
    qk, vd = H * dk, H * dv
    flops = (2 * B * Ld * D * (2 * qk + vd)        # fused self QKV projection
             + 2 * B * Ld * Ld * (qk + vd)         # self scores + P@V (all heads)
             + 2 * B * Ld * vd * D                 # self output projection
             + 2 * B * Ld * D * qk                 # cross Q projection
             + 2 * B * Le * D * (qk + vd)          # cross fused KV projection
             + 2 * B * Ld * Le * (qk + vd)         # cross scores + P@V
             + 2 * B * Ld * vd * D                 # cross output projection
             + 4 * B * Ld * D * d_ff)              # FFN
    transcendentals = B * H * Ld * (Ld + Le) + B * Ld * (2 * H + 3)   # exp, recip, rsqrt
    bytes_accessed = (2 * x.nbytes + ctx.nbytes + cmask.nbytes + pmask.nbytes
                      + sum(int(p.nbytes) for p in params))
    return pl.CostEstimate(flops=int(flops), transcendentals=int(transcendentals),
                           bytes_accessed=int(bytes_accessed))


def decoder_block(params, x, ctx, causal_mask, pad_mask, *,
                  n_heads, d_k, d_v, block_batch=None):
    """Forward pass of the decoder block (mirrors the PyTorch module)."""
    B, Ld, D = x.shape
    _, Le, _ = ctx.shape
    if causal_mask is None:
        causal_mask = jnp.broadcast_to(
            jnp.tril(jnp.ones((Ld, Ld), jnp.float32)), (B, Ld, Ld))
    if pad_mask is None:
        pad_mask = jnp.ones((B, Ld, Le), jnp.float32)

    # ship masks as bf16 (0/1 exactly representable) -> half the mask DMA.
    # TODO(synk): pass per-sequence key lengths via PrefetchScalarGridSpec and
    # build the biases from an in-kernel iota when masks are simple length masks.
    cmask = causal_mask.astype(jnp.bfloat16)
    pmask = pad_mask.astype(jnp.bfloat16)

    bb = block_batch if block_batch is not None else _pick_block_batch(B, Ld)
    kernel = partial(decoder_block_kernel, n_heads, d_k, d_v)
    cost = _cost_estimate(x, ctx, cmask, pmask, params, n_heads, d_k, d_v)

    def build(tuned):
        def full_spec(p):
            nd = p.ndim
            if tuned:
                # constant index_map across the grid -> keep params resident,
                # single-buffered (no double-buffered weight copies in VMEM).
                return pl.BlockSpec(p.shape, lambda b, _n=nd: (0,) * _n,
                                    pipeline_mode=pl.Buffered(1))
            return pl.BlockSpec(p.shape, lambda b, _n=nd: (0,) * _n)

        data_specs = [
            pl.BlockSpec((bb, Ld, D), lambda b: (b, 0, 0)),
            pl.BlockSpec((bb, Le, D), lambda b: (b, 0, 0)),
            pl.BlockSpec((bb, Ld, Ld), lambda b: (b, 0, 0)),
            pl.BlockSpec((bb, Ld, Le), lambda b: (b, 0, 0)),
        ]
        param_specs = [full_spec(p) for p in params]
        cp_kwargs = dict(dimension_semantics=("parallel",))
        if tuned:
            cp_kwargs["vmem_limit_bytes"] = _vmem_limit_bytes()
        return pl.pallas_call(
            kernel,
            out_shape=jax.ShapeDtypeStruct((B, Ld, D), x.dtype),
            grid=(B // bb,),
            in_specs=data_specs + param_specs,
            out_specs=pl.BlockSpec((bb, Ld, D), lambda b: (b, 0, 0)),
            compiler_params=pltpu.CompilerParams(**cp_kwargs),
            cost_estimate=cost,
        )

    args = (x, ctx, cmask, pmask) + tuple(params)
    try:
        return jax.block_until_ready(build(True)(*args))
    except Exception:
        # Fallback for jax versions that reject pl.Buffered(1)/vmem_limit_bytes:
        # default double-buffered params, default scoped VMEM limit.
        return build(False)(*args)


def fuse_params(mha1, mha2, ffn, lns, *, d_k):
    """Pack raw per-layer params (weights stored as (in, out)) into the fused
    tuple the kernel expects. Matmul weights cast to bf16; biases/LN stay f32.
    The 1/sqrt(d_k) attention scale is folded into both Q projections."""
    ln1, ln2, ln3 = lns
    wf1, bf1, wf2, bf2 = ffn
    inv = 1.0 / math.sqrt(d_k)
    w_qkv1 = _bf16(jnp.concatenate([mha1['wq'] * inv, mha1['wk'], mha1['wv']], axis=1))
    b_qkv1 = jnp.concatenate([mha1['bq'] * inv, mha1['bk'], mha1['bv']], axis=1)
    w_kv2 = _bf16(jnp.concatenate([mha2['wk'], mha2['wv']], axis=1))
    b_kv2 = jnp.concatenate([mha2['bk'], mha2['bv']], axis=1)
    return (
        w_qkv1, b_qkv1, _bf16(mha1['wo']), mha1['bo'], ln1[0], ln1[1],
        _bf16(mha2['wq'] * inv), mha2['bq'] * inv, w_kv2, b_kv2,
        _bf16(mha2['wo']), mha2['bo'], ln2[0], ln2[1],
        _bf16(wf1), bf1, _bf16(wf2), bf2, ln3[0], ln3[1],
    )


# ---------------- pure-JAX reference (mirrors kernel numerics) ----------------
def _ref_forward(params, x, ctx, causal_mask, pad_mask, *, n_heads, d_k, d_v):
    (wqkv1, bqkv1, wo1, bo1, g1, be1,
     wq2, bq2, wkv2, bkv2, wo2, bo2, g2, be2,
     wf1, bf1, wf2, bf2, g3, be3) = params
    H, dk, dv = n_heads, d_k, d_v
    B, Ld, D = x.shape

    def lin(a, w, b):
        return jnp.dot(_bf16(a), w, preferred_element_type=jnp.float32) + b

    def ln(y, g, b):
        m = y.mean(-1, keepdims=True)
        v = ((y - m) ** 2).mean(-1, keepdims=True)
        return (y - m) * jax.lax.rsqrt(v + 1e-5) * g + b

    def attn(q_lin, k_lin, v_lin, bias, wo, bo):
        # NOTE: 1/sqrt(d_k) is folded into the Q params (see fuse_params).
        Lq, Lk = q_lin.shape[1], k_lin.shape[1]
        q = _bf16(q_lin).reshape(B, Lq, H, dk)
        k = _bf16(k_lin).reshape(B, Lk, H, dk)
        v = _bf16(v_lin).reshape(B, Lk, H, dv)
        s = jnp.einsum('bqhd,bkhd->bhqk', q, k,
                       preferred_element_type=jnp.float32)
        s = s + bias[:, None]
        p = jax.nn.softmax(s, axis=-1)
        o = jnp.einsum('bhqk,bkhd->bqhd', _bf16(p), v,
                       preferred_element_type=jnp.float32).reshape(B, Lq, H * dv)
        return jnp.dot(_bf16(o), wo, preferred_element_type=jnp.float32) + bo

    causal_bias = (causal_mask.astype(jnp.float32) - 1.0) * _BIG
    pad_bias = (pad_mask.astype(jnp.float32) - 1.0) * _BIG

    xf = x.astype(jnp.float32)
    cf = ctx.astype(jnp.float32)
    qkv = lin(xf, wqkv1, bqkv1)
    h1 = ln(attn(qkv[..., :H * dk], qkv[..., H * dk:2 * H * dk], qkv[..., 2 * H * dk:],
                 causal_bias, wo1, bo1) + xf, g1, be1)
    q2 = lin(h1, wq2, bq2)
    kv2 = lin(cf, wkv2, bkv2)
    h2 = ln(attn(q2, kv2[..., :H * dk], kv2[..., H * dk:], pad_bias, wo2, bo2) + h1,
            g2, be2)
    ff = lin(jnp.maximum(lin(h2, wf1, bf1), 0.0), wf2, bf2)
    return ln(ff + h2, g3, be3)


if __name__ == "__main__":
    d_model, d_k, d_v, n_heads, d_ff = 32, 8, 8, 4, 64
    B, Ld, Le = 2, 8, 8

    key = jax.random.PRNGKey(0)
    ks = jax.random.split(key, 16)

    def w(k, shape, scale=0.1):
        return (scale * jax.random.normal(k, shape)).astype(jnp.float32)

    def mha_raw(k0):
        kk = jax.random.split(k0, 8)
        return dict(
            wq=w(kk[0], (d_model, n_heads * d_k)), bq=w(kk[1], (1, n_heads * d_k)),
            wk=w(kk[2], (d_model, n_heads * d_k)), bk=w(kk[3], (1, n_heads * d_k)),
            wv=w(kk[4], (d_model, n_heads * d_v)), bv=w(kk[5], (1, n_heads * d_v)),
            wo=w(kk[6], (n_heads * d_v, d_model)), bo=w(kk[7], (1, d_model)),
        )

    ones = jnp.ones((1, d_model), jnp.float32)
    zeros = jnp.zeros((1, d_model), jnp.float32)
    params = fuse_params(
        mha_raw(ks[0]), mha_raw(ks[1]),
        (w(ks[2], (d_model, d_ff)), w(ks[3], (1, d_ff)),
         w(ks[4], (d_ff, d_model)), w(ks[5], (1, d_model))),
        ((ones, zeros), (ones, zeros), (ones, zeros)),
        d_k=d_k,
    )

    x = w(ks[10], (B, Ld, d_model), scale=1.0)
    ctx = w(ks[11], (B, Le, d_model), scale=1.0)
    causal_mask = jnp.broadcast_to(jnp.tril(jnp.ones((Ld, Ld), jnp.float32)),
                                   (B, Ld, Ld))
    pad_mask = jnp.ones((B, Ld, Le), jnp.float32).at[1, :, Le - 2:].set(0.0)

    out = decoder_block(params, x, ctx, causal_mask, pad_mask,
                        n_heads=n_heads, d_k=d_k, d_v=d_v)
    out = jax.block_until_ready(out)

    ref = _ref_forward(params, x, ctx, causal_mask, pad_mask,
                       n_heads=n_heads, d_k=d_k, d_v=d_v)
    # bf16 MXU inputs + EUP approximate reciprocal -> compare at ~1e-2
    np.testing.assert_allclose(np.asarray(out), np.asarray(ref), rtol=1e-2, atol=1e-2)

    print("KERNEL_OK")
</pallas_src>

<mosaic_0001>
module attributes {stable_mosaic.version = 11 : i64} {
  func.func @decoder_block_kernel(%arg0: i32, %arg1: memref<1x8x32xf32, #tpu.memory_space<vmem>>, %arg2: memref<1x8x32xf32, #tpu.memory_space<vmem>>, %arg3: memref<1x8x8xbf16, #tpu.memory_space<vmem>>, %arg4: memref<1x8x8xbf16, #tpu.memory_space<vmem>>, %arg5: memref<32x96xbf16, #tpu.memory_space<vmem>>, %arg6: memref<1x96xf32, #tpu.memory_space<vmem>>, %arg7: memref<32x32xbf16, #tpu.memory_space<vmem>>, %arg8: memref<1x32xf32, #tpu.memory_space<vmem>>, %arg9: memref<1x32xf32, #tpu.memory_space<vmem>>, %arg10: memref<1x32xf32, #tpu.memory_space<vmem>>, %arg11: memref<32x32xbf16, #tpu.memory_space<vmem>>, %arg12: memref<1x32xf32, #tpu.memory_space<vmem>>, %arg13: memref<32x64xbf16, #tpu.memory_space<vmem>>, %arg14: memref<1x64xf32, #tpu.memory_space<vmem>>, %arg15: memref<32x32xbf16, #tpu.memory_space<vmem>>, %arg16: memref<1x32xf32, #tpu.memory_space<vmem>>, %arg17: memref<1x32xf32, #tpu.memory_space<vmem>>, %arg18: memref<1x32xf32, #tpu.memory_space<vmem>>, %arg19: memref<32x64xbf16, #tpu.memory_space<vmem>>, %arg20: memref<1x64xf32, #tpu.memory_space<vmem>>, %arg21: memref<64x32xbf16, #tpu.memory_space<vmem>>, %arg22: memref<1x32xf32, #tpu.memory_space<vmem>>, %arg23: memref<1x32xf32, #tpu.memory_space<vmem>>, %arg24: memref<1x32xf32, #tpu.memory_space<vmem>>, %arg25: memref<1x8x32xf32, #tpu.memory_space<vmem>>) attributes {dimension_semantics = [#tpu.dimension_semantics<parallel>], iteration_bounds = array<i64: 2>, scalar_prefetch = 0 : i64, scratch_operands = 0 : i64, tpu.core_type = #tpu.core_type<tc>, window_params = [{transform_indices = @transform_0, window_bounds = array<i64: 1, 8, 32>}, {transform_indices = @transform_1, window_bounds = array<i64: 1, 8, 32>}, {transform_indices = @transform_2, window_bounds = array<i64: 1, 8, 8>}, {transform_indices = @transform_3, window_bounds = array<i64: 1, 8, 8>}, {pipeline_mode = #tpu.pipeline_mode<synchronous>, transform_indices = @transform_4, window_bounds = array<i64: 32, 96>}, {pipeline_mode = #tpu.pipeline_mode<synchronous>, transform_indices = @transform_5, window_bounds = array<i64: 1, 96>}, {pipeline_mode = #tpu.pipeline_mode<synchronous>, transform_indices = @transform_6, window_bounds = array<i64: 32, 32>}, {pipeline_mode = #tpu.pipeline_mode<synchronous>, transform_indices = @transform_7, window_bounds = array<i64: 1, 32>}, {pipeline_mode = #tpu.pipeline_mode<synchronous>, transform_indices = @transform_8, window_bounds = array<i64: 1, 32>}, {pipeline_mode = #tpu.pipeline_mode<synchronous>, transform_indices = @transform_9, window_bounds = array<i64: 1, 32>}, {pipeline_mode = #tpu.pipeline_mode<synchronous>, transform_indices = @transform_10, window_bounds = array<i64: 32, 32>}, {pipeline_mode = #tpu.pipeline_mode<synchronous>, transform_indices = @transform_11, window_bounds = array<i64: 1, 32>}, {pipeline_mode = #tpu.pipeline_mode<synchronous>, transform_indices = @transform_12, window_bounds = array<i64: 32, 64>}, {pipeline_mode = #tpu.pipeline_mode<synchronous>, transform_indices = @transform_13, window_bounds = array<i64: 1, 64>}, {pipeline_mode = #tpu.pipeline_mode<synchronous>, transform_indices = @transform_14, window_bounds = array<i64: 32, 32>}, {pipeline_mode = #tpu.pipeline_mode<synchronous>, transform_indices = @transform_15, window_bounds = array<i64: 1, 32>}, {pipeline_mode = #tpu.pipeline_mode<synchronous>, transform_indices = @transform_16, window_bounds = array<i64: 1, 32>}, {pipeline_mode = #tpu.pipeline_mode<synchronous>, transform_indices = @transform_17, window_bounds = array<i64: 1, 32>}, {pipeline_mode = #tpu.pipeline_mode<synchronous>, transform_indices = @transform_18, window_bounds = array<i64: 32, 64>}, {pipeline_mode = #tpu.pipeline_mode<synchronous>, transform_indices = @transform_19, window_bounds = array<i64: 1, 64>}, {pipeline_mode = #tpu.pipeline_mode<synchronous>, transform_indices = @transform_20, window_bounds = array<i64: 64, 32>}, {pipeline_mode = #tpu.pipeline_mode<synchronous>, transform_indices = @transform_21, window_bounds = array<i64: 1, 32>}, {pipeline_mode = #tpu.pipeline_mode<synchronous>, transform_indices = @transform_22, window_bounds = array<i64: 1, 32>}, {pipeline_mode = #tpu.pipeline_mode<synchronous>, transform_indices = @transform_23, window_bounds = array<i64: 1, 32>}, {transform_indices = @transform_24, window_bounds = array<i64: 1, 8, 32>}]} {
    %c0 = arith.constant 0 : index
    %c0_0 = arith.constant 0 : index
    %c0_1 = arith.constant 0 : index
    %0 = vector.load %arg1[%c0, %c0_0, %c0_1] : memref<1x8x32xf32, #tpu.memory_space<vmem>>, vector<1x8x32xf32>
    %1 = vector.shape_cast %0 : vector<1x8x32xf32> to vector<8x32xf32>
    %c0_2 = arith.constant 0 : index
    %c0_3 = arith.constant 0 : index
    %c0_4 = arith.constant 0 : index
    %2 = vector.load %arg2[%c0_2, %c0_3, %c0_4] : memref<1x8x32xf32, #tpu.memory_space<vmem>>, vector<1x8x32xf32>
    %3 = vector.shape_cast %2 : vector<1x8x32xf32> to vector<8x32xf32>
    %c0_5 = arith.constant 0 : index
    %c0_6 = arith.constant 0 : index
    %c0_7 = arith.constant 0 : index
    %4 = vector.load %arg3[%c0_5, %c0_6, %c0_7] : memref<1x8x8xbf16, #tpu.memory_space<vmem>>, vector<1x8x8xbf16>
    %5 = arith.extf %4 : vector<1x8x8xbf16> to vector<1x8x8xf32>
    %cst = arith.constant 1.000000e+00 : f32
    %6 = vector.broadcast %cst : f32 to vector<1x8x8xf32>
    %7 = arith.subf %5, %6 : vector<1x8x8xf32>
    %cst_8 = arith.constant 1.000000e+30 : f32
    %8 = vector.broadcast %cst_8 : f32 to vector<1x8x8xf32>
    %9 = arith.mulf %7, %8 : vector<1x8x8xf32>
    %c0_9 = arith.constant 0 : index
    %c0_10 = arith.constant 0 : index
    %c0_11 = arith.constant 0 : index
    %10 = vector.load %arg4[%c0_9, %c0_10, %c0_11] : memref<1x8x8xbf16, #tpu.memory_space<vmem>>, vector<1x8x8xbf16>
    %11 = arith.extf %10 : vector<1x8x8xbf16> to vector<1x8x8xf32>
    %cst_12 = arith.constant 1.000000e+00 : f32
    %12 = vector.broadcast %cst_12 : f32 to vector<1x8x8xf32>
    %13 = arith.subf %11, %12 : vector<1x8x8xf32>
    %cst_13 = arith.constant 1.000000e+30 : f32
    %14 = vector.broadcast %cst_13 : f32 to vector<1x8x8xf32>
    %15 = arith.mulf %13, %14 : vector<1x8x8xf32>
    %16 = arith.truncf %1 : vector<8x32xf32> to vector<8x32xbf16>
    %c0_14 = arith.constant 0 : index
    %c0_15 = arith.constant 0 : index
    %17 = vector.load %arg5[%c0_14, %c0_15] : memref<32x96xbf16, #tpu.memory_space<vmem>>, vector<32x96xbf16>
    %cst_16 = arith.constant dense<0.000000e+00> : vector<8x96xf32>
    %18 = tpu.matmul %16, %17, %cst_16 {dimension_numbers = #tpu.dot_dimension_numbers<[1], [0], [0], [1], [0, 0, 1, 1], [], []>} : vector<8x32xbf16>, vector<32x96xbf16>, vector<8x96xf32> -> vector<8x96xf32>
    %c0_17 = arith.constant 0 : index
    %c0_18 = arith.constant 0 : index
    %19 = vector.load %arg6[%c0_17, %c0_18] : memref<1x96xf32, #tpu.memory_space<vmem>>, vector<1x96xf32>
    %20 = vector.broadcast %19 : vector<1x96xf32> to vector<8x96xf32>
    %21 = arith.addf %18, %20 : vector<8x96xf32>
    %22 = vector.extract_strided_slice %21 {offsets = [0, 0], sizes = [8, 32], strides = [1, 1]} : vector<8x96xf32> to vector<8x32xf32>
    %23 = vector.extract_strided_slice %21 {offsets = [0, 32], sizes = [8, 32], strides = [1, 1]} : vector<8x96xf32> to vector<8x32xf32>
    %24 = vector.extract_strided_slice %21 {offsets = [0, 64], sizes = [8, 32], strides = [1, 1]} : vector<8x96xf32> to vector<8x32xf32>
    %25 = arith.truncf %22 : vector<8x32xf32> to vector<8x32xbf16>
    %26 = vector.shape_cast %25 : vector<8x32xbf16> to vector<1x8x32xbf16>
    %27 = arith.truncf %23 : vector<8x32xf32> to vector<8x32xbf16>
    %28 = vector.shape_cast %27 : vector<8x32xbf16> to vector<1x8x32xbf16>
    %29 = arith.truncf %24 : vector<8x32xf32> to vector<8x32xbf16>
    %30 = vector.shape_cast %29 : vector<8x32xbf16> to vector<1x8x32xbf16>
    %31 = vector.extract_strided_slice %26 {offsets = [0, 0, 0], sizes = [1, 8, 8], strides = [1, 1, 1]} : vector<1x8x32xbf16> to vector<1x8x8xbf16>
    %32 = vector.extract_strided_slice %28 {offsets = [0, 0, 0], sizes = [1, 8, 8], strides = [1, 1, 1]} : vector<1x8x32xbf16> to vector<1x8x8xbf16>
    %33 = vector.extract_strided_slice %30 {offsets = [0, 0, 0], sizes = [1, 8, 8], strides = [1, 1, 1]} : vector<1x8x32xbf16> to vector<1x8x8xbf16>
    "tpu.trace_start"() <{level = 10 : i32, message = "bqd,bkd->bqk"}> : () -> ()
    %cst_19 = arith.constant dense<0.000000e+00> : vector<1x8x8xf32>
    %34 = tpu.matmul %31, %32, %cst_19 {dimension_numbers = #tpu.dot_dimension_numbers<[2], [2], [1], [1], [0, 0, 0, 1, 1, 1], [0], [0]>} : vector<1x8x8xbf16>, vector<1x8x8xbf16>, vector<1x8x8xf32> -> vector<1x8x8xf32>
    "tpu.trace_stop"() : () -> ()
    %35 = arith.addf %34, %9 : vector<1x8x8xf32>
    %cst_20 = arith.constant dense<0xFF800000> : vector<1x8xf32>
    %36 = vector.multi_reduction <maximumf>, %35, %cst_20 [2] : vector<1x8x8xf32> to vector<1x8xf32>
    %37 = vector.shape_cast %36 : vector<1x8xf32> to vector<1x8x1xf32>
    %38 = vector.broadcast %37 : vector<1x8x1xf32> to vector<1x8x8xf32>
    %39 = arith.subf %35, %38 : vector<1x8x8xf32>
    %40 = math.exp %39 : vector<1x8x8xf32>
    %cst_21 = arith.constant dense<0.000000e+00> : vector<1x8xf32>
    %41 = vector.multi_reduction <add>, %40, %cst_21 [2] : vector<1x8x8xf32> to vector<1x8xf32>
    %42 = vector.shape_cast %41 : vector<1x8xf32> to vector<1x8x1xf32>
    %43 = tpu.reciprocal %42 {approx = true} : vector<1x8x1xf32> -> vector<1x8x1xf32>
    %44 = vector.broadcast %43 : vector<1x8x1xf32> to vector<1x8x8xf32>
    %45 = arith.mulf %40, %44 : vector<1x8x8xf32>
    %46 = arith.truncf %45 : vector<1x8x8xf32> to vector<1x8x8xbf16>
    "tpu.trace_start"() <{level = 10 : i32, message = "bqk,bkv->bqv"}> : () -> ()
    %cst_22 = arith.constant dense<0.000000e+00> : vector<1x8x8xf32>
    %47 = tpu.matmul %46, %33, %cst_22 {dimension_numbers = #tpu.dot_dimension_numbers<[2], [1], [1], [2], [0, 0, 0, 1, 1, 2], [0], [0]>} : vector<1x8x8xbf16>, vector<1x8x8xbf16>, vector<1x8x8xf32> -> vector<1x8x8xf32>
    "tpu.trace_stop"() : () -> ()
    %48 = arith.truncf %47 : vector<1x8x8xf32> to vector<1x8x8xbf16>
    %49 = vector.extract_strided_slice %26 {offsets = [0, 0, 8], sizes = [1, 8, 8], strides = [1, 1, 1]} : vector<1x8x32xbf16> to vector<1x8x8xbf16>
    %50 = vector.extract_strided_slice %28 {offsets = [0, 0, 8], sizes = [1, 8, 8], strides = [1, 1, 1]} : vector<1x8x32xbf16> to vector<1x8x8xbf16>
    %51 = vector.extract_strided_slice %30 {offsets = [0, 0, 8], sizes = [1, 8, 8], strides = [1, 1, 1]} : vector<1x8x32xbf16> to vector<1x8x8xbf16>
    "tpu.trace_start"() <{level = 10 : i32, message = "bqd,bkd->bqk"}> : () -> ()
    %cst_23 = arith.constant dense<0.000000e+00> : vector<1x8x8xf32>
    %52 = tpu.matmul %49, %50, %cst_23 {dimension_numbers = #tpu.dot_dimension_numbers<[2], [2], [1], [1], [0, 0, 0, 1, 1, 1], [0], [0]>} : vector<1x8x8xbf16>, vector<1x8x8xbf16>, vector<1x8x8xf32> -> vector<1x8x8xf32>
    "tpu.trace_stop"() : () -> ()
    %53 = arith.addf %52, %9 : vector<1x8x8xf32>
    %cst_24 = arith.constant dense<0xFF800000> : vector<1x8xf32>
    %54 = vector.multi_reduction <maximumf>, %53, %cst_24 [2] : vector<1x8x8xf32> to vector<1x8xf32>
    %55 = vector.shape_cast %54 : vector<1x8xf32> to vector<1x8x1xf32>
    %56 = vector.broadcast %55 : vector<1x8x1xf32> to vector<1x8x8xf32>
    %57 = arith.subf %53, %56 : vector<1x8x8xf32>
    %58 = math.exp %57 : vector<1x8x8xf32>
    %cst_25 = arith.constant dense<0.000000e+00> : vector<1x8xf32>
    %59 = vector.multi_reduction <add>, %58, %cst_25 [2] : vector<1x8x8xf32> to vector<1x8xf32>
    %60 = vector.shape_cast %59 : vector<1x8xf32> to vector<1x8x1xf32>
    %61 = tpu.reciprocal %60 {approx = true} : vector<1x8x1xf32> -> vector<1x8x1xf32>
    %62 = vector.broadcast %61 : vector<1x8x1xf32> to vector<1x8x8xf32>
    %63 = arith.mulf %58, %62 : vector<1x8x8xf32>
    %64 = arith.truncf %63 : vector<1x8x8xf32> to vector<1x8x8xbf16>
    "tpu.trace_start"() <{level = 10 : i32, message = "bqk,bkv->bqv"}> : () -> ()
    %cst_26 = arith.constant dense<0.000000e+00> : vector<1x8x8xf32>
    %65 = tpu.matmul %64, %51, %cst_26 {dimension_numbers = #tpu.dot_dimension_numbers<[2], [1], [1], [2], [0, 0, 0, 1, 1, 2], [0], [0]>} : vector<1x8x8xbf16>, vector<1x8x8xbf16>, vector<1x8x8xf32> -> vector<1x8x8xf32>
    "tpu.trace_stop"() : () -> ()
    %66 = arith.truncf %65 : vector<1x8x8xf32> to vector<1x8x8xbf16>
    %67 = vector.extract_strided_slice %26 {offsets = [0, 0, 16], sizes = [1, 8, 8], strides = [1, 1, 1]} : vector<1x8x32xbf16> to vector<1x8x8xbf16>
    %68 = vector.extract_strided_slice %28 {offsets = [0, 0, 16], sizes = [1, 8, 8], strides = [1, 1, 1]} : vector<1x8x32xbf16> to vector<1x8x8xbf16>
    %69 = vector.extract_strided_slice %30 {offsets = [0, 0, 16], sizes = [1, 8, 8], strides = [1, 1, 1]} : vector<1x8x32xbf16> to vector<1x8x8xbf16>
    "tpu.trace_start"() <{level = 10 : i32, message = "bqd,bkd->bqk"}> : () -> ()
    %cst_27 = arith.constant dense<0.000000e+00> : vector<1x8x8xf32>
    %70 = tpu.matmul %67, %68, %cst_27 {dimension_numbers = #tpu.dot_dimension_numbers<[2], [2], [1], [1], [0, 0, 0, 1, 1, 1], [0], [0]>} : vector<1x8x8xbf16>, vector<1x8x8xbf16>, vector<1x8x8xf32> -> vector<1x8x8xf32>
    "tpu.trace_stop"() : () -> ()
    %71 = arith.addf %70, %9 : vector<1x8x8xf32>
    %cst_28 = arith.constant dense<0xFF800000> : vector<1x8xf32>
    %72 = vector.multi_reduction <maximumf>, %71, %cst_28 [2] : vector<1x8x8xf32> to vector<1x8xf32>
    %73 = vector.shape_cast %72 : vector<1x8xf32> to vector<1x8x1xf32>
    %74 = vector.broadcast %73 : vector<1x8x1xf32> to vector<1x8x8xf32>
    %75 = arith.subf %71, %74 : vector<1x8x8xf32>
    %76 = math.exp %75 : vector<1x8x8xf32>
    %cst_29 = arith.constant dense<0.000000e+00> : vector<1x8xf32>
    %77 = vector.multi_reduction <add>, %76, %cst_29 [2] : vector<1x8x8xf32> to vector<1x8xf32>
    %78 = vector.shape_cast %77 : vector<1x8xf32> to vector<1x8x1xf32>
    %79 = tpu.reciprocal %78 {approx = true} : vector<1x8x1xf32> -> vector<1x8x1xf32>
    %80 = vector.broadcast %79 : vector<1x8x1xf32> to vector<1x8x8xf32>
    %81 = arith.mulf %76, %80 : vector<1x8x8xf32>
    %82 = arith.truncf %81 : vector<1x8x8xf32> to vector<1x8x8xbf16>
    "tpu.trace_start"() <{level = 10 : i32, message = "bqk,bkv->bqv"}> : () -> ()
    %cst_30 = arith.constant dense<0.000000e+00> : vector<1x8x8xf32>
    %83 = tpu.matmul %82, %69, %cst_30 {dimension_numbers = #tpu.dot_dimension_numbers<[2], [1], [1], [2], [0, 0, 0, 1, 1, 2], [0], [0]>} : vector<1x8x8xbf16>, vector<1x8x8xbf16>, vector<1x8x8xf32> -> vector<1x8x8xf32>
    "tpu.trace_stop"() : () -> ()
    %84 = arith.truncf %83 : vector<1x8x8xf32> to vector<1x8x8xbf16>
    %85 = vector.extract_strided_slice %26 {offsets = [0, 0, 24], sizes = [1, 8, 8], strides = [1, 1, 1]} : vector<1x8x32xbf16> to vector<1x8x8xbf16>
    %86 = vector.extract_strided_slice %28 {offsets = [0, 0, 24], sizes = [1, 8, 8], strides = [1, 1, 1]} : vector<1x8x32xbf16> to vector<1x8x8xbf16>
    %87 = vector.extract_strided_slice %30 {offsets = [0, 0, 24], sizes = [1, 8, 8], strides = [1, 1, 1]} : vector<1x8x32xbf16> to vector<1x8x8xbf16>
    "tpu.trace_start"() <{level = 10 : i32, message = "bqd,bkd->bqk"}> : () -> ()
    %cst_31 = arith.constant dense<0.000000e+00> : vector<1x8x8xf32>
    %88 = tpu.matmul %85, %86, %cst_31 {dimension_numbers = #tpu.dot_dimension_numbers<[2], [2], [1], [1], [0, 0, 0, 1, 1, 1], [0], [0]>} : vector<1x8x8xbf16>, vector<1x8x8xbf16>, vector<1x8x8xf32> -> vector<1x8x8xf32>
    "tpu.trace_stop"() : () -> ()
    %89 = arith.addf %88, %9 : vector<1x8x8xf32>
    %cst_32 = arith.constant dense<0xFF800000> : vector<1x8xf32>
    %90 = vector.multi_reduction <maximumf>, %89, %cst_32 [2] : vector<1x8x8xf32> to vector<1x8xf32>
    %91 = vector.shape_cast %90 : vector<1x8xf32> to vector<1x8x1xf32>
    %92 = vector.broadcast %91 : vector<1x8x1xf32> to vector<1x8x8xf32>
    %93 = arith.subf %89, %92 : vector<1x8x8xf32>
    %94 = math.exp %93 : vector<1x8x8xf32>
    %cst_33 = arith.constant dense<0.000000e+00> : vector<1x8xf32>
    %95 = vector.multi_reduction <add>, %94, %cst_33 [2] : vector<1x8x8xf32> to vector<1x8xf32>
    %96 = vector.shape_cast %95 : vector<1x8xf32> to vector<1x8x1xf32>
    %97 = tpu.reciprocal %96 {approx = true} : vector<1x8x1xf32> -> vector<1x8x1xf32>
    %98 = vector.broadcast %97 : vector<1x8x1xf32> to vector<1x8x8xf32>
    %99 = arith.mulf %94, %98 : vector<1x8x8xf32>
    %100 = arith.truncf %99 : vector<1x8x8xf32> to vector<1x8x8xbf16>
    "tpu.trace_start"() <{level = 10 : i32, message = "bqk,bkv->bqv"}> : () -> ()
    %cst_34 = arith.constant dense<0.000000e+00> : vector<1x8x8xf32>
    %101 = tpu.matmul %100, %87, %cst_34 {dimension_numbers = #tpu.dot_dimension_numbers<[2], [1], [1], [2], [0, 0, 0, 1, 1, 2], [0], [0]>} : vector<1x8x8xbf16>, vector<1x8x8xbf16>, vector<1x8x8xf32> -> vector<1x8x8xf32>
    "tpu.trace_stop"() : () -> ()
    %102 = arith.truncf %101 : vector<1x8x8xf32> to vector<1x8x8xbf16>
    %103 = tpu.concatenate %48, %66, %84, %102 in 2 : vector<1x8x8xbf16>, vector<1x8x8xbf16>, vector<1x8x8xbf16>, vector<1x8x8xbf16> -> vector<1x8x32xbf16>
    %104 = vector.shape_cast %103 : vector<1x8x32xbf16> to vector<8x32xbf16>
    %c0_35 = arith.constant 0 : index
    %c0_36 = arith.constant 0 : index
    %105 = vector.load %arg7[%c0_35, %c0_36] : memref<32x32xbf16, #tpu.memory_space<vmem>>, vector<32x32xbf16>
    %cst_37 = arith.constant dense<0.000000e+00> : vector<8x32xf32>
    %106 = tpu.matmul %104, %105, %cst_37 {dimension_numbers = #tpu.dot_dimension_numbers<[1], [0], [0], [1], [0, 0, 1, 1], [], []>} : vector<8x32xbf16>, vector<32x32xbf16>, vector<8x32xf32> -> vector<8x32xf32>
    %c0_38 = arith.constant 0 : index
    %c0_39 = arith.constant 0 : index
    %107 = vector.load %arg8[%c0_38, %c0_39] : memref<1x32xf32, #tpu.memory_space<vmem>>, vector<1x32xf32>
    %108 = vector.broadcast %107 : vector<1x32xf32> to vector<8x32xf32>
    %109 = arith.addf %106, %108 : vector<8x32xf32>
    %110 = arith.addf %109, %1 : vector<8x32xf32>
    %cst_40 = arith.constant dense<0.000000e+00> : vector<8xf32>
    %111 = vector.multi_reduction <add>, %110, %cst_40 [1] : vector<8x32xf32> to vector<8xf32>
    %112 = vector.shape_cast %111 : vector<8xf32> to vector<8x1xf32>
    %cst_41 = arith.constant 3.200000e+01 : f32
    %113 = vector.broadcast %cst_41 : f32 to vector<8x1xf32>
    %114 = arith.divf %112, %113 : vector<8x1xf32>
    %115 = vector.broadcast %114 : vector<8x1xf32> to vector<8x32xf32>
    %116 = arith.subf %110, %115 : vector<8x32xf32>
    %117 = arith.mulf %116, %116 : vector<8x32xf32>
    %cst_42 = arith.constant dense<0.000000e+00> : vector<8xf32>
    %118 = vector.multi_reduction <add>, %117, %cst_42 [1] : vector<8x32xf32> to vector<8xf32>
    %119 = vector.shape_cast %118 : vector<8xf32> to vector<8x1xf32>
    %cst_43 = arith.constant 3.200000e+01 : f32
    %120 = vector.broadcast %cst_43 : f32 to vector<8x1xf32>
    %121 = arith.divf %119, %120 : vector<8x1xf32>
    %122 = vector.broadcast %114 : vector<8x1xf32> to vector<8x32xf32>
    %123 = arith.subf %110, %122 : vector<8x32xf32>
    %cst_44 = arith.constant 9.99999974E-6 : f32
    %124 = vector.broadcast %cst_44 : f32 to vector<8x1xf32>
    %125 = arith.addf %121, %124 : vector<8x1xf32>
    %126 = math.rsqrt %125 : vector<8x1xf32>
    %127 = vector.broadcast %126 : vector<8x1xf32> to vector<8x32xf32>
    %128 = arith.mulf %123, %127 : vector<8x32xf32>
    %c0_45 = arith.constant 0 : index
    %c0_46 = arith.constant 0 : index
    %129 = vector.load %arg9[%c0_45, %c0_46] : memref<1x32xf32, #tpu.memory_space<vmem>>, vector<1x32xf32>
    %130 = vector.broadcast %129 : vector<1x32xf32> to vector<8x32xf32>
    %131 = arith.mulf %128, %130 : vector<8x32xf32>
    %c0_47 = arith.constant 0 : index
    %c0_48 = arith.constant 0 : index
    %132 = vector.load %arg10[%c0_47, %c0_48] : memref<1x32xf32, #tpu.memory_space<vmem>>, vector<1x32xf32>
    %133 = vector.broadcast %132 : vector<1x32xf32> to vector<8x32xf32>
    %134 = arith.addf %131, %133 : vector<8x32xf32>
    %135 = arith.truncf %134 : vector<8x32xf32> to vector<8x32xbf16>
    %c0_49 = arith.constant 0 : index
    %c0_50 = arith.constant 0 : index
    %136 = vector.load %arg11[%c0_49, %c0_50] : memref<32x32xbf16, #tpu.memory_space<vmem>>, vector<32x32xbf16>
    %cst_51 = arith.constant dense<0.000000e+00> : vector<8x32xf32>
    %137 = tpu.matmul %135, %136, %cst_51 {dimension_numbers = #tpu.dot_dimension_numbers<[1], [0], [0], [1], [0, 0, 1, 1], [], []>} : vector<8x32xbf16>, vector<32x32xbf16>, vector<8x32xf32> -> vector<8x32xf32>
    %c0_52 = arith.constant 0 : index
    %c0_53 = arith.constant 0 : index
    %138 = vector.load %arg12[%c0_52, %c0_53] : memref<1x32xf32, #tpu.memory_space<vmem>>, vector<1x32xf32>
    %139 = vector.broadcast %138 : vector<1x32xf32> to vector<8x32xf32>
    %140 = arith.addf %137, %139 : vector<8x32xf32>
    %141 = arith.truncf %3 : vector<8x32xf32> to vector<8x32xbf16>
    %c0_54 = arith.constant 0 : index
    %c0_55 = arith.constant 0 : index
    %142 = vector.load %arg13[%c0_54, %c0_55] : memref<32x64xbf16, #tpu.memory_space<vmem>>, vector<32x64xbf16>
    %cst_56 = arith.constant dense<0.000000e+00> : vector<8x64xf32>
    %143 = tpu.matmul %141, %142, %cst_56 {dimension_numbers = #tpu.dot_dimension_numbers<[1], [0], [0], [1], [0, 0, 1, 1], [], []>} : vector<8x32xbf16>, vector<32x64xbf16>, vector<8x64xf32> -> vector<8x64xf32>
    %c0_57 = arith.constant 0 : index
    %c0_58 = arith.constant 0 : index
    %144 = vector.load %arg14[%c0_57, %c0_58] : memref<1x64xf32, #tpu.memory_space<vmem>>, vector<1x64xf32>
    %145 = vector.broadcast %144 : vector<1x64xf32> to vector<8x64xf32>
    %146 = arith.addf %143, %145 : vector<8x64xf32>
    %147 = vector.extract_strided_slice %146 {offsets = [0, 0], sizes = [8, 32], strides = [1, 1]} : vector<8x64xf32> to vector<8x32xf32>
    %148 = vector.extract_strided_slice %146 {offsets = [0, 32], sizes = [8, 32], strides = [1, 1]} : vector<8x64xf32> to vector<8x32xf32>
    %149 = arith.truncf %140 : vector<8x32xf32> to vector<8x32xbf16>
    %150 = vector.shape_cast %149 : vector<8x32xbf16> to vector<1x8x32xbf16>
    %151 = arith.truncf %147 : vector<8x32xf32> to vector<8x32xbf16>
    %152 = vector.shape_cast %151 : vector<8x32xbf16> to vector<1x8x32xbf16>
    %153 = arith.truncf %148 : vector<8x32xf32> to vector<8x32xbf16>
    %154 = vector.shape_cast %153 : vector<8x32xbf16> to vector<1x8x32xbf16>
    %155 = vector.extract_strided_slice %150 {offsets = [0, 0, 0], sizes = [1, 8, 8], strides = [1, 1, 1]} : vector<1x8x32xbf16> to vector<1x8x8xbf16>
    %156 = vector.extract_strided_slice %152 {offsets = [0, 0, 0], sizes = [1, 8, 8], strides = [1, 1, 1]} : vector<1x8x32xbf16> to vector<1x8x8xbf16>
    %157 = vector.extract_strided_slice %154 {offsets = [0, 0, 0], sizes = [1, 8, 8], strides = [1, 1, 1]} : vector<1x8x32xbf16> to vector<1x8x8xbf16>
    "tpu.trace_start"() <{level = 10 : i32, message = "bqd,bkd->bqk"}> : () -> ()
    %cst_59 = arith.constant dense<0.000000e+00> : vector<1x8x8xf32>
    %158 = tpu.matmul %155, %156, %cst_59 {dimension_numbers = #tpu.dot_dimension_numbers<[2], [2], [1], [1], [0, 0, 0, 1, 1, 1], [0], [0]>} : vector<1x8x8xbf16>, vector<1x8x8xbf16>, vector<1x8x8xf32> -> vector<1x8x8xf32>
    "tpu.trace_stop"() : () -> ()
    %159 = arith.addf %158, %15 : vector<1x8x8xf32>
    %cst_60 = arith.constant dense<0xFF800000> : vector<1x8xf32>
    %160 = vector.multi_reduction <maximumf>, %159, %cst_60 [2] : vector<1x8x8xf32> to vector<1x8xf32>
    %161 = vector.shape_cast %160 : vector<1x8xf32> to vector<1x8x1xf32>
    %162 = vector.broadcast %161 : vector<1x8x1xf32> to vector<1x8x8xf32>
    %163 = arith.subf %159, %162 : vector<1x8x8xf32>
    %164 = math.exp %163 : vector<1x8x8xf32>
    %cst_61 = arith.constant dense<0.000000e+00> : vector<1x8xf32>
    %165 = vector.multi_reduction <add>, %164, %cst_61 [2] : vector<1x8x8xf32> to vector<1x8xf32>
    %166 = vector.shape_cast %165 : vector<1x8xf32> to vector<1x8x1xf32>
    %167 = tpu.reciprocal %166 {approx = true} : vector<1x8x1xf32> -> vector<1x8x1xf32>
    %168 = vector.broadcast %167 : vector<1x8x1xf32> to vector<1x8x8xf32>
    %169 = arith.mulf %164, %168 : vector<1x8x8xf32>
    %170 = arith.truncf %169 : vector<1x8x8xf32> to vector<1x8x8xbf16>
    "tpu.trace_start"() <{level = 10 : i32, message = "bqk,bkv->bqv"}> : () -> ()
    %cst_62 = arith.constant dense<0.000000e+00> : vector<1x8x8xf32>
    %171 = tpu.matmul %170, %157, %cst_62 {dimension_numbers = #tpu.dot_dimension_numbers<[2], [1], [1], [2], [0, 0, 0, 1, 1, 2], [0], [0]>} : vector<1x8x8xbf16>, vector<1x8x8xbf16>, vector<1x8x8xf32> -> vector<1x8x8xf32>
    "tpu.trace_stop"() : () -> ()
    %172 = arith.truncf %171 : vector<1x8x8xf32> to vector<1x8x8xbf16>
    %173 = vector.extract_strided_slice %150 {offsets = [0, 0, 8], sizes = [1, 8, 8], strides = [1, 1, 1]} : vector<1x8x32xbf16> to vector<1x8x8xbf16>
    %174 = vector.extract_strided_slice %152 {offsets = [0, 0, 8], sizes = [1, 8, 8], strides = [1, 1, 1]} : vector<1x8x32xbf16> to vector<1x8x8xbf16>
    %175 = vector.extract_strided_slice %154 {offsets = [0, 0, 8], sizes = [1, 8, 8], strides = [1, 1, 1]} : vector<1x8x32xbf16> to vector<1x8x8xbf16>
    "tpu.trace_start"() <{level = 10 : i32, message = "bqd,bkd->bqk"}> : () -> ()
    %cst_63 = arith.constant dense<0.000000e+00> : vector<1x8x8xf32>
    %176 = tpu.matmul %173, %174, %cst_63 {dimension_numbers = #tpu.dot_dimension_numbers<[2], [2], [1], [1], [0, 0, 0, 1, 1, 1], [0], [0]>} : vector<1x8x8xbf16>, vector<1x8x8xbf16>, vector<1x8x8xf32> -> vector<1x8x8xf32>
    "tpu.trace_stop"() : () -> ()
    %177 = arith.addf %176, %15 : vector<1x8x8xf32>
    %cst_64 = arith.constant dense<0xFF800000> : vector<1x8xf32>
    %178 = vector.multi_reduction <maximumf>, %177, %cst_64 [2] : vector<1x8x8xf32> to vector<1x8xf32>
    %179 = vector.shape_cast %178 : vector<1x8xf32> to vector<1x8x1xf32>
    %180 = vector.broadcast %179 : vector<1x8x1xf32> to vector<1x8x8xf32>
    %181 = arith.subf %177, %180 : vector<1x8x8xf32>
    %182 = math.exp %181 : vector<1x8x8xf32>
    %cst_65 = arith.constant dense<0.000000e+00> : vector<1x8xf32>
    %183 = vector.multi_reduction <add>, %182, %cst_65 [2] : vector<1x8x8xf32> to vector<1x8xf32>
    %184 = vector.shape_cast %183 : vector<1x8xf32> to vector<1x8x1xf32>
    %185 = tpu.reciprocal %184 {approx = true} : vector<1x8x1xf32> -> vector<1x8x1xf32>
    %186 = vector.broadcast %185 : vector<1x8x1xf32> to vector<1x8x8xf32>
    %187 = arith.mulf %182, %186 : vector<1x8x8xf32>
    %188 = arith.truncf %187 : vector<1x8x8xf32> to vector<1x8x8xbf16>
    "tpu.trace_start"() <{level = 10 : i32, message = "bqk,bkv->bqv"}> : () -> ()
    %cst_66 = arith.constant dense<0.000000e+00> : vector<1x8x8xf32>
    %189 = tpu.matmul %188, %175, %cst_66 {dimension_numbers = #tpu.dot_dimension_numbers<[2], [1], [1], [2], [0, 0, 0, 1, 1, 2], [0], [0]>} : vector<1x8x8xbf16>, vector<1x8x8xbf16>, vector<1x8x8xf32> -> vector<1x8x8xf32>
    "tpu.trace_stop"() : () -> ()
    %190 = arith.truncf %189 : vector<1x8x8xf32> to vector<1x8x8xbf16>
    %191 = vector.extract_strided_slice %150 {offsets = [0, 0, 16], sizes = [1, 8, 8], strides = [1, 1, 1]} : vector<1x8x32xbf16> to vector<1x8x8xbf16>
    %192 = vector.extract_strided_slice %152 {offsets = [0, 0, 16], sizes = [1, 8, 8], strides = [1, 1, 1]} : vector<1x8x32xbf16> to vector<1x8x8xbf16>
    %193 = vector.extract_strided_slice %154 {offsets = [0, 0, 16], sizes = [1, 8, 8], strides = [1, 1, 1]} : vector<1x8x32xbf16> to vector<1x8x8xbf16>
    "tpu.trace_start"() <{level = 10 : i32, message = "bqd,bkd->bqk"}> : () -> ()
    %cst_67 = arith.constant dense<0.000000e+00> : vector<1x8x8xf32>
    %194 = tpu.matmul %191, %192, %cst_67 {dimension_numbers = #tpu.dot_dimension_numbers<[2], [2], [1], [1], [0, 0, 0, 1, 1, 1], [0], [0]>} : vector<1x8x8xbf16>, vector<1x8x8xbf16>, vector<1x8x8xf32> -> vector<1x8x8xf32>
    "tpu.trace_stop"() : () -> ()
    %195 = arith.addf %194, %15 : vector<1x8x8xf32>
    %cst_68 = arith.constant dense<0xFF800000> : vector<1x8xf32>
    %196 = vector.multi_reduction <maximumf>, %195, %cst_68 [2] : vector<1x8x8xf32> to vector<1x8xf32>
    %197 = vector.shape_cast %196 : vector<1x8xf32> to vector<1x8x1xf32>
    %198 = vector.broadcast %197 : vector<1x8x1xf32> to vector<1x8x8xf32>
    %199 = arith.subf %195, %198 : vector<1x8x8xf32>
    %200 = math.exp %199 : vector<1x8x8xf32>
    %cst_69 = arith.constant dense<0.000000e+00> : vector<1x8xf32>
    %201 = vector.multi_reduction <add>, %200, %cst_69 [2] : vector<1x8x8xf32> to vector<1x8xf32>
    %202 = vector.shape_cast %201 : vector<1x8xf32> to vector<1x8x1xf32>
    %203 = tpu.reciprocal %202 {approx = true} : vector<1x8x1xf32> -> vector<1x8x1xf32>
    %204 = vector.broadcast %203 : vector<1x8x1xf32> to vector<1x8x8xf32>
    %205 = arith.mulf %200, %204 : vector<1x8x8xf32>
    %206 = arith.truncf %205 : vector<1x8x8xf32> to vector<1x8x8xbf16>
    "tpu.trace_start"() <{level = 10 : i32, message = "bqk,bkv->bqv"}> : () -> ()
    %cst_70 = arith.constant dense<0.000000e+00> : vector<1x8x8xf32>
    %207 = tpu.matmul %206, %193, %cst_70 {dimension_numbers = #tpu.dot_dimension_numbers<[2], [1], [1], [2], [0, 0, 0, 1, 1, 2], [0], [0]>} : vector<1x8x8xbf16>, vector<1x8x8xbf16>, vector<1x8x8xf32> -> vector<1x8x8xf32>
    "tpu.trace_stop"() : () -> ()
    %208 = arith.truncf %207 : vector<1x8x8xf32> to vector<1x8x8xbf16>
    %209 = vector.extract_strided_slice %150 {offsets = [0, 0, 24], sizes = [1, 8, 8], strides = [1, 1, 1]} : vector<1x8x32xbf16> to vector<1x8x8xbf16>
    %210 = vector.extract_strided_slice %152 {offsets = [0, 0, 24], sizes = [1, 8, 8], strides = [1, 1, 1]} : vector<1x8x32xbf16> to vector<1x8x8xbf16>
    %211 = vector.extract_strided_slice %154 {offsets = [0, 0, 24], sizes = [1, 8, 8], strides = [1, 1, 1]} : vector<1x8x32xbf16> to vector<1x8x8xbf16>
    "tpu.trace_start"() <{level = 10 : i32, message = "bqd,bkd->bqk"}> : () -> ()
    %cst_71 = arith.constant dense<0.000000e+00> : vector<1x8x8xf32>
    %212 = tpu.matmul %209, %210, %cst_71 {dimension_numbers = #tpu.dot_dimension_numbers<[2], [2], [1], [1], [0, 0, 0, 1, 1, 1], [0], [0]>} : vector<1x8x8xbf16>, vector<1x8x8xbf16>, vector<1x8x8xf32> -> vector<1x8x8xf32>
    "tpu.trace_stop"() : () -> ()
    %213 = arith.addf %212, %15 : vector<1x8x8xf32>
    %cst_72 = arith.constant dense<0xFF800000> : vector<1x8xf32>
    %214 = vector.multi_reduction <maximumf>, %213, %cst_72 [2] : vector<1x8x8xf32> to vector<1x8xf32>
    %215 = vector.shape_cast %214 : vector<1x8xf32> to vector<1x8x1xf32>
    %216 = vector.broadcast %215 : vector<1x8x1xf32> to vector<1x8x8xf32>
    %217 = arith.subf %213, %216 : vector<1x8x8xf32>
    %218 = math.exp %217 : vector<1x8x8xf32>
    %cst_73 = arith.constant dense<0.000000e+00> : vector<1x8xf32>
    %219 = vector.multi_reduction <add>, %218, %cst_73 [2] : vector<1x8x8xf32> to vector<1x8xf32>
    %220 = vector.shape_cast %219 : vector<1x8xf32> to vector<1x8x1xf32>
    %221 = tpu.reciprocal %220 {approx = true} : vector<1x8x1xf32> -> vector<1x8x1xf32>
    %222 = vector.broadcast %221 : vector<1x8x1xf32> to vector<1x8x8xf32>
    %223 = arith.mulf %218, %222 : vector<1x8x8xf32>
    %224 = arith.truncf %223 : vector<1x8x8xf32> to vector<1x8x8xbf16>
    "tpu.trace_start"() <{level = 10 : i32, message = "bqk,bkv->bqv"}> : () -> ()
    %cst_74 = arith.constant dense<0.000000e+00> : vector<1x8x8xf32>
    %225 = tpu.matmul %224, %211, %cst_74 {dimension_numbers = #tpu.dot_dimension_numbers<[2], [1], [1], [2], [0, 0, 0, 1, 1, 2], [0], [0]>} : vector<1x8x8xbf16>, vector<1x8x8xbf16>, vector<1x8x8xf32> -> vector<1x8x8xf32>
    "tpu.trace_stop"() : () -> ()
    %226 = arith.truncf %225 : vector<1x8x8xf32> to vector<1x8x8xbf16>
    %227 = tpu.concatenate %172, %190, %208, %226 in 2 : vector<1x8x8xbf16>, vector<1x8x8xbf16>, vector<1x8x8xbf16>, vector<1x8x8xbf16> -> vector<1x8x32xbf16>
    %228 = vector.shape_cast %227 : vector<1x8x32xbf16> to vector<8x32xbf16>
    %c0_75 = arith.constant 0 : index
    %c0_76 = arith.constant 0 : index
    %229 = vector.load %arg15[%c0_75, %c0_76] : memref<32x32xbf16, #tpu.memory_space<vmem>>, vector<32x32xbf16>
    %cst_77 = arith.constant dense<0.000000e+00> : vector<8x32xf32>
    %230 = tpu.matmul %228, %229, %cst_77 {dimension_numbers = #tpu.dot_dimension_numbers<[1], [0], [0], [1], [0, 0, 1, 1], [], []>} : vector<8x32xbf16>, vector<32x32xbf16>, vector<8x32xf32> -> vector<8x32xf32>
    %c0_78 = arith.constant 0 : index
    %c0_79 = arith.constant 0 : index
    %231 = vector.load %arg16[%c0_78, %c0_79] : memref<1x32xf32, #tpu.memory_space<vmem>>, vector<1x32xf32>
    %232 = vector.broadcast %231 : vector<1x32xf32> to vector<8x32xf32>
    %233 = arith.addf %230, %232 : vector<8x32xf32>
    %234 = arith.addf %233, %134 : vector<8x32xf32>
    %cst_80 = arith.constant dense<0.000000e+00> : vector<8xf32>
    %235 = vector.multi_reduction <add>, %234, %cst_80 [1] : vector<8x32xf32> to vector<8xf32>
    %236 = vector.shape_cast %235 : vector<8xf32> to vector<8x1xf32>
    %cst_81 = arith.constant 3.200000e+01 : f32
    %237 = vector.broadcast %cst_81 : f32 to vector<8x1xf32>
    %238 = arith.divf %236, %237 : vector<8x1xf32>
    %239 = vector.broadcast %238 : vector<8x1xf32> to vector<8x32xf32>
    %240 = arith.subf %234, %239 : vector<8x32xf32>
    %241 = arith.mulf %240, %240 : vector<8x32xf32>
    %cst_82 = arith.constant dense<0.000000e+00> : vector<8xf32>
    %242 = vector.multi_reduction <add>, %241, %cst_82 [1] : vector<8x32xf32> to vector<8xf32>
    %243 = vector.shape_cast %242 : vector<8xf32> to vector<8x1xf32>
    %cst_83 = arith.constant 3.200000e+01 : f32
    %244 = vector.broadcast %cst_83 : f32 to vector<8x1xf32>
    %245 = arith.divf %243, %244 : vector<8x1xf32>
    %246 = vector.broadcast %238 : vector<8x1xf32> to vector<8x32xf32>
    %247 = arith.subf %234, %246 : vector<8x32xf32>
    %cst_84 = arith.constant 9.99999974E-6 : f32
    %248 = vector.broadcast %cst_84 : f32 to vector<8x1xf32>
    %249 = arith.addf %245, %248 : vector<8x1xf32>
    %250 = math.rsqrt %249 : vector<8x1xf32>
    %251 = vector.broadcast %250 : vector<8x1xf32> to vector<8x32xf32>
    %252 = arith.mulf %247, %251 : vector<8x32xf32>
    %c0_85 = arith.constant 0 : index
    %c0_86 = arith.constant 0 : index
    %253 = vector.load %arg17[%c0_85, %c0_86] : memref<1x32xf32, #tpu.memory_space<vmem>>, vector<1x32xf32>
    %254 = vector.broadcast %253 : vector<1x32xf32> to vector<8x32xf32>
    %255 = arith.mulf %252, %254 : vector<8x32xf32>
    %c0_87 = arith.constant 0 : index
    %c0_88 = arith.constant 0 : index
    %256 = vector.load %arg18[%c0_87, %c0_88] : memref<1x32xf32, #tpu.memory_space<vmem>>, vector<1x32xf32>
    %257 = vector.broadcast %256 : vector<1x32xf32> to vector<8x32xf32>
    %258 = arith.addf %255, %257 : vector<8x32xf32>
    %259 = arith.truncf %258 : vector<8x32xf32> to vector<8x32xbf16>
    %c0_89 = arith.constant 0 : index
    %c0_90 = arith.constant 0 : index
    %260 = vector.load %arg19[%c0_89, %c0_90] : memref<32x64xbf16, #tpu.memory_space<vmem>>, vector<32x64xbf16>
    %cst_91 = arith.constant dense<0.000000e+00> : vector<8x64xf32>
    %261 = tpu.matmul %259, %260, %cst_91 {dimension_numbers = #tpu.dot_dimension_numbers<[1], [0], [0], [1], [0, 0, 1, 1], [], []>} : vector<8x32xbf16>, vector<32x64xbf16>, vector<8x64xf32> -> vector<8x64xf32>
    %c0_92 = arith.constant 0 : index
    %c0_93 = arith.constant 0 : index
    %262 = vector.load %arg20[%c0_92, %c0_93] : memref<1x64xf32, #tpu.memory_space<vmem>>, vector<1x64xf32>
    %263 = vector.broadcast %262 : vector<1x64xf32> to vector<8x64xf32>
    %264 = arith.addf %261, %263 : vector<8x64xf32>
    %cst_94 = arith.constant 0.000000e+00 : f32
    %265 = vector.broadcast %cst_94 : f32 to vector<8x64xf32>
    %266 = arith.maximumf %264, %265 : vector<8x64xf32>
    %267 = arith.truncf %266 : vector<8x64xf32> to vector<8x64xbf16>
    %c0_95 = arith.constant 0 : index
    %c0_96 = arith.constant 0 : index
    %268 = vector.load %arg21[%c0_95, %c0_96] : memref<64x32xbf16, #tpu.memory_space<vmem>>, vector<64x32xbf16>
    %cst_97 = arith.constant dense<0.000000e+00> : vector<8x32xf32>
    %269 = tpu.matmul %267, %268, %cst_97 {dimension_numbers = #tpu.dot_dimension_numbers<[1], [0], [0], [1], [0, 0, 1, 1], [], []>} : vector<8x64xbf16>, vector<64x32xbf16>, vector<8x32xf32> -> vector<8x32xf32>
    %c0_98 = arith.constant 0 : index
    %c0_99 = arith.constant 0 : index
    %270 = vector.load %arg22[%c0_98, %c0_99] : memref<1x32xf32, #tpu.memory_space<vmem>>, vector<1x32xf32>
    %271 = vector.broadcast %270 : vector<1x32xf32> to vector<8x32xf32>
    %272 = arith.addf %269, %271 : vector<8x32xf32>
    %273 = arith.addf %272, %258 : vector<8x32xf32>
    %cst_100 = arith.constant dense<0.000000e+00> : vector<8xf32>
    %274 = vector.multi_reduction <add>, %273, %cst_100 [1] : vector<8x32xf32> to vector<8xf32>
    %275 = vector.shape_cast %274 : vector<8xf32> to vector<8x1xf32>
    %cst_101 = arith.constant 3.200000e+01 : f32
    %276 = vector.broadcast %cst_101 : f32 to vector<8x1xf32>
    %277 = arith.divf %275, %276 : vector<8x1xf32>
    %278 = vector.broadcast %277 : vector<8x1xf32> to vector<8x32xf32>
    %279 = arith.subf %273, %278 : vector<8x32xf32>
    %280 = arith.mulf %279, %279 : vector<8x32xf32>
    %cst_102 = arith.constant dense<0.000000e+00> : vector<8xf32>
    %281 = vector.multi_reduction <add>, %280, %cst_102 [1] : vector<8x32xf32> to vector<8xf32>
    %282 = vector.shape_cast %281 : vector<8xf32> to vector<8x1xf32>
    %cst_103 = arith.constant 3.200000e+01 : f32
    %283 = vector.broadcast %cst_103 : f32 to vector<8x1xf32>
    %284 = arith.divf %282, %283 : vector<8x1xf32>
    %285 = vector.broadcast %277 : vector<8x1xf32> to vector<8x32xf32>
    %286 = arith.subf %273, %285 : vector<8x32xf32>
    %cst_104 = arith.constant 9.99999974E-6 : f32
    %287 = vector.broadcast %cst_104 : f32 to vector<8x1xf32>
    %288 = arith.addf %284, %287 : vector<8x1xf32>
    %289 = math.rsqrt %288 : vector<8x1xf32>
    %290 = vector.broadcast %289 : vector<8x1xf32> to vector<8x32xf32>
    %291 = arith.mulf %286, %290 : vector<8x32xf32>
    %c0_105 = arith.constant 0 : index
    %c0_106 = arith.constant 0 : index
    %292 = vector.load %arg23[%c0_105, %c0_106] : memref<1x32xf32, #tpu.memory_space<vmem>>, vector<1x32xf32>
    %293 = vector.broadcast %292 : vector<1x32xf32> to vector<8x32xf32>
    %294 = arith.mulf %291, %293 : vector<8x32xf32>
    %c0_107 = arith.constant 0 : index
    %c0_108 = arith.constant 0 : index
    %295 = vector.load %arg24[%c0_107, %c0_108] : memref<1x32xf32, #tpu.memory_space<vmem>>, vector<1x32xf32>
    %296 = vector.broadcast %295 : vector<1x32xf32> to vector<8x32xf32>
    %297 = arith.addf %294, %296 : vector<8x32xf32>
    %298 = vector.shape_cast %297 : vector<8x32xf32> to vector<1x8x32xf32>
    %c0_109 = arith.constant 0 : index
    %c0_110 = arith.constant 0 : index
    %c0_111 = arith.constant 0 : index
    %299 = vector.load %arg25[%c0_109, %c0_110, %c0_111] : memref<1x8x32xf32, #tpu.memory_space<vmem>>, vector<1x8x32xf32>
    tpu.vector_store %arg25[%c0_109, %c0_110, %c0_111], %298 {strides = array<i32>} : memref<1x8x32xf32, #tpu.memory_space<vmem>>, vector<1x8x32xf32>,
    return
  }
  func.func @transform_0(%arg0: i32) -> (i32, i32, i32) {
    %c0_i32 = arith.constant 0 : i32
    %c0_i32_0 = arith.constant 0 : i32
    %c0_i32_1 = arith.constant 0 : i32
    return %arg0, %c0_i32, %c0_i32_0 : i32, i32, i32
  }
  func.func @transform_1(%arg0: i32) -> (i32, i32, i32) {
    %c0_i32 = arith.constant 0 : i32
    %c0_i32_0 = arith.constant 0 : i32
    %c0_i32_1 = arith.constant 0 : i32
    return %arg0, %c0_i32, %c0_i32_0 : i32, i32, i32
  }
  func.func @transform_2(%arg0: i32) -> (i32, i32, i32) {
    %c0_i32 = arith.constant 0 : i32
    %c0_i32_0 = arith.constant 0 : i32
    %c0_i32_1 = arith.constant 0 : i32
    return %arg0, %c0_i32, %c0_i32_0 : i32, i32, i32
  }
  func.func @transform_3(%arg0: i32) -> (i32, i32, i32) {
    %c0_i32 = arith.constant 0 : i32
    %c0_i32_0 = arith.constant 0 : i32
    %c0_i32_1 = arith.constant 0 : i32
    return %arg0, %c0_i32, %c0_i32_0 : i32, i32, i32
  }
  func.func @transform_4(%arg0: i32) -> (i32, i32) {
    %c0_i32 = arith.constant 0 : i32
    %c0_i32_0 = arith.constant 0 : i32
    %c0_i32_1 = arith.constant 0 : i32
    return %c0_i32, %c0_i32_0 : i32, i32
  }
  func.func @transform_5(%arg0: i32) -> (i32, i32) {
    %c0_i32 = arith.constant 0 : i32
    %c0_i32_0 = arith.constant 0 : i32
    %c0_i32_1 = arith.constant 0 : i32
    return %c0_i32, %c0_i32_0 : i32, i32
  }
  func.func @transform_6(%arg0: i32) -> (i32, i32) {
    %c0_i32 = arith.constant 0 : i32
    %c0_i32_0 = arith.constant 0 : i32
    %c0_i32_1 = arith.constant 0 : i32
    return %c0_i32, %c0_i32_0 : i32, i32
  }
  func.func @transform_7(%arg0: i32) -> (i32, i32) {
    %c0_i32 = arith.constant 0 : i32
    %c0_i32_0 = arith.constant 0 : i32
    %c0_i32_1 = arith.constant 0 : i32
    return %c0_i32, %c0_i32_0 : i32, i32
  }
  func.func @transform_8(%arg0: i32) -> (i32, i32) {
    %c0_i32 = arith.constant 0 : i32
    %c0_i32_0 = arith.constant 0 : i32
    %c0_i32_1 = arith.constant 0 : i32
    return %c0_i32, %c0_i32_0 : i32, i32
  }
  func.func @transform_9(%arg0: i32) -> (i32, i32) {
    %c0_i32 = arith.constant 0 : i32
    %c0_i32_0 = arith.constant 0 : i32
    %c0_i32_1 = arith.constant 0 : i32
    return %c0_i32, %c0_i32_0 : i32, i32
  }
  func.func @transform_10(%arg0: i32) -> (i32, i32) {
    %c0_i32 = arith.constant 0 : i32
    %c0_i32_0 = arith.constant 0 : i32
    %c0_i32_1 = arith.constant 0 : i32
    return %c0_i32, %c0_i32_0 : i32, i32
  }
  func.func @transform_11(%arg0: i32) -> (i32, i32) {
    %c0_i32 = arith.constant 0 : i32
    %c0_i32_0 = arith.constant 0 : i32
    %c0_i32_1 = arith.constant 0 : i32
    return %c0_i32, %c0_i32_0 : i32, i32
  }
  func.func @transform_12(%arg0: i32) -> (i32, i32) {
    %c0_i32 = arith.constant 0 : i32
    %c0_i32_0 = arith.constant 0 : i32
    %c0_i32_1 = arith.constant 0 : i32
    return %c0_i32, %c0_i32_0 : i32, i32
  }
  func.func @transform_13(%arg0: i32) -> (i32, i32) {
    %c0_i32 = arith.constant 0 : i32
    %c0_i32_0 = arith.constant 0 : i32
    %c0_i32_1 = arith.constant 0 : i32
    return %c0_i32, %c0_i32_0 : i32, i32
  }
  func.func @transform_14(%arg0: i32) -> (i32, i32) {
    %c0_i32 = arith.constant 0 : i32
    %c0_i32_0 = arith.constant 0 : i32
    %c0_i32_1 = arith.constant 0 : i32
    return %c0_i32, %c0_i32_0 : i32, i32
  }
  func.func @transform_15(%arg0: i32) -> (i32, i32) {
    %c0_i32 = arith.constant 0 : i32
    %c0_i32_0 = arith.constant 0 : i32
    %c0_i32_1 = arith.constant 0 : i32
    return %c0_i32, %c0_i32_0 : i32, i32
  }
  func.func @transform_16(%arg0: i32) -> (i32, i32) {
    %c0_i32 = arith.constant 0 : i32
    %c0_i32_0 = arith.constant 0 : i32
    %c0_i32_1 = arith.constant 0 : i32
    return %c0_i32, %c0_i32_0 : i32, i32
  }
  func.func @transform_17(%arg0: i32) -> (i32, i32) {
    %c0_i32 = arith.constant 0 : i32
    %c0_i32_0 = arith.constant 0 : i32
    %c0_i32_1 = arith.constant 0 : i32
    return %c0_i32, %c0_i32_0 : i32, i32
  }
  func.func @transform_18(%arg0: i32) -> (i32, i32) {
    %c0_i32 = arith.constant 0 : i32
    %c0_i32_0 = arith.constant 0 : i32
    %c0_i32_1 = arith.constant 0 : i32
    return %c0_i32, %c0_i32_0 : i32, i32
  }
  func.func @transform_19(%arg0: i32) -> (i32, i32) {
    %c0_i32 = arith.constant 0 : i32
    %c0_i32_0 = arith.constant 0 : i32
    %c0_i32_1 = arith.constant 0 : i32
    return %c0_i32, %c0_i32_0 : i32, i32
  }
  func.func @transform_20(%arg0: i32) -> (i32, i32) {
    %c0_i32 = arith.constant 0 : i32
    %c0_i32_0 = arith.constant 0 : i32
    %c0_i32_1 = arith.constant 0 : i32
    return %c0_i32, %c0_i32_0 : i32, i32
  }
  func.func @transform_21(%arg0: i32) -> (i32, i32) {
    %c0_i32 = arith.constant 0 : i32
    %c0_i32_0 = arith.constant 0 : i32
    %c0_i32_1 = arith.constant 0 : i32
    return %c0_i32, %c0_i32_0 : i32, i32
  }
  func.func @transform_22(%arg0: i32) -> (i32, i32) {
    %c0_i32 = arith.constant 0 : i32
    %c0_i32_0 = arith.constant 0 : i32
    %c0_i32_1 = arith.constant 0 : i32
    return %c0_i32, %c0_i32_0 : i32, i32
  }
  func.func @transform_23(%arg0: i32) -> (i32, i32) {
    %c0_i32 = arith.constant 0 : i32
    %c0_i32_0 = arith.constant 0 : i32
    %c0_i32_1 = arith.constant 0 : i32
    return %c0_i32, %c0_i32_0 : i32, i32
  }
  func.func @transform_24(%arg0: i32) -> (i32, i32, i32) {
    %c0_i32 = arith.constant 0 : i32
    %c0_i32_0 = arith.constant 0 : i32
    %c0_i32_1 = arith.constant 0 : i32
    return %arg0, %c0_i32, %c0_i32_0 : i32, i32, i32
  }
}

module attributes {stable_mosaic.version = 11 : i64} {
  func.func @decoder_block_kernel(%arg0: i32, %arg1: memref<1x8x32xf32, #tpu.memory_space<vmem>>, %arg2: memref<1x8x32xf32, #tpu.memory_space<vmem>>, %arg3: memref<1x8x8xbf16, #tpu.memory_space<vmem>>, %arg4: memref<1x8x8xbf16, #tpu.memory_space<vmem>>, %arg5: memref<32x96xbf16, #tpu.memory_space<vmem>>, %arg6: memref<1x96xf32, #tpu.memory_space<vmem>>, %arg7: memref<32x32xbf16, #tpu.memory_space<vmem>>, %arg8: memref<1x32xf32, #tpu.memory_space<vmem>>, %arg9: memref<1x32xf32, #tpu.memory_space<vmem>>, %arg10: memref<1x32xf32, #tpu.memory_space<vmem>>, %arg11: memref<32x32xbf16, #tpu.memory_space<vmem>>, %arg12: memref<1x32xf32, #tpu.memory_space<vmem>>, %arg13: memref<32x64xbf16, #tpu.memory_space<vmem>>, %arg14: memref<1x64xf32, #tpu.memory_space<vmem>>, %arg15: memref<32x32xbf16, #tpu.memory_space<vmem>>, %arg16: memref<1x32xf32, #tpu.memory_space<vmem>>, %arg17: memref<1x32xf32, #tpu.memory_space<vmem>>, %arg18: memref<1x32xf32, #tpu.memory_space<vmem>>, %arg19: memref<32x64xbf16, #tpu.memory_space<vmem>>, %arg20: memref<1x64xf32, #tpu.memory_space<vmem>>, %arg21: memref<64x32xbf16, #tpu.memory_space<vmem>>, %arg22: memref<1x32xf32, #tpu.memory_space<vmem>>, %arg23: memref<1x32xf32, #tpu.memory_space<vmem>>, %arg24: memref<1x32xf32, #tpu.memory_space<vmem>>, %arg25: memref<1x8x32xf32, #tpu.memory_space<vmem>>) attributes {dimension_semantics = [#tpu.dimension_semantics<parallel>], iteration_bounds = array<i64: 2>, scalar_prefetch = 0 : i64, scratch_operands = 0 : i64, tpu.core_type = #tpu.core_type<tc>, window_params = [{transform_indices = @transform_0, window_bounds = array<i64: 1, 8, 32>}, {transform_indices = @transform_1, window_bounds = array<i64: 1, 8, 32>}, {transform_indices = @transform_2, window_bounds = array<i64: 1, 8, 8>}, {transform_indices = @transform_3, window_bounds = array<i64: 1, 8, 8>}, {pipeline_mode = #tpu.pipeline_mode<synchronous>, transform_indices = @transform_4, window_bounds = array<i64: 32, 96>}, {pipeline_mode = #tpu.pipeline_mode<synchronous>, transform_indices = @transform_5, window_bounds = array<i64: 1, 96>}, {pipeline_mode = #tpu.pipeline_mode<synchronous>, transform_indices = @transform_6, window_bounds = array<i64: 32, 32>}, {pipeline_mode = #tpu.pipeline_mode<synchronous>, transform_indices = @transform_7, window_bounds = array<i64: 1, 32>}, {pipeline_mode = #tpu.pipeline_mode<synchronous>, transform_indices = @transform_8, window_bounds = array<i64: 1, 32>}, {pipeline_mode = #tpu.pipeline_mode<synchronous>, transform_indices = @transform_9, window_bounds = array<i64: 1, 32>}, {pipeline_mode = #tpu.pipeline_mode<synchronous>, transform_indices = @transform_10, window_bounds = array<i64: 32, 32>}, {pipeline_mode = #tpu.pipeline_mode<synchronous>, transform_indices = @transform_11, window_bounds = array<i64: 1, 32>}, {pipeline_mode = #tpu.pipeline_mode<synchronous>, transform_indices = @transform_12, window_bounds = array<i64: 32, 64>}, {pipeline_mode = #tpu.pipeline_mode<synchronous>, transform_indices = @transform_13, window_bounds = array<i64: 1, 64>}, {pipeline_mode = #tpu.pipeline_mode<synchronous>, transform_indices = @transform_14, window_bounds = array<i64: 32, 32>}, {pipeline_mode = #tpu.pipeline_mode<synchronous>, transform_indices = @transform_15, window_bounds = array<i64: 1, 32>}, {pipeline_mode = #tpu.pipeline_mode<synchronous>, transform_indices = @transform_16, window_bounds = array<i64: 1, 32>}, {pipeline_mode = #tpu.pipeline_mode<synchronous>, transform_indices = @transform_17, window_bounds = array<i64: 1, 32>}, {pipeline_mode = #tpu.pipeline_mode<synchronous>, transform_indices = @transform_18, window_bounds = array<i64: 32, 64>}, {pipeline_mode = #tpu.pipeline_mode<synchronous>, transform_indices = @transform_19, window_bounds = array<i64: 1, 64>}, {pipeline_mode = #tpu.pipeline_mode<synchronous>, transform_indices = @transform_20, window_bounds = array<i64: 64, 32>}, {pipeline_mode = #tpu.pipeline_mode<synchronous>, transform_indices = @transform_21, window_bounds = array<i64: 1, 32>}, {pipeline_mode = #tpu.pipeline_mode<synchronous>, transform_indices = @transform_22, window_bounds = array<i64: 1, 32>}, {pipeline_mode = #tpu.pipeline_mode<synchronous>, transform_indices = @transform_23, window_bounds = array<i64: 1, 32>}, {transform_indices = @transform_24, window_bounds = array<i64: 1, 8, 32>}]} {
    %c0 = arith.constant 0 : index
    %c0_0 = arith.constant 0 : index
    %c0_1 = arith.constant 0 : index
    %0 = vector.load %arg1[%c0, %c0_0, %c0_1] : memref<1x8x32xf32, #tpu.memory_space<vmem>>, vector<1x8x32xf32>
    %1 = vector.shape_cast %0 : vector<1x8x32xf32> to vector<8x32xf32>
    %c0_2 = arith.constant 0 : index
    %c0_3 = arith.constant 0 : index
    %c0_4 = arith.constant 0 : index
    %2 = vector.load %arg2[%c0_2, %c0_3, %c0_4] : memref<1x8x32xf32, #tpu.memory_space<vmem>>, vector<1x8x32xf32>
    %3 = vector.shape_cast %2 : vector<1x8x32xf32> to vector<8x32xf32>
    %c0_5 = arith.constant 0 : index
    %c0_6 = arith.constant 0 : index
    %c0_7 = arith.constant 0 : index
    %4 = vector.load %arg3[%c0_5, %c0_6, %c0_7] : memref<1x8x8xbf16, #tpu.memory_space<vmem>>, vector<1x8x8xbf16>
    %5 = arith.extf %4 : vector<1x8x8xbf16> to vector<1x8x8xf32>
    %cst = arith.constant 1.000000e+00 : f32
    %6 = vector.broadcast %cst : f32 to vector<1x8x8xf32>
    %7 = arith.subf %5, %6 : vector<1x8x8xf32>
    %cst_8 = arith.constant 1.000000e+30 : f32
    %8 = vector.broadcast %cst_8 : f32 to vector<1x8x8xf32>
    %9 = arith.mulf %7, %8 : vector<1x8x8xf32>
    %c0_9 = arith.constant 0 : index
    %c0_10 = arith.constant 0 : index
    %c0_11 = arith.constant 0 : index
    %10 = vector.load %arg4[%c0_9, %c0_10, %c0_11] : memref<1x8x8xbf16, #tpu.memory_space<vmem>>, vector<1x8x8xbf16>
    %11 = arith.extf %10 : vector<1x8x8xbf16> to vector<1x8x8xf32>
    %cst_12 = arith.constant 1.000000e+00 : f32
    %12 = vector.broadcast %cst_12 : f32 to vector<1x8x8xf32>
    %13 = arith.subf %11, %12 : vector<1x8x8xf32>
    %cst_13 = arith.constant 1.000000e+30 : f32
    %14 = vector.broadcast %cst_13 : f32 to vector<1x8x8xf32>
    %15 = arith.mulf %13, %14 : vector<1x8x8xf32>
    %16 = arith.truncf %1 : vector<8x32xf32> to vector<8x32xbf16>
    %c0_14 = arith.constant 0 : index
    %c0_15 = arith.constant 0 : index
    %17 = vector.load %arg5[%c0_14, %c0_15] : memref<32x96xbf16, #tpu.memory_space<vmem>>, vector<32x96xbf16>
    %cst_16 = arith.constant dense<0.000000e+00> : vector<8x96xf32>
    %18 = tpu.matmul %16, %17, %cst_16 {dimension_numbers = #tpu.dot_dimension_numbers<[1], [0], [0], [1], [0, 0, 1, 1], [], []>} : vector<8x32xbf16>, vector<32x96xbf16>, vector<8x96xf32> -> vector<8x96xf32>
    %c0_17 = arith.constant 0 : index
    %c0_18 = arith.constant 0 : index
    %19 = vector.load %arg6[%c0_17, %c0_18] : memref<1x96xf32, #tpu.memory_space<vmem>>, vector<1x96xf32>
    %20 = vector.broadcast %19 : vector<1x96xf32> to vector<8x96xf32>
    %21 = arith.addf %18, %20 : vector<8x96xf32>
    %22 = vector.extract_strided_slice %21 {offsets = [0, 0], sizes = [8, 32], strides = [1, 1]} : vector<8x96xf32> to vector<8x32xf32>
    %23 = vector.extract_strided_slice %21 {offsets = [0, 32], sizes = [8, 32], strides = [1, 1]} : vector<8x96xf32> to vector<8x32xf32>
    %24 = vector.extract_strided_slice %21 {offsets = [0, 64], sizes = [8, 32], strides = [1, 1]} : vector<8x96xf32> to vector<8x32xf32>
    %25 = arith.truncf %22 : vector<8x32xf32> to vector<8x32xbf16>
    %26 = vector.shape_cast %25 : vector<8x32xbf16> to vector<1x8x32xbf16>
    %27 = arith.truncf %23 : vector<8x32xf32> to vector<8x32xbf16>
    %28 = vector.shape_cast %27 : vector<8x32xbf16> to vector<1x8x32xbf16>
    %29 = arith.truncf %24 : vector<8x32xf32> to vector<8x32xbf16>
    %30 = vector.shape_cast %29 : vector<8x32xbf16> to vector<1x8x32xbf16>
    %31 = vector.extract_strided_slice %26 {offsets = [0, 0, 0], sizes = [1, 8, 8], strides = [1, 1, 1]} : vector<1x8x32xbf16> to vector<1x8x8xbf16>
    %32 = vector.extract_strided_slice %28 {offsets = [0, 0, 0], sizes = [1, 8, 8], strides = [1, 1, 1]} : vector<1x8x32xbf16> to vector<1x8x8xbf16>
    %33 = vector.extract_strided_slice %30 {offsets = [0, 0, 0], sizes = [1, 8, 8], strides = [1, 1, 1]} : vector<1x8x32xbf16> to vector<1x8x8xbf16>
    "tpu.trace_start"() <{level = 10 : i32, message = "bqd,bkd->bqk"}> : () -> ()
    %cst_19 = arith.constant dense<0.000000e+00> : vector<1x8x8xf32>
    %34 = tpu.matmul %31, %32, %cst_19 {dimension_numbers = #tpu.dot_dimension_numbers<[2], [2], [1], [1], [0, 0, 0, 1, 1, 1], [0], [0]>} : vector<1x8x8xbf16>, vector<1x8x8xbf16>, vector<1x8x8xf32> -> vector<1x8x8xf32>
    "tpu.trace_stop"() : () -> ()
    %35 = arith.addf %34, %9 : vector<1x8x8xf32>
    %cst_20 = arith.constant dense<0xFF800000> : vector<1x8xf32>
    %36 = vector.multi_reduction <maximumf>, %35, %cst_20 [2] : vector<1x8x8xf32> to vector<1x8xf32>
    %37 = vector.shape_cast %36 : vector<1x8xf32> to vector<1x8x1xf32>
    %38 = vector.broadcast %37 : vector<1x8x1xf32> to vector<1x8x8xf32>
    %39 = arith.subf %35, %38 : vector<1x8x8xf32>
    %40 = math.exp %39 : vector<1x8x8xf32>
    %cst_21 = arith.constant dense<0.000000e+00> : vector<1x8xf32>
    %41 = vector.multi_reduction <add>, %40, %cst_21 [2] : vector<1x8x8xf32> to vector<1x8xf32>
    %42 = vector.shape_cast %41 : vector<1x8xf32> to vector<1x8x1xf32>
    %43 = tpu.reciprocal %42 {approx = true} : vector<1x8x1xf32> -> vector<1x8x1xf32>
    %44 = vector.broadcast %43 : vector<1x8x1xf32> to vector<1x8x8xf32>
    %45 = arith.mulf %40, %44 : vector<1x8x8xf32>
    %46 = arith.truncf %45 : vector<1x8x8xf32> to vector<1x8x8xbf16>
    "tpu.trace_start"() <{level = 10 : i32, message = "bqk,bkv->bqv"}> : () -> ()
    %cst_22 = arith.constant dense<0.000000e+00> : vector<1x8x8xf32>
    %47 = tpu.matmul %46, %33, %cst_22 {dimension_numbers = #tpu.dot_dimension_numbers<[2], [1], [1], [2], [0, 0, 0, 1, 1, 2], [0], [0]>} : vector<1x8x8xbf16>, vector<1x8x8xbf16>, vector<1x8x8xf32> -> vector<1x8x8xf32>
    "tpu.trace_stop"() : () -> ()
    %48 = arith.truncf %47 : vector<1x8x8xf32> to vector<1x8x8xbf16>
    %49 = vector.extract_strided_slice %26 {offsets = [0, 0, 8], sizes = [1, 8, 8], strides = [1, 1, 1]} : vector<1x8x32xbf16> to vector<1x8x8xbf16>
    %50 = vector.extract_strided_slice %28 {offsets = [0, 0, 8], sizes = [1, 8, 8], strides = [1, 1, 1]} : vector<1x8x32xbf16> to vector<1x8x8xbf16>
    %51 = vector.extract_strided_slice %30 {offsets = [0, 0, 8], sizes = [1, 8, 8], strides = [1, 1, 1]} : vector<1x8x32xbf16> to vector<1x8x8xbf16>
    "tpu.trace_start"() <{level = 10 : i32, message = "bqd,bkd->bqk"}> : () -> ()
    %cst_23 = arith.constant dense<0.000000e+00> : vector<1x8x8xf32>
    %52 = tpu.matmul %49, %50, %cst_23 {dimension_numbers = #tpu.dot_dimension_numbers<[2], [2], [1], [1], [0, 0, 0, 1, 1, 1], [0], [0]>} : vector<1x8x8xbf16>, vector<1x8x8xbf16>, vector<1x8x8xf32> -> vector<1x8x8xf32>
    "tpu.trace_stop"() : () -> ()
    %53 = arith.addf %52, %9 : vector<1x8x8xf32>
    %cst_24 = arith.constant dense<0xFF800000> : vector<1x8xf32>
    %54 = vector.multi_reduction <maximumf>, %53, %cst_24 [2] : vector<1x8x8xf32> to vector<1x8xf32>
    %55 = vector.shape_cast %54 : vector<1x8xf32> to vector<1x8x1xf32>
    %56 = vector.broadcast %55 : vector<1x8x1xf32> to vector<1x8x8xf32>
    %57 = arith.subf %53, %56 : vector<1x8x8xf32>
    %58 = math.exp %57 : vector<1x8x8xf32>
    %cst_25 = arith.constant dense<0.000000e+00> : vector<1x8xf32>
    %59 = vector.multi_reduction <add>, %58, %cst_25 [2] : vector<1x8x8xf32> to vector<1x8xf32>
    %60 = vector.shape_cast %59 : vector<1x8xf32> to vector<1x8x1xf32>
    %61 = tpu.reciprocal %60 {approx = true} : vector<1x8x1xf32> -> vector<1x8x1xf32>
    %62 = vector.broadcast %61 : vector<1x8x1xf32> to vector<1x8x8xf32>
    %63 = arith.mulf %58, %62 : vector<1x8x8xf32>
    %64 = arith.truncf %63 : vector<1x8x8xf32> to vector<1x8x8xbf16>
    "tpu.trace_start"() <{level = 10 : i32, message = "bqk,bkv->bqv"}> : () -> ()
    %cst_26 = arith.constant dense<0.000000e+00> : vector<1x8x8xf32>
    %65 = tpu.matmul %64, %51, %cst_26 {dimension_numbers = #tpu.dot_dimension_numbers<[2], [1], [1], [2], [0, 0, 0, 1, 1, 2], [0], [0]>} : vector<1x8x8xbf16>, vector<1x8x8xbf16>, vector<1x8x8xf32> -> vector<1x8x8xf32>
    "tpu.trace_stop"() : () -> ()
    %66 = arith.truncf %65 : vector<1x8x8xf32> to vector<1x8x8xbf16>
    %67 = vector.extract_strided_slice %26 {offsets = [0, 0, 16], sizes = [1, 8, 8], strides = [1, 1, 1]} : vector<1x8x32xbf16> to vector<1x8x8xbf16>
    %68 = vector.extract_strided_slice %28 {offsets = [0, 0, 16], sizes = [1, 8, 8], strides = [1, 1, 1]} : vector<1x8x32xbf16> to vector<1x8x8xbf16>
    %69 = vector.extract_strided_slice %30 {offsets = [0, 0, 16], sizes = [1, 8, 8], strides = [1, 1, 1]} : vector<1x8x32xbf16> to vector<1x8x8xbf16>
    "tpu.trace_start"() <{level = 10 : i32, message = "bqd,bkd->bqk"}> : () -> ()
    %cst_27 = arith.constant dense<0.000000e+00> : vector<1x8x8xf32>
    %70 = tpu.matmul %67, %68, %cst_27 {dimension_numbers = #tpu.dot_dimension_numbers<[2], [2], [1], [1], [0, 0, 0, 1, 1, 1], [0], [0]>} : vector<1x8x8xbf16>, vector<1x8x8xbf16>, vector<1x8x8xf32> -> vector<1x8x8xf32>
    "tpu.trace_stop"() : () -> ()
    %71 = arith.addf %70, %9 : vector<1x8x8xf32>
    %cst_28 = arith.constant dense<0xFF800000> : vector<1x8xf32>
    %72 = vector.multi_reduction <maximumf>, %71, %cst_28 [2] : vector<1x8x8xf32> to vector<1x8xf32>
    %73 = vector.shape_cast %72 : vector<1x8xf32> to vector<1x8x1xf32>
    %74 = vector.broadcast %73 : vector<1x8x1xf32> to vector<1x8x8xf32>
    %75 = arith.subf %71, %74 : vector<1x8x8xf32>
    %76 = math.exp %75 : vector<1x8x8xf32>
    %cst_29 = arith.constant dense<0.000000e+00> : vector<1x8xf32>
    %77 = vector.multi_reduction <add>, %76, %cst_29 [2] : vector<1x8x8xf32> to vector<1x8xf32>
    %78 = vector.shape_cast %77 : vector<1x8xf32> to vector<1x8x1xf32>
    %79 = tpu.reciprocal %78 {approx = true} : vector<1x8x1xf32> -> vector<1x8x1xf32>
    %80 = vector.broadcast %79 : vector<1x8x1xf32> to vector<1x8x8xf32>
    %81 = arith.mulf %76, %80 : vector<1x8x8xf32>
    %82 = arith.truncf %81 : vector<1x8x8xf32> to vector<1x8x8xbf16>
    "tpu.trace_start"() <{level = 10 : i32, message = "bqk,bkv->bqv"}> : () -> ()
    %cst_30 = arith.constant dense<0.000000e+00> : vector<1x8x8xf32>
    %83 = tpu.matmul %82, %69, %cst_30 {dimension_numbers = #tpu.dot_dimension_numbers<[2], [1], [1], [2], [0, 0, 0, 1, 1, 2], [0], [0]>} : vector<1x8x8xbf16>, vector<1x8x8xbf16>, vector<1x8x8xf32> -> vector<1x8x8xf32>
    "tpu.trace_stop"() : () -> ()
    %84 = arith.truncf %83 : vector<1x8x8xf32> to vector<1x8x8xbf16>
    %85 = vector.extract_strided_slice %26 {offsets = [0, 0, 24], sizes = [1, 8, 8], strides = [1, 1, 1]} : vector<1x8x32xbf16> to vector<1x8x8xbf16>
    %86 = vector.extract_strided_slice %28 {offsets = [0, 0, 24], sizes = [1, 8, 8], strides = [1, 1, 1]} : vector<1x8x32xbf16> to vector<1x8x8xbf16>
    %87 = vector.extract_strided_slice %30 {offsets = [0, 0, 24], sizes = [1, 8, 8], strides = [1, 1, 1]} : vector<1x8x32xbf16> to vector<1x8x8xbf16>
    "tpu.trace_start"() <{level = 10 : i32, message = "bqd,bkd->bqk"}> : () -> ()
    %cst_31 = arith.constant dense<0.000000e+00> : vector<1x8x8xf32>
    %88 = tpu.matmul %85, %86, %cst_31 {dimension_numbers = #tpu.dot_dimension_numbers<[2], [2], [1], [1], [0, 0, 0, 1, 1, 1], [0], [0]>} : vector<1x8x8xbf16>, vector<1x8x8xbf16>, vector<1x8x8xf32> -> vector<1x8x8xf32>
    "tpu.trace_stop"() : () -> ()
    %89 = arith.addf %88, %9 : vector<1x8x8xf32>
    %cst_32 = arith.constant dense<0xFF800000> : vector<1x8xf32>
    %90 = vector.multi_reduction <maximumf>, %89, %cst_32 [2] : vector<1x8x8xf32> to vector<1x8xf32>
    %91 = vector.shape_cast %90 : vector<1x8xf32> to vector<1x8x1xf32>
    %92 = vector.broadcast %91 : vector<1x8x1xf32> to vector<1x8x8xf32>
    %93 = arith.subf %89, %92 : vector<1x8x8xf32>
    %94 = math.exp %93 : vector<1x8x8xf32>
    %cst_33 = arith.constant dense<0.000000e+00> : vector<1x8xf32>
    %95 = vector.multi_reduction <add>, %94, %cst_33 [2] : vector<1x8x8xf32> to vector<1x8xf32>
    %96 = vector.shape_cast %95 : vector<1x8xf32> to vector<1x8x1xf32>
    %97 = tpu.reciprocal %96 {approx = true} : vector<1x8x1xf32> -> vector<1x8x1xf32>
    %98 = vector.broadcast %97 : vector<1x8x1xf32> to vector<1x8x8xf32>
    %99 = arith.mulf %94, %98 : vector<1x8x8xf32>
    %100 = arith.truncf %99 : vector<1x8x8xf32> to vector<1x8x8xbf16>
    "tpu.trace_start"() <{level = 10 : i32, message = "bqk,bkv->bqv"}> : () -> ()
    %cst_34 = arith.constant dense<0.000000e+00> : vector<1x8x8xf32>
    %101 = tpu.matmul %100, %87, %cst_34 {dimension_numbers = #tpu.dot_dimension_numbers<[2], [1], [1], [2], [0, 0, 0, 1, 1, 2], [0], [0]>} : vector<1x8x8xbf16>, vector<1x8x8xbf16>, vector<1x8x8xf32> -> vector<1x8x8xf32>
    "tpu.trace_stop"() : () -> ()
    %102 = arith.truncf %101 : vector<1x8x8xf32> to vector<1x8x8xbf16>
    %103 = tpu.concatenate %48, %66, %84, %102 in 2 : vector<1x8x8xbf16>, vector<1x8x8xbf16>, vector<1x8x8xbf16>, vector<1x8x8xbf16> -> vector<1x8x32xbf16>
    %104 = vector.shape_cast %103 : vector<1x8x32xbf16> to vector<8x32xbf16>
    %c0_35 = arith.constant 0 : index
    %c0_36 = arith.constant 0 : index
    %105 = vector.load %arg7[%c0_35, %c0_36] : memref<32x32xbf16, #tpu.memory_space<vmem>>, vector<32x32xbf16>
    %cst_37 = arith.constant dense<0.000000e+00> : vector<8x32xf32>
    %106 = tpu.matmul %104, %105, %cst_37 {dimension_numbers = #tpu.dot_dimension_numbers<[1], [0], [0], [1], [0, 0, 1, 1], [], []>} : vector<8x32xbf16>, vector<32x32xbf16>, vector<8x32xf32> -> vector<8x32xf32>
    %c0_38 = arith.constant 0 : index
    %c0_39 = arith.constant 0 : index
    %107 = vector.load %arg8[%c0_38, %c0_39] : memref<1x32xf32, #tpu.memory_space<vmem>>, vector<1x32xf32>
    %108 = vector.broadcast %107 : vector<1x32xf32> to vector<8x32xf32>
    %109 = arith.addf %106, %108 : vector<8x32xf32>
    %110 = arith.addf %109, %1 : vector<8x32xf32>
    %cst_40 = arith.constant dense<0.000000e+00> : vector<8xf32>
    %111 = vector.multi_reduction <add>, %110, %cst_40 [1] : vector<8x32xf32> to vector<8xf32>
    %112 = vector.shape_cast %111 : vector<8xf32> to vector<8x1xf32>
    %cst_41 = arith.constant 3.200000e+01 : f32
    %113 = vector.broadcast %cst_41 : f32 to vector<8x1xf32>
    %114 = arith.divf %112, %113 : vector<8x1xf32>
    %115 = vector.broadcast %114 : vector<8x1xf32> to vector<8x32xf32>
    %116 = arith.subf %110, %115 : vector<8x32xf32>
    %117 = arith.mulf %116, %116 : vector<8x32xf32>
    %cst_42 = arith.constant dense<0.000000e+00> : vector<8xf32>
    %118 = vector.multi_reduction <add>, %117, %cst_42 [1] : vector<8x32xf32> to vector<8xf32>
    %119 = vector.shape_cast %118 : vector<8xf32> to vector<8x1xf32>
    %cst_43 = arith.constant 3.200000e+01 : f32
    %120 = vector.broadcast %cst_43 : f32 to vector<8x1xf32>
    %121 = arith.divf %119, %120 : vector<8x1xf32>
    %122 = vector.broadcast %114 : vector<8x1xf32> to vector<8x32xf32>
    %123 = arith.subf %110, %122 : vector<8x32xf32>
    %cst_44 = arith.constant 9.99999974E-6 : f32
    %124 = vector.broadcast %cst_44 : f32 to vector<8x1xf32>
    %125 = arith.addf %121, %124 : vector<8x1xf32>
    %126 = math.rsqrt %125 : vector<8x1xf32>
    %127 = vector.broadcast %126 : vector<8x1xf32> to vector<8x32xf32>
    %128 = arith.mulf %123, %127 : vector<8x32xf32>
    %c0_45 = arith.constant 0 : index
    %c0_46 = arith.constant 0 : index
    %129 = vector.load %arg9[%c0_45, %c0_46] : memref<1x32xf32, #tpu.memory_space<vmem>>, vector<1x32xf32>
    %130 = vector.broadcast %129 : vector<1x32xf32> to vector<8x32xf32>
    %131 = arith.mulf %128, %130 : vector<8x32xf32>
    %c0_47 = arith.constant 0 : index
    %c0_48 = arith.constant 0 : index
    %132 = vector.load %arg10[%c0_47, %c0_48] : memref<1x32xf32, #tpu.memory_space<vmem>>, vector<1x32xf32>
    %133 = vector.broadcast %132 : vector<1x32xf32> to vector<8x32xf32>
    %134 = arith.addf %131, %133 : vector<8x32xf32>
    %135 = arith.truncf %134 : vector<8x32xf32> to vector<8x32xbf16>
    %c0_49 = arith.constant 0 : index
    %c0_50 = arith.constant 0 : index
    %136 = vector.load %arg11[%c0_49, %c0_50] : memref<32x32xbf16, #tpu.memory_space<vmem>>, vector<32x32xbf16>
    %cst_51 = arith.constant dense<0.000000e+00> : vector<8x32xf32>
    %137 = tpu.matmul %135, %136, %cst_51 {dimension_numbers = #tpu.dot_dimension_numbers<[1], [0], [0], [1], [0, 0, 1, 1], [], []>} : vector<8x32xbf16>, vector<32x32xbf16>, vector<8x32xf32> -> vector<8x32xf32>
    %c0_52 = arith.constant 0 : index
    %c0_53 = arith.constant 0 : index
    %138 = vector.load %arg12[%c0_52, %c0_53] : memref<1x32xf32, #tpu.memory_space<vmem>>, vector<1x32xf32>
    %139 = vector.broadcast %138 : vector<1x32xf32> to vector<8x32xf32>
    %140 = arith.addf %137, %139 : vector<8x32xf32>
    %141 = arith.truncf %3 : vector<8x32xf32> to vector<8x32xbf16>
    %c0_54 = arith.constant 0 : index
    %c0_55 = arith.constant 0 : index
    %142 = vector.load %arg13[%c0_54, %c0_55] : memref<32x64xbf16, #tpu.memory_space<vmem>>, vector<32x64xbf16>
    %cst_56 = arith.constant dense<0.000000e+00> : vector<8x64xf32>
    %143 = tpu.matmul %141, %142, %cst_56 {dimension_numbers = #tpu.dot_dimension_numbers<[1], [0], [0], [1], [0, 0, 1, 1], [], []>} : vector<8x32xbf16>, vector<32x64xbf16>, vector<8x64xf32> -> vector<8x64xf32>
    %c0_57 = arith.constant 0 : index
    %c0_58 = arith.constant 0 : index
    %144 = vector.load %arg14[%c0_57, %c0_58] : memref<1x64xf32, #tpu.memory_space<vmem>>, vector<1x64xf32>
    %145 = vector.broadcast %144 : vector<1x64xf32> to vector<8x64xf32>
    %146 = arith.addf %143, %145 : vector<8x64xf32>
    %147 = vector.extract_strided_slice %146 {offsets = [0, 0], sizes = [8, 32], strides = [1, 1]} : vector<8x64xf32> to vector<8x32xf32>
    %148 = vector.extract_strided_slice %146 {offsets = [0, 32], sizes = [8, 32], strides = [1, 1]} : vector<8x64xf32> to vector<8x32xf32>
    %149 = arith.truncf %140 : vector<8x32xf32> to vector<8x32xbf16>
    %150 = vector.shape_cast %149 : vector<8x32xbf16> to vector<1x8x32xbf16>
    %151 = arith.truncf %147 : vector<8x32xf32> to vector<8x32xbf16>
    %152 = vector.shape_cast %151 : vector<8x32xbf16> to vector<1x8x32xbf16>
    %153 = arith.truncf %148 : vector<8x32xf32> to vector<8x32xbf16>
    %154 = vector.shape_cast %153 : vector<8x32xbf16> to vector<1x8x32xbf16>
    %155 = vector.extract_strided_slice %150 {offsets = [0, 0, 0], sizes = [1, 8, 8], strides = [1, 1, 1]} : vector<1x8x32xbf16> to vector<1x8x8xbf16>
    %156 = vector.extract_strided_slice %152 {offsets = [0, 0, 0], sizes = [1, 8, 8], strides = [1, 1, 1]} : vector<1x8x32xbf16> to vector<1x8x8xbf16>
    %157 = vector.extract_strided_slice %154 {offsets = [0, 0, 0], sizes = [1, 8, 8], strides = [1, 1, 1]} : vector<1x8x32xbf16> to vector<1x8x8xbf16>
    "tpu.trace_start"() <{level = 10 : i32, message = "bqd,bkd->bqk"}> : () -> ()
    %cst_59 = arith.constant dense<0.000000e+00> : vector<1x8x8xf32>
    %158 = tpu.matmul %155, %156, %cst_59 {dimension_numbers = #tpu.dot_dimension_numbers<[2], [2], [1], [1], [0, 0, 0, 1, 1, 1], [0], [0]>} : vector<1x8x8xbf16>, vector<1x8x8xbf16>, vector<1x8x8xf32> -> vector<1x8x8xf32>
    "tpu.trace_stop"() : () -> ()
    %159 = arith.addf %158, %15 : vector<1x8x8xf32>
    %cst_60 = arith.constant dense<0xFF800000> : vector<1x8xf32>
    %160 = vector.multi_reduction <maximumf>, %159, %cst_60 [2] : vector<1x8x8xf32> to vector<1x8xf32>
    %161 = vector.shape_cast %160 : vector<1x8xf32> to vector<1x8x1xf32>
    %162 = vector.broadcast %161 : vector<1x8x1xf32> to vector<1x8x8xf32>
    %163 = arith.subf %159, %162 : vector<1x8x8xf32>
    %164 = math.exp %163 : vector<1x8x8xf32>
    %cst_61 = arith.constant dense<0.000000e+00> : vector<1x8xf32>
    %165 = vector.multi_reduction <add>, %164, %cst_61 [2] : vector<1x8x8xf32> to vector<1x8xf32>
    %166 = vector.shape_cast %165 : vector<1x8xf32> to vector<1x8x1xf32>
    %167 = tpu.reciprocal %166 {approx = true} : vector<1x8x1xf32> -> vector<1x8x1xf32>
    %168 = vector.broadcast %167 : vector<1x8x1xf32> to vector<1x8x8xf32>
    %169 = arith.mulf %164, %168 : vector<1x8x8xf32>
    %170 = arith.truncf %169 : vector<1x8x8xf32> to vector<1x8x8xbf16>
    "tpu.trace_start"() <{level = 10 : i32, message = "bqk,bkv->bqv"}> : () -> ()
    %cst_62 = arith.constant dense<0.000000e+00> : vector<1x8x8xf32>
    %171 = tpu.matmul %170, %157, %cst_62 {dimension_numbers = #tpu.dot_dimension_numbers<[2], [1], [1], [2], [0, 0, 0, 1, 1, 2], [0], [0]>} : vector<1x8x8xbf16>, vector<1x8x8xbf16>, vector<1x8x8xf32> -> vector<1x8x8xf32>
    "tpu.trace_stop"() : () -> ()
    %172 = arith.truncf %171 : vector<1x8x8xf32> to vector<1x8x8xbf16>
    %173 = vector.extract_strided_slice %150 {offsets = [0, 0, 8], sizes = [1, 8, 8], strides = [1, 1, 1]} : vector<1x8x32xbf16> to vector<1x8x8xbf16>
    %174 = vector.extract_strided_slice %152 {offsets = [0, 0, 8], sizes = [1, 8, 8], strides = [1, 1, 1]} : vector<1x8x32xbf16> to vector<1x8x8xbf16>
    %175 = vector.extract_strided_slice %154 {offsets = [0, 0, 8], sizes = [1, 8, 8], strides = [1, 1, 1]} : vector<1x8x32xbf16> to vector<1x8x8xbf16>
    "tpu.trace_start"() <{level = 10 : i32, message = "bqd,bkd->bqk"}> : () -> ()
    %cst_63 = arith.constant dense<0.000000e+00> : vector<1x8x8xf32>
    %176 = tpu.matmul %173, %174, %cst_63 {dimension_numbers = #tpu.dot_dimension_numbers<[2], [2], [1], [1], [0, 0, 0, 1, 1, 1], [0], [0]>} : vector<1x8x8xbf16>, vector<1x8x8xbf16>, vector<1x8x8xf32> -> vector<1x8x8xf32>
    "tpu.trace_stop"() : () -> ()
    %177 = arith.addf %176, %15 : vector<1x8x8xf32>
    %cst_64 = arith.constant dense<0xFF800000> : vector<1x8xf32>
    %178 = vector.multi_reduction <maximumf>, %177, %cst_64 [2] : vector<1x8x8xf32> to vector<1x8xf32>
    %179 = vector.shape_cast %178 : vector<1x8xf32> to vector<1x8x1xf32>
    %180 = vector.broadcast %179 : vector<1x8x1xf32> to vector<1x8x8xf32>
    %181 = arith.subf %177, %180 : vector<1x8x8xf32>
    %182 = math.exp %181 : vector<1x8x8xf32>
    %cst_65 = arith.constant dense<0.000000e+00> : vector<1x8xf32>
    %183 = vector.multi_reduction <add>, %182, %cst_65 [2] : vector<1x8x8xf32> to vector<1x8xf32>
    %184 = vector.shape_cast %183 : vector<1x8xf32> to vector<1x8x1xf32>
    %185 = tpu.reciprocal %184 {approx = true} : vector<1x8x1xf32> -> vector<1x8x1xf32>
    %186 = vector.broadcast %185 : vector<1x8x1xf32> to vector<1x8x8xf32>
    %187 = arith.mulf %182, %186 : vector<1x8x8xf32>
    %188 = arith.truncf %187 : vector<1x8x8xf32> to vector<1x8x8xbf16>
    "tpu.trace_start"() <{level = 10 : i32, message = "bqk,bkv->bqv"}> : () -> ()
    %cst_66 = arith.constant dense<0.000000e+00> : vector<1x8x8xf32>
    %189 = tpu.matmul %188, %175, %cst_66 {dimension_numbers = #tpu.dot_dimension_numbers<[2], [1], [1], [2], [0, 0, 0, 1, 1, 2], [0], [0]>} : vector<1x8x8xbf16>, vector<1x8x8xbf16>, vector<1x8x8xf32> -> vector<1x8x8xf32>
    "tpu.trace_stop"() : () -> ()
    %190 = arith.truncf %189 : vector<1x8x8xf32> to vector<1x8x8xbf16>
    %191 = vector.extract_strided_slice %150 {offsets = [0, 0, 16], sizes = [1, 8, 8], strides = [1, 1, 1]} : vector<1x8x32xbf16> to vector<1x8x8xbf16>
    %192 = vector.extract_strided_slice %152 {offsets = [0, 0, 16], sizes = [1, 8, 8], strides = [1, 1, 1]} : vector<1x8x32xbf16> to vector<1x8x8xbf16>
    %193 = vector.extract_strided_slice %154 {offsets = [0, 0, 16], sizes = [1, 8, 8], strides = [1, 1, 1]} : vector<1x8x32xbf16> to vector<1x8x8xbf16>
    "tpu.trace_start"() <{level = 10 : i32, message = "bqd,bkd->bqk"}> : () -> ()
    %cst_67 = arith.constant dense<0.000000e+00> : vector<1x8x8xf32>
    %194 = tpu.matmul %191, %192, %cst_67 {dimension_numbers = #tpu.dot_dimension_numbers<[2], [2], [1], [1], [0, 0, 0, 1, 1, 1], [0], [0]>} : vector<1x8x8xbf16>, vector<1x8x8xbf16>, vector<1x8x8xf32> -> vector<1x8x8xf32>
    "tpu.trace_stop"() : () -> ()
    %195 = arith.addf %194, %15 : vector<1x8x8xf32>
    %cst_68 = arith.constant dense<0xFF800000> : vector<1x8xf32>
    %196 = vector.multi_reduction <maximumf>, %195, %cst_68 [2] : vector<1x8x8xf32> to vector<1x8xf32>
    %197 = vector.shape_cast %196 : vector<1x8xf32> to vector<1x8x1xf32>
    %198 = vector.broadcast %197 : vector<1x8x1xf32> to vector<1x8x8xf32>
    %199 = arith.subf %195, %198 : vector<1x8x8xf32>
    %200 = math.exp %199 : vector<1x8x8xf32>
    %cst_69 = arith.constant dense<0.000000e+00> : vector<1x8xf32>
    %201 = vector.multi_reduction <add>, %200, %cst_69 [2] : vector<1x8x8xf32> to vector<1x8xf32>
    %202 = vector.shape_cast %201 : vector<1x8xf32> to vector<1x8x1xf32>
    %203 = tpu.reciprocal %202 {approx = true} : vector<1x8x1xf32> -> vector<1x8x1xf32>
    %204 = vector.broadcast %203 : vector<1x8x1xf32> to vector<1x8x8xf32>
    %205 = arith.mulf %200, %204 : vector<1x8x8xf32>
    %206 = arith.truncf %205 : vector<1x8x8xf32> to vector<1x8x8xbf16>
    "tpu.trace_start"() <{level = 10 : i32, message = "bqk,bkv->bqv"}> : () -> ()
    %cst_70 = arith.constant dense<0.000000e+00> : vector<1x8x8xf32>
    %207 = tpu.matmul %206, %193, %cst_70 {dimension_numbers = #tpu.dot_dimension_numbers<[2], [1], [1], [2], [0, 0, 0, 1, 1, 2], [0], [0]>} : vector<1x8x8xbf16>, vector<1x8x8xbf16>, vector<1x8x8xf32> -> vector<1x8x8xf32>
    "tpu.trace_stop"() : () -> ()
    %208 = arith.truncf %207 : vector<1x8x8xf32> to vector<1x8x8xbf16>
    %209 = vector.extract_strided_slice %150 {offsets = [0, 0, 24], sizes = [1, 8, 8], strides = [1, 1, 1]} : vector<1x8x32xbf16> to vector<1x8x8xbf16>
    %210 = vector.extract_strided_slice %152 {offsets = [0, 0, 24], sizes = [1, 8, 8], strides = [1, 1, 1]} : vector<1x8x32xbf16> to vector<1x8x8xbf16>
    %211 = vector.extract_strided_slice %154 {offsets = [0, 0, 24], sizes = [1, 8, 8], strides = [1, 1, 1]} : vector<1x8x32xbf16> to vector<1x8x8xbf16>
    "tpu.trace_start"() <{level = 10 : i32, message = "bqd,bkd->bqk"}> : () -> ()
    %cst_71 = arith.constant dense<0.000000e+00> : vector<1x8x8xf32>
    %212 = tpu.matmul %209, %210, %cst_71 {dimension_numbers = #tpu.dot_dimension_numbers<[2], [2], [1], [1], [0, 0, 0, 1, 1, 1], [0], [0]>} : vector<1x8x8xbf16>, vector<1x8x8xbf16>, vector<1x8x8xf32> -> vector<1x8x8xf32>
    "tpu.trace_stop"() : () -> ()
    %213 = arith.addf %212, %15 : vector<1x8x8xf32>
    %cst_72 = arith.constant dense<0xFF800000> : vector<1x8xf32>
    %214 = vector.multi_reduction <maximumf>, %213, %cst_72 [2] : vector<1x8x8xf32> to vector<1x8xf32>
    %215 = vector.shape_cast %214 : vector<1x8xf32> to vector<1x8x1xf32>
    %216 = vector.broadcast %215 : vector<1x8x1xf32> to vector<1x8x8xf32>
    %217 = arith.subf %213, %216 : vector<1x8x8xf32>
    %218 = math.exp %217 : vector<1x8x8xf32>
    %cst_73 = arith.constant dense<0.000000e+00> : vector<1x8xf32>
    %219 = vector.multi_reduction <add>, %218, %cst_73 [2] : vector<1x8x8xf32> to vector<1x8xf32>
    %220 = vector.shape_cast %219 : vector<1x8xf32> to vector<1x8x1xf32>
    %221 = tpu.reciprocal %220 {approx = true} : vector<1x8x1xf32> -> vector<1x8x1xf32>
    %222 = vector.broadcast %221 : vector<1x8x1xf32> to vector<1x8x8xf32>
    %223 = arith.mulf %218, %222 : vector<1x8x8xf32>
    %224 = arith.truncf %223 : vector<1x8x8xf32> to vector<1x8x8xbf16>
    "tpu.trace_start"() <{level = 10 : i32, message = "bqk,bkv->bqv"}> : () -> ()
    %cst_74 = arith.constant dense<0.000000e+00> : vector<1x8x8xf32>
    %225 = tpu.matmul %224, %211, %cst_74 {dimension_numbers = #tpu.dot_dimension_numbers<[2], [1], [1], [2], [0, 0, 0, 1, 1, 2], [0], [0]>} : vector<1x8x8xbf16>, vector<1x8x8xbf16>, vector<1x8x8xf32> -> vector<1x8x8xf32>
    "tpu.trace_stop"() : () -> ()
    %226 = arith.truncf %225 : vector<1x8x8xf32> to vector<1x8x8xbf16>
    %227 = tpu.concatenate %172, %190, %208, %226 in 2 : vector<1x8x8xbf16>, vector<1x8x8xbf16>, vector<1x8x8xbf16>, vector<1x8x8xbf16> -> vector<1x8x32xbf16>
    %228 = vector.shape_cast %227 : vector<1x8x32xbf16> to vector<8x32xbf16>
    %c0_75 = arith.constant 0 : index
    %c0_76 = arith.constant 0 : index
    %229 = vector.load %arg15[%c0_75, %c0_76] : memref<32x32xbf16, #tpu.memory_space<vmem>>, vector<32x32xbf16>
    %cst_77 = arith.constant dense<0.000000e+00> : vector<8x32xf32>
    %230 = tpu.matmul %228, %229, %cst_77 {dimension_numbers = #tpu.dot_dimension_numbers<[1], [0], [0], [1], [0, 0, 1, 1], [], []>} : vector<8x32xbf16>, vector<32x32xbf16>, vector<8x32xf32> -> vector<8x32xf32>
    %c0_78 = arith.constant 0 : index
    %c0_79 = arith.constant 0 : index
    %231 = vector.load %arg16[%c0_78, %c0_79] : memref<1x32xf32, #tpu.memory_space<vmem>>, vector<1x32xf32>
    %232 = vector.broadcast %231 : vector<1x32xf32> to vector<8x32xf32>
    %233 = arith.addf %230, %232 : vector<8x32xf32>
    %234 = arith.addf %233, %134 : vector<8x32xf32>
    %cst_80 = arith.constant dense<0.000000e+00> : vector<8xf32>
    %235 = vector.multi_reduction <add>, %234, %cst_80 [1] : vector<8x32xf32> to vector<8xf32>
    %236 = vector.shape_cast %235 : vector<8xf32> to vector<8x1xf32>
    %cst_81 = arith.constant 3.200000e+01 : f32
    %237 = vector.broadcast %cst_81 : f32 to vector<8x1xf32>
    %238 = arith.divf %236, %237 : vector<8x1xf32>
    %239 = vector.broadcast %238 : vector<8x1xf32> to vector<8x32xf32>
    %240 = arith.subf %234, %239 : vector<8x32xf32>
    %241 = arith.mulf %240, %240 : vector<8x32xf32>
    %cst_82 = arith.constant dense<0.000000e+00> : vector<8xf32>
    %242 = vector.multi_reduction <add>, %241, %cst_82 [1] : vector<8x32xf32> to vector<8xf32>
    %243 = vector.shape_cast %242 : vector<8xf32> to vector<8x1xf32>
    %cst_83 = arith.constant 3.200000e+01 : f32
    %244 = vector.broadcast %cst_83 : f32 to vector<8x1xf32>
    %245 = arith.divf %243, %244 : vector<8x1xf32>
    %246 = vector.broadcast %238 : vector<8x1xf32> to vector<8x32xf32>
    %247 = arith.subf %234, %246 : vector<8x32xf32>
    %cst_84 = arith.constant 9.99999974E-6 : f32
    %248 = vector.broadcast %cst_84 : f32 to vector<8x1xf32>
    %249 = arith.addf %245, %248 : vector<8x1xf32>
    %250 = math.rsqrt %249 : vector<8x1xf32>
    %251 = vector.broadcast %250 : vector<8x1xf32> to vector<8x32xf32>
    %252 = arith.mulf %247, %251 : vector<8x32xf32>
    %c0_85 = arith.constant 0 : index
    %c0_86 = arith.constant 0 : index
    %253 = vector.load %arg17[%c0_85, %c0_86] : memref<1x32xf32, #tpu.memory_space<vmem>>, vector<1x32xf32>
    %254 = vector.broadcast %253 : vector<1x32xf32> to vector<8x32xf32>
    %255 = arith.mulf %252, %254 : vector<8x32xf32>
    %c0_87 = arith.constant 0 : index
    %c0_88 = arith.constant 0 : index
    %256 = vector.load %arg18[%c0_87, %c0_88] : memref<1x32xf32, #tpu.memory_space<vmem>>, vector<1x32xf32>
    %257 = vector.broadcast %256 : vector<1x32xf32> to vector<8x32xf32>
    %258 = arith.addf %255, %257 : vector<8x32xf32>
    %259 = arith.truncf %258 : vector<8x32xf32> to vector<8x32xbf16>
    %c0_89 = arith.constant 0 : index
    %c0_90 = arith.constant 0 : index
    %260 = vector.load %arg19[%c0_89, %c0_90] : memref<32x64xbf16, #tpu.memory_space<vmem>>, vector<32x64xbf16>
    %cst_91 = arith.constant dense<0.000000e+00> : vector<8x64xf32>
    %261 = tpu.matmul %259, %260, %cst_91 {dimension_numbers = #tpu.dot_dimension_numbers<[1], [0], [0], [1], [0, 0, 1, 1], [], []>} : vector<8x32xbf16>, vector<32x64xbf16>, vector<8x64xf32> -> vector<8x64xf32>
    %c0_92 = arith.constant 0 : index
    %c0_93 = arith.constant 0 : index
    %262 = vector.load %arg20[%c0_92, %c0_93] : memref<1x64xf32, #tpu.memory_space<vmem>>, vector<1x64xf32>
    %263 = vector.broadcast %262 : vector<1x64xf32> to vector<8x64xf32>
    %264 = arith.addf %261, %263 : vector<8x64xf32>
    %cst_94 = arith.constant 0.000000e+00 : f32
    %265 = vector.broadcast %cst_94 : f32 to vector<8x64xf32>
    %266 = arith.maximumf %264, %265 : vector<8x64xf32>
    %267 = arith.truncf %266 : vector<8x64xf32> to vector<8x64xbf16>
    %c0_95 = arith.constant 0 : index
    %c0_96 = arith.constant 0 : index
    %268 = vector.load %arg21[%c0_95, %c0_96] : memref<64x32xbf16, #tpu.memory_space<vmem>>, vector<64x32xbf16>
    %cst_97 = arith.constant dense<0.000000e+00> : vector<8x32xf32>
    %269 = tpu.matmul %267, %268, %cst_97 {dimension_numbers = #tpu.dot_dimension_numbers<[1], [0], [0], [1], [0, 0, 1, 1], [], []>} : vector<8x64xbf16>, vector<64x32xbf16>, vector<8x32xf32> -> vector<8x32xf32>
    %c0_98 = arith.constant 0 : index
    %c0_99 = arith.constant 0 : index
    %270 = vector.load %arg22[%c0_98, %c0_99] : memref<1x32xf32, #tpu.memory_space<vmem>>, vector<1x32xf32>
    %271 = vector.broadcast %270 : vector<1x32xf32> to vector<8x32xf32>
    %272 = arith.addf %269, %271 : vector<8x32xf32>
    %273 = arith.addf %272, %258 : vector<8x32xf32>
    %cst_100 = arith.constant dense<0.000000e+00> : vector<8xf32>
    %274 = vector.multi_reduction <add>, %273, %cst_100 [1] : vector<8x32xf32> to vector<8xf32>
    %275 = vector.shape_cast %274 : vector<8xf32> to vector<8x1xf32>
    %cst_101 = arith.constant 3.200000e+01 : f32
    %276 = vector.broadcast %cst_101 : f32 to vector<8x1xf32>
    %277 = arith.divf %275, %276 : vector<8x1xf32>
    %278 = vector.broadcast %277 : vector<8x1xf32> to vector<8x32xf32>
    %279 = arith.subf %273, %278 : vector<8x32xf32>
    %280 = arith.mulf %279, %279 : vector<8x32xf32>
    %cst_102 = arith.constant dense<0.000000e+00> : vector<8xf32>
    %281 = vector.multi_reduction <add>, %280, %cst_102 [1] : vector<8x32xf32> to vector<8xf32>
    %282 = vector.shape_cast %281 : vector<8xf32> to vector<8x1xf32>
    %cst_103 = arith.constant 3.200000e+01 : f32
    %283 = vector.broadcast %cst_103 : f32 to vector<8x1xf32>
    %284 = arith.divf %282, %283 : vector<8x1xf32>
    %285 = vector.broadcast %277 : vector<8x1xf32> to vector<8x32xf32>
    %286 = arith.subf %273, %285 : vector<8x32xf32>
    %cst_104 = arith.constant 9.99999974E-6 : f32
    %287 = vector.broadcast %cst_104 : f32 to vector<8x1xf32>
    %288 = arith.addf %284, %287 : vector<8x1xf32>
    %289 = math.rsqrt %288 : vector<8x1xf32>
    %290 = vector.broadcast %289 : vector<8x1xf32> to vector<8x32xf32>
    %291 = arith.mulf %286, %290 : vector<8x32xf32>
    %c0_105 = arith.constant 0 : index
    %c0_106 = arith.constant 0 : index
    %292 = vector.load %arg23[%c0_105, %c0_106] : memref<1x32xf32, #tpu.memory_space<vmem>>, vector<1x32xf32>
    %293 = vector.broadcast %292 : vector<1x32xf32> to vector<8x32xf32>
    %294 = arith.mulf %291, %293 : vector<8x32xf32>
    %c0_107 = arith.constant 0 : index
    %c0_108 = arith.constant 0 : index
    %295 = vector.load %arg24[%c0_107, %c0_108] : memref<1x32xf32, #tpu.memory_space<vmem>>, vector<1x32xf32>
    %296 = vector.broadcast %295 : vector<1x32xf32> to vector<8x32xf32>
    %297 = arith.addf %294, %296 : vector<8x32xf32>
    %298 = vector.shape_cast %297 : vector<8x32xf32> to vector<1x8x32xf32>
    %c0_109 = arith.constant 0 : index
    %c0_110 = arith.constant 0 : index
    %c0_111 = arith.constant 0 : index
    %299 = vector.load %arg25[%c0_109, %c0_110, %c0_111] : memref<1x8x32xf32, #tpu.memory_space<vmem>>, vector<1x8x32xf32>
    tpu.vector_store %arg25[%c0_109, %c0_110, %c0_111], %298 {strides = array<i32>} : memref<1x8x32xf32, #tpu.memory_space<vmem>>, vector<1x8x32xf32>,
    return
  }
  func.func @transform_0(%arg0: i32) -> (i32, i32, i32) {
    %c0_i32 = arith.constant 0 : i32
    %c0_i32_0 = arith.constant 0 : i32
    %c0_i32_1 = arith.constant 0 : i32
    return %arg0, %c0_i32, %c0_i32_0 : i32, i32, i32
  }
  func.func @transform_1(%arg0: i32) -> (i32, i32, i32) {
    %c0_i32 = arith.constant 0 : i32
    %c0_i32_0 = arith.constant 0 : i32
    %c0_i32_1 = arith.constant 0 : i32
    return %arg0, %c0_i32, %c0_i32_0 : i32, i32, i32
  }
  func.func @transform_2(%arg0: i32) -> (i32, i32, i32) {
    %c0_i32 = arith.constant 0 : i32
    %c0_i32_0 = arith.constant 0 : i32
    %c0_i32_1 = arith.constant 0 : i32
    return %arg0, %c0_i32, %c0_i32_0 : i32, i32, i32
  }
  func.func @transform_3(%arg0: i32) -> (i32, i32, i32) {
    %c0_i32 = arith.constant 0 : i32
    %c0_i32_0 = arith.constant 0 : i32
    %c0_i32_1 = arith.constant 0 : i32
    return %arg0, %c0_i32, %c0_i32_0 : i32, i32, i32
  }
  func.func @transform_4(%arg0: i32) -> (i32, i32) {
    %c0_i32 = arith.constant 0 : i32
    %c0_i32_0 = arith.constant 0 : i32
    %c0_i32_1 = arith.constant 0 : i32
    return %c0_i32, %c0_i32_0 : i32, i32
  }
  func.func @transform_5(%arg0: i32) -> (i32, i32) {
    %c0_i32 = arith.constant 0 : i32
    %c0_i32_0 = arith.constant 0 : i32
    %c0_i32_1 = arith.constant 0 : i32
    return %c0_i32, %c0_i32_0 : i32, i32
  }
  func.func @transform_6(%arg0: i32) -> (i32, i32) {
    %c0_i32 = arith.constant 0 : i32
    %c0_i32_0 = arith.constant 0 : i32
    %c0_i32_1 = arith.constant 0 : i32
    return %c0_i32, %c0_i32_0 : i32, i32
  }
  func.func @transform_7(%arg0: i32) -> (i32, i32) {
    %c0_i32 = arith.constant 0 : i32
    %c0_i32_0 = arith.constant 0 : i32
    %c0_i32_1 = arith.constant 0 : i32
    return %c0_i32, %c0_i32_0 : i32, i32
  }
  func.func @transform_8(%arg0: i32) -> (i32, i32) {
    %c0_i32 = arith.constant 0 : i32
    %c0_i32_0 = arith.constant 0 : i32
    %c0_i32_1 = arith.constant 0 : i32
    return %c0_i32, %c0_i32_0 : i32, i32
  }
  func.func @transform_9(%arg0: i32) -> (i32, i32) {
    %c0_i32 = arith.constant 0 : i32
    %c0_i32_0 = arith.constant 0 : i32
    %c0_i32_1 = arith.constant 0 : i32
    return %c0_i32, %c0_i32_0 : i32, i32
  }
  func.func @transform_10(%arg0: i32) -> (i32, i32) {
    %c0_i32 = arith.constant 0 : i32
    %c0_i32_0 = arith.constant 0 : i32
    %c0_i32_1 = arith.constant 0 : i32
    return %c0_i32, %c0_i32_0 : i32, i32
  }
  func.func @transform_11(%arg0: i32) -> (i32, i32) {
    %c0_i32 = arith.constant 0 : i32
    %c0_i32_0 = arith.constant 0 : i32
    %c0_i32_1 = arith.constant 0 : i32
    return %c0_i32, %c0_i32_0 : i32, i32
  }
  func.func @transform_12(%arg0: i32) -> (i32, i32) {
    %c0_i32 = arith.constant 0 : i32
    %c0_i32_0 = arith.constant 0 : i32
    %c0_i32_1 = arith.constant 0 : i32
    return %c0_i32, %c0_i32_0 : i32, i32
  }
  func.func @transform_13(%arg0: i32) -> (i32, i32) {
    %c0_i32 = arith.constant 0 : i32
    %c0_i32_0 = arith.constant 0 : i32
    %c0_i32_1 = arith.constant 0 : i32
    return %c0_i32, %c0_i32_0 : i32, i32
  }
  func.func @transform_14(%arg0: i32) -> (i32, i32) {
    %c0_i32 = arith.constant 0 : i32
    %c0_i32_0 = arith.constant 0 : i32
    %c0_i32_1 = arith.constant 0 : i32
    return %c0_i32, %c0_i32_0 : i32, i32
  }
  func.func @transform_15(%arg0: i32) -> (i32, i32) {
    %c0_i32 = arith.constant 0 : i32
    %c0_i32_0 = arith.constant 0 : i32
    %c0_i32_1 = arith.constant 0 : i32
    return %c0_i32, %c0_i32_0 : i32, i32
  }
  func.func @transform_16(%arg0: i32) -> (i32, i32) {
    %c0_i32 = arith.constant 0 : i32
    %c0_i32_0 = arith.constant 0 : i32
    %c0_i32_1 = arith.constant 0 : i32
    return %c0_i32, %c0_i32_0 : i32, i32
  }
  func.func @transform_17(%arg0: i32) -> (i32, i32) {
    %c0_i32 = arith.constant 0 : i32
    %c0_i32_0 = arith.constant 0 : i32
    %c0_i32_1 = arith.constant 0 : i32
    return %c0_i32, %c0_i32_0 : i32, i32
  }
  func.func @transform_18(%arg0: i32) -> (i32, i32) {
    %c0_i32 = arith.constant 0 : i32
    %c0_i32_0 = arith.constant 0 : i32
    %c0_i32_1 = arith.constant 0 : i32
    return %c0_i32, %c0_i32_0 : i32, i32
  }
  func.func @transform_19(%arg0: i32) -> (i32, i32) {
    %c0_i32 = arith.constant 0 : i32
    %c0_i32_0 = arith.constant 0 : i32
    %c0_i32_1 = arith.constant 0 : i32
    return %c0_i32, %c0_i32_0 : i32, i32
  }
  func.func @transform_20(%arg0: i32) -> (i32, i32) {
    %c0_i32 = arith.constant 0 : i32
    %c0_i32_0 = arith.constant 0 : i32
    %c0_i32_1 = arith.constant 0 : i32
    return %c0_i32, %c0_i32_0 : i32, i32
  }
  func.func @transform_21(%arg0: i32) -> (i32, i32) {
    %c0_i32 = arith.constant 0 : i32
    %c0_i32_0 = arith.constant 0 : i32
    %c0_i32_1 = arith.constant 0 : i32
    return %c0_i32, %c0_i32_0 : i32, i32
  }
  func.func @transform_22(%arg0: i32) -> (i32, i32) {
    %c0_i32 = arith.constant 0 : i32
    %c0_i32_0 = arith.constant 0 : i32
    %c0_i32_1 = arith.constant 0 : i32
    return %c0_i32, %c0_i32_0 : i32, i32
  }
  func.func @transform_23(%arg0: i32) -> (i32, i32) {
    %c0_i32 = arith.constant 0 : i32
    %c0_i32_0 = arith.constant 0 : i32
    %c0_i32_1 = arith.constant 0 : i32
    return %c0_i32, %c0_i32_0 : i32, i32
  }
  func.func @transform_24(%arg0: i32) -> (i32, i32, i32) {
    %c0_i32 = arith.constant 0 : i32
    %c0_i32_0 = arith.constant 0 : i32
    %c0_i32_1 = arith.constant 0 : i32
    return %arg0, %c0_i32, %c0_i32_0 : i32, i32, i32
  }
}

</mosaic_0001>

<bundles_post_ra>
// kernel: tpu_custom_call.1
= control target key start
LH: loop header
LB: loop body
LE: loop exit
PB: predicated region body
PF: predicated region fallthrough
CT: control target
= control target key end

     0   :  { %s4564_s0 = inlined_call_operand.vmem [shape: f32[2,8,32], index: 0, kind: input, shape index: {}]   ;;  %s4565_s1 = inlined_call_operand.vmem [shape: f32[2,8,32], index: 1, kind: input, shape index: {}]   ;;  %s4566_s2 = inlined_call_operand.hbm [shape: bf16[2,8,8], index: 2, kind: input, shape index: {}]   ;;  %s4567_s3 = inlined_call_operand.hbm [shape: bf16[2,8,8], index: 3, kind: input, shape index: {}]   ;;  %s4568_s4 = inlined_call_operand.vmem [shape: bf16[32,96], index: 4, kind: input, shape index: {}]   ;;  %s4569_s5 = inlined_call_operand.hbm [shape: f32[1,96], index: 5, kind: input, shape index: {}]   ;;  %s4570_s6 = inlined_call_operand.hbm [shape: bf16[32,32], index: 6, kind: input, shape index: {}]   ;;  %s4571_s7 = inlined_call_operand.hbm [shape: f32[1,32], index: 7, kind: input, shape index: {}]   ;;  %s4572_s8 = inlined_call_operand.hbm [shape: f32[1,32], index: 8, kind: input, shape index: {}]   ;;  %s4573_s9 = inlined_call_operand.hbm [shape: f32[1,32], index: 9, kind: input, shape index: {}]   ;;  %s4574_s10 = inlined_call_operand.vmem [shape: bf16[32,32], index: 10, kind: input, shape index: {}]   ;;  %s4575_s11 = inlined_call_operand.hbm [shape: f32[1,32], index: 11, kind: input, shape index: {}]   ;;  %s4576_s12 = inlined_call_operand.hbm [shape: bf16[32,64], index: 12, kind: input, shape index: {}]   ;;  %s4577_s13 = inlined_call_operand.hbm [shape: f32[1,64], index: 13, kind: input, shape index: {}]   ;;  %s4578_s14 = inlined_call_operand.hbm [shape: bf16[32,32], index: 14, kind: input, shape index: {}]   ;;  %s4579_s15 = inlined_call_operand.hbm [shape: f32[1,32], index: 15, kind: input, shape index: {}]   ;;  %s4580_s16 = inlined_call_operand.hbm [shape: f32[1,32], index: 16, kind: input, shape index: {}]   ;;  %s4581_s17 = inlined_call_operand.hbm [shape: f32[1,32], index: 17, kind: input, shape index: {}]   ;;  %s4582_s18 = inlined_call_operand.hbm [shape: bf16[32,64], index: 18, kind: input, shape index: {}]   ;;  %s4583_s19 = inlined_call_operand.vmem [shape: f32[1,64], index: 19, kind: input, shape index: {}]   ;;  %s4584_s20 = inlined_call_operand.vmem [shape: bf16[64,32], index: 20, kind: input, shape index: {}]   ;;  %s4585_s21 = inlined_call_operand.vmem [shape: f32[1,32], index: 21, kind: input, shape index: {}]   ;;  %s4586_s22 = inlined_call_operand.vmem [shape: f32[1,32], index: 22, kind: input, shape index: {}]   ;;  %s4587_s23 = inlined_call_operand.vmem [shape: f32[1,32], index: 23, kind: input, shape index: {}]   ;;  %s4588_s24 = inlined_call_operand.hbm [shape: f32[2,8,32], index: 24, kind: output, shape index: {}]  }
   0x1   :  { %4602 = sst [smem:[#allocation37_spill]] %s4564_s0 }
   0x2   :  { %4603 = sst [smem:[#allocation38_spill]] %s4565_s1 }
   0x3   :  { %4604 = sst [smem:[#allocation39_spill]] %s4566_s2 }
   0x4   :  { %4605 = sst [smem:[#allocation40_spill]] %s4567_s3 }
   0x5   :  { %4606 = sst [smem:[#allocation41_spill]] %s4568_s4 }
   0x6   :  { %4607 = sst [smem:[#allocation42_spill]] %s4569_s5 }
   0x7   :  { %4608 = sst [smem:[#allocation43_spill]] %s4570_s6 }
   0x8   :  { %4609 = sst [smem:[#allocation44_spill]] %s4571_s7 }
   0x9   :  { %4610 = sst [smem:[#allocation45_spill]] %s4572_s8 }
   0xa   :  { %4611 = sst [smem:[#allocation46_spill]] %s4573_s9 }
   0xb   :  { %4612 = sst [smem:[#allocation47_spill]] %s4575_s11 }
   0xc   :  { %4613 = sst [smem:[#allocation48_spill]] %s4576_s12 }
   0xd   :  { %4614 = sst [smem:[#allocation49_spill]] %s4577_s13 }
   0xe   :  { %4615 = sst [smem:[#allocation50_spill]] %s4578_s14 }
   0xf   :  { %4616 = sst [smem:[#allocation51_spill]] %s4579_s15 }
  0x10   :  { %4617 = sst [smem:[#allocation52_spill]] %s4580_s16 }
  0x11   :  { %4618 = sst [smem:[#allocation53_spill]] %s4581_s17 }
  0x12   :  { %4619 = sst [smem:[#allocation54_spill]] %s4582_s18 }
  0x13   :  { %4620 = sst [smem:[#allocation55_spill]] %s4583_s19 }
  0x14   :  { %4621 = sst [smem:[#allocation56_spill]] %s4585_s21 }
  0x15   :  { %4622 = sst [smem:[#allocation57_spill]] %s4586_s22 }
  0x16   :  { %4623 = sst [smem:[#allocation58_spill]] %s4587_s23 }
  0x17   :  { %4624 = sst [smem:[#allocation59_spill]] %s4588_s24 }
  0x18   :  { %29 = vsyncpa [#allocation3], 0 }
  0x19   :  { %31 = vsyncpa [#allocation3 + $0x1], 0 }
  0x1a   :  { %32 = vsyncpa [#allocation6], 0 }
  0x1b   :  { %34 = vsyncpa [#allocation6 + $0x1], 0 }
  0x1c   :  { %35 = vsyncpa [#allocation9], 0 }
  0x1d   :  { %36 = vsyncpa [#allocation12], 0 }
  0x1e   :  { %37 = vsyncpa [#allocation15], 0 }
  0x1f   :  { %38 = vsyncpa [#allocation18], 0 }
  0x20   :  { %39 = vsyncpa [#allocation21], 0 }
  0x21   :  { %40 = vsyncpa [#allocation24], 0 }
  0x22   :  { %41 = vsyncpa [#allocation4], 0 }
  0x23   :  { %43 = vsyncpa [#allocation4 + $0x1], 0  ;;  %s3972_s5 = smov 0   ;;  %s3974_s26 = smov 0  }
  0x24   :  { %s3976_s27 = smov 0   ;;  %s3978_s28 = smov 0  }
  0x25 LB: > { %s3813_s6 = smov [#allocation7]   ;;  %s3993_s29 = sadd.s32 4294967295, %s3811_s28   ;;  %s3811_s28 = sphi %s3978_s28, %s4682_s28   ;;  %s3807_s27 = sphi %s3976_s27, %s4681_s27   ;;  %s3803_s26 = sphi %s3974_s26, %s4680_s26   ;;  %s3799_s5 = sphi %s3972_s5, %s4679_s5  }
  0x26   : > { %s620_s2 = sshll.u32 %s3813_s6, 4  ;;  %p2760_p0 = scmp.ge.s32.totalorder %s3811_s28, 1  ;;  %s621_s2 = int_to_ptr.vmem [resolvable:$true] %s620_s2 }
  0x27   : > { %p4595_p1 = scmp.eq.s32.totalorder %s3993_s29, 0  ;;  %p604_p2 = scmp.lt.s32.totalorder %s3811_s28, 3 }
  0x28   : > { %s3814_s7 = smov [#allocation8]   ;;  %s3815_s25 = smov [#allocation11]  }
  0x29   : > { %p3998_p3 = pnand %p2760_p0, %p604_p2  ;;  %s630_s30 = sshll.u32 %s3814_s7, 4  ;;  %s4005_s30 = int_to_ptr.vmem [resolvable:$true] %s630_s30 }
  0x2a   : > { %s655_s8 = sshll.u32 %s3815_s25, 4  ;;  %s3332_s1 = scalar_lea.vmem %s621_s2, 16  ;;  %s4013_s8 = int_to_ptr.vmem [resolvable:$true] %s655_s8 }
  0x2b   : > { %s4625_s0 = scalar_select %p3998_p3, 1, 0 }
  0x2c   : > { %p3125_p5 = pneg %p3998_p3  ;;  %p3333_p8 = scmp.ne.s32.totalorder %s621_s2, %s3332_s1 }
  0x2d   : > { %s3339_s6 = scalar_lea.vmem %s621_s2, 32  ;;  %p3340_p11 = scmp.lt.s32.totalorder %s621_s2, %s621_s2 }
  0x2e   : > { %p4009_p6 = pnand %p3125_p5, %p4595_p1  ;;  %p3341_p12 = scmp.lt.s32.totalorder %s3339_s6, %s3332_s1 }
  0x30   : > { %p4017_p7 = pneg %p4009_p6  ;;  %p3342_p13 = por %p3341_p12, %p3340_p11 }
  0x32   : > { %p3335_p9 = pnand %p3333_p8, %p4017_p7 }
  0x34   : > { %p3336_p10 = pneg %p3335_p9 }
  0x36   : > { %p3343_p0 = pnand %p3342_p13, %p3336_p10 }
  0x38   : > { %3346 = shalt.err (!%p3343_p0)
}
  0x39   : > { %s4628_s24 = sld [smem:[#allocation42_spill]]  ;;  %s3358_s23 = scalar_lea.vmem %s4005_s30, 256 }
  0x3a   : > { %p3359_p2 = scmp.ne.s32.totalorder %s4005_s30, %s3358_s23  ;;  %p3366_p9 = scmp.lt.s32.totalorder %s4005_s30, %s4005_s30 }
  0x3b   : > { %p3367_p11 = scmp.lt.s32.totalorder %s3358_s23, %s3358_s23 }
  0x3c   : > { %p3361_p5 = pnand %p3359_p2, %p4017_p7 }
  0x3d   : > { %p3368_p10 = por %p3367_p11, %p3366_p9 }
  0x3e   : > { %p3362_p8 = pneg %p3361_p5 }
  0x3f   : > { %3128 = dma.hbm_to_vmem [thread:$0]  (!%p4009_p6), %s4628_s24, 16, %s621_s2, [#allocation6]  }
  0x40   : > { %p3369_p12 = pnand %p3368_p10, %p3362_p8 }
  0x42   : > { %3372 = shalt.err (!%p3369_p12)
}
  0x43   : > { %s4593_s1 = smov 64   ;;  %s3817_s24 = smov 4  }
  0x44   : > { %s4629_s7 = sld [smem:[#allocation43_spill]]  ;;  %s3384_s23 = scalar_lea.vmem %s4013_s8, 16 }
  0x45   : > { %p3385_p13 = scmp.ne.s32.totalorder %s4013_s8, %s3384_s23  ;;  %s3391_s25 = scalar_lea.vmem %s4013_s8, 32 }
  0x46   : > { %p3392_p5 = scmp.lt.s32.totalorder %s4013_s8, %s4013_s8  ;;  %p3393_p8 = scmp.lt.s32.totalorder %s3391_s25, %s3384_s23 }
  0x47   : > { %p3387_p0 = pnand %p3385_p13, %p4017_p7 }
  0x48   : > { %p3394_p9 = por %p3393_p8, %p3392_p5 }
  0x49   : > { %p3388_p2 = pneg %p3387_p0 }
  0x4a   : > { %3131 = dma.hbm_to_vmem [thread:$0]  (!%p4009_p6), %s4629_s7, 256, %s4005_s30, [#allocation9], %s4593_s1, %s4593_s1, %s3817_s24  }
  0x4b   : > { %p3395_p11 = pnand %p3394_p9, %p3388_p2 }
  0x4d   : > { %3398 = shalt.err (!%p3395_p11)
}
  0x4e   : > { %s4630_s19 = sld [smem:[#allocation45_spill]]  ;;  %s3818_s30 = smov [#allocation14]  }
  0x4f   : > { %s680_s2 = sshll.u32 %s3818_s30, 4  ;;  %s3819_s6 = smov [#allocation17]   ;;  %s681_s2 = int_to_ptr.vmem [resolvable:$true] %s680_s2 }
  0x50   : > { %s704_s7 = sshll.u32 %s3819_s6, 4  ;;  %s3410_s1 = scalar_lea.vmem %s681_s2, 16  ;;  %s705_s7 = int_to_ptr.vmem [resolvable:$true] %s704_s7 }
  0x51   : > { %p3411_p10 = scmp.ne.s32.totalorder %s681_s2, %s3410_s1  ;;  %s3417_s23 = scalar_lea.vmem %s681_s2, 32 }
  0x52   : > { %p3418_p0 = scmp.lt.s32.totalorder %s681_s2, %s681_s2  ;;  %p3419_p2 = scmp.lt.s32.totalorder %s3417_s23, %s3410_s1 }
  0x53   : > { %p3413_p12 = pnand %p3411_p10, %p4017_p7 }
  0x54   : > { %3137 = dma.hbm_to_vmem [thread:$0]  (!%p4009_p6), %s4630_s19, 16, %s4013_s8, [#allocation12]  }
  0x55   : > { %p3414_p13 = pneg %p3413_p12  ;;  %p3420_p5 = por %p3419_p2, %p3418_p0 }
  0x57   : > { %p3421_p8 = pnand %p3420_p5, %p3414_p13 }
  0x59   : > { %3424 = shalt.err (!%p3421_p8)
}
  0x5a   : > { %s4631_s11 = sld [smem:[#allocation47_spill]]  ;;  %s3436_s22 = scalar_lea.vmem %s705_s7, 16 }
  0x5b   : > { %p3437_p9 = scmp.ne.s32.totalorder %s705_s7, %s3436_s22  ;;  %s3443_s8 = scalar_lea.vmem %s705_s7, 32 }
  0x5c   : > { %p3444_p12 = scmp.lt.s32.totalorder %s705_s7, %s705_s7  ;;  %p3445_p4 = scmp.lt.s32.totalorder %s3443_s8, %s3436_s22 }
  0x5d   : > { %p3439_p11 = pnand %p3437_p9, %p4017_p7 }
  0x5e   : > { %p3446_p1 = por %p3445_p4, %p3444_p12 }
  0x5f   : > { %p3440_p10 = pneg %p3439_p11 }
  0x60   : > { %3143 = dma.hbm_to_vmem [thread:$0]  (!%p4009_p6), %s4631_s11, 16, %s681_s2, [#allocation15]  }
  0x61   : > { %p3447_p0 = pnand %p3446_p1, %p3440_p10 }
  0x63   : > { %3450 = shalt.err (!%p3447_p0)
}
  0x64   : > { %s4632_s13 = sld [smem:[#allocation49_spill]]  ;;  %s3820_s30 = smov [#allocation20]  }
  0x65   : > { %s728_s2 = sshll.u32 %s3820_s30, 4  ;;  %s3821_s6 = smov [#allocation23]   ;;  %s729_s2 = int_to_ptr.vmem [resolvable:$true] %s728_s2 }
  0x66   : > { %s750_s23 = sshll.u32 %s3821_s6, 4  ;;  %s3462_s21 = scalar_lea.vmem %s729_s2, 16  ;;  %s751_s23 = int_to_ptr.vmem [resolvable:$true] %s750_s23 }
  0x67   : > { %p3463_p13 = scmp.ne.s32.totalorder %s729_s2, %s3462_s21  ;;  %s3469_s19 = scalar_lea.vmem %s729_s2, 32 }
  0x68   : > { %p3470_p1 = scmp.lt.s32.totalorder %s729_s2, %s729_s2  ;;  %p3471_p4 = scmp.lt.s32.totalorder %s3469_s19, %s3462_s21 }
  0x69   : > { %p3465_p2 = pnand %p3463_p13, %p4017_p7 }
  0x6a   : > { %3149 = dma.hbm_to_vmem [thread:$0]  (!%p4009_p6), %s4632_s13, 16, %s705_s7, [#allocation18]  }
  0x6b   : > { %p3466_p5 = pneg %p3465_p2  ;;  %p3472_p8 = por %p3471_p4, %p3470_p1 }
  0x6d   : > { %p3473_p9 = pnand %p3472_p8, %p3466_p5 }
  0x6f   : > { %3476 = shalt.err (!%p3473_p9)
}
  0x70   : > { %s4633_s15 = sld [smem:[#allocation51_spill]]  ;;  %s3488_s8 = scalar_lea.vmem %s751_s23, 16 }
  0x71   : > { %p3489_p11 = scmp.ne.s32.totalorder %s751_s23, %s3488_s8  ;;  %s3495_s1 = scalar_lea.vmem %s751_s23, 32 }
  0x72   : > { %p3496_p0 = scmp.lt.s32.totalorder %s751_s23, %s751_s23  ;;  %p3497_p13 = scmp.lt.s32.totalorder %s3495_s1, %s3488_s8 }
  0x73   : > { %p3491_p10 = pnand %p3489_p11, %p4017_p7 }
  0x74   : > { %p3498_p2 = por %p3497_p13, %p3496_p0 }
  0x75   : > { %p3492_p12 = pneg %p3491_p10 }
  0x76   : > { %3155 = dma.hbm_to_vmem [thread:$0]  (!%p4009_p6), %s4633_s15, 16, %s729_s2, [#allocation21]  }
  0x77   : > { %p3499_p1 = pnand %p3498_p2, %p3492_p12 }
  0x79   : > { %3502 = shalt.err (!%p3499_p1)
}
  0x7a   : > { %s4634_s17 = sld [smem:[#allocation53_spill]]  ;;  %s3822_s2 = smov [#allocation10]  }
  0x7b   : > { %s644_s6 = sshll.u32 %s3822_s2, 4  ;;  %s3823_s21 = smov [#allocation13]   ;;  %s645_s6 = int_to_ptr.vmem [resolvable:$true] %s644_s6 }
  0x7c   : > { %s666_s19 = sshll.u32 %s3823_s21, 4  ;;  %s3514_s22 = scalar_lea.vmem %s645_s6, 16  ;;  %s667_s19 = int_to_ptr.vmem [resolvable:$true] %s666_s19 }
  0x7d   : > { %p3515_p5 = scmp.ne.s32.totalorder %s645_s6, %s3514_s22  ;;  %s3521_s7 = scalar_lea.vmem %s645_s6, 32 }
  0x7e   : > { %p3522_p9 = scmp.lt.s32.totalorder %s645_s6, %s645_s6  ;;  %p3523_p11 = scmp.lt.s32.totalorder %s3521_s7, %s3514_s22 }
  0x7f   : > { %p3517_p4 = pnand %p3515_p5, %p4017_p7 }
  0x80   : > { %3161 = dma.hbm_to_vmem [thread:$0]  (!%p4009_p6), %s4634_s17, 16, %s751_s23, [#allocation24]  }
  0x81   : > { %p3518_p8 = pneg %p3517_p4  ;;  %p3524_p10 = por %p3523_p11, %p3522_p9 }
  0x83   : > { %p3525_p12 = pnand %p3524_p10, %p3518_p8 }
  0x85   : > { %3528 = shalt.err (!%p3525_p12)
}
  0x86   : > { %s4635_s1 = sld [smem:[#allocation44_spill]]  ;;  %s3540_s25 = scalar_lea.vmem %s667_s19, 16 }
  0x87   : > { %p3541_p0 = scmp.ne.s32.totalorder %s667_s19, %s3540_s25  ;;  %s3547_s30 = scalar_lea.vmem %s667_s19, 32 }
  0x88   : > { %p3548_p1 = scmp.lt.s32.totalorder %s667_s19, %s667_s19  ;;  %p3549_p5 = scmp.lt.s32.totalorder %s3547_s30, %s3540_s25 }
  0x89   : > { %p3543_p13 = pnand %p3541_p0, %p4017_p7 }
  0x8a   : > { %p3550_p4 = por %p3549_p5, %p3548_p1 }
  0x8b   : > { %p3544_p2 = pneg %p3543_p13 }
  0x8c   : > { %3134 = dma.hbm_to_vmem [thread:$0]  (!%p4009_p6), %s4635_s1, 16, %s645_s6, [#allocation9]  }
  0x8d   : > { %p3551_p9 = pnand %p3550_p4, %p3544_p2 }
  0x8f   : > { %3554 = shalt.err (!%p3551_p9)
}
  0x90   : > { %s4636_s9 = sld [smem:[#allocation46_spill]]  ;;  %s3824_s6 = smov [#allocation16]  }
  0x91   : > { %s690_s22 = sshll.u32 %s3824_s6, 4  ;;  %s3825_s7 = smov [#allocation19]   ;;  %s691_s22 = int_to_ptr.vmem [resolvable:$true] %s690_s22 }
  0x92   : > { %s714_s8 = sshll.u32 %s3825_s7, 4  ;;  %s3566_s23 = scalar_lea.vmem %s691_s22, 256  ;;  %s715_s8 = int_to_ptr.vmem [resolvable:$true] %s714_s8 }
  0x93   : > { %p3567_p8 = scmp.ne.s32.totalorder %s691_s22, %s3566_s23  ;;  %p3574_p12 = scmp.lt.s32.totalorder %s691_s22, %s691_s22 }
  0x94   : > { %p3575_p0 = scmp.lt.s32.totalorder %s3566_s23, %s3566_s23 }
  0x95   : > { %p3569_p11 = pnand %p3567_p8, %p4017_p7 }
  0x96   : > { %3140 = dma.hbm_to_vmem [thread:$0]  (!%p4009_p6), %s4636_s9, 16, %s667_s19, [#allocation12]  }
  0x97   : > { %p3570_p10 = pneg %p3569_p11  ;;  %p3576_p13 = por %p3575_p0, %p3574_p12 }
  0x99   : > { %p3577_p2 = pnand %p3576_p13, %p3570_p10 }
  0x9b   : > { %3580 = shalt.err (!%p3577_p2)
}
  0x9c   : > { %s4637_s1 = smov 64   ;;  %s4638_s12 = sld [smem:[#allocation48_spill]] }
  0x9d   : > { %s3592_s30 = scalar_lea.vmem %s715_s8, 256  ;;  %p3600_p9 = scmp.lt.s32.totalorder %s715_s8, %s715_s8 }
  0x9e   : > { %p3593_p1 = scmp.ne.s32.totalorder %s715_s8, %s3592_s30  ;;  %p3601_p8 = scmp.lt.s32.totalorder %s3592_s30, %s3592_s30 }
  0xa0   : > { %p3595_p5 = pnand %p3593_p1, %p4017_p7  ;;  %p3602_p11 = por %p3601_p8, %p3600_p9 }
  0xa2   : > { %3146 = dma.hbm_to_vmem [thread:$0]  (!%p4009_p6), %s4638_s12, 256, %s691_s22, [#allocation15], %s4637_s1, %s4637_s1, %s3817_s24  }
  0xa3   : > { %p3596_p4 = pneg %p3595_p5 }
  0xa5   : > { %p3603_p10 = pnand %p3602_p11, %p3596_p4 }
  0xa7   : > { %3606 = shalt.err (!%p3603_p10)
}
  0xa8   : > { %s4639_s14 = sld [smem:[#allocation50_spill]]  ;;  %s3826_s6 = smov [#allocation22]  }
  0xa9   : > { %s739_s22 = sshll.u32 %s3826_s6, 4  ;;  %s3827_s7 = smov [#allocation25]   ;;  %s740_s22 = int_to_ptr.vmem [resolvable:$true] %s739_s22 }
  0xaa   : > { %s760_s23 = sshll.u32 %s3827_s7, 4  ;;  %s3618_s19 = scalar_lea.vmem %s740_s22, 16  ;;  %s761_s23 = int_to_ptr.vmem [resolvable:$true] %s760_s23 }
  0xab   : > { %p3619_p12 = scmp.ne.s32.totalorder %s740_s22, %s3618_s19  ;;  %s3625_s25 = scalar_lea.vmem %s740_s22, 32 }
  0xac   : > { %p3626_p2 = scmp.lt.s32.totalorder %s740_s22, %s740_s22  ;;  %p3627_p1 = scmp.lt.s32.totalorder %s3625_s25, %s3618_s19 }
  0xad   : > { %p3621_p0 = pnand %p3619_p12, %p4017_p7 }
  0xae   : > { %3152 = dma.hbm_to_vmem [thread:$0]  (!%p4009_p6), %s4639_s14, 256, %s715_s8, [#allocation18], %s4637_s1, %s4637_s1, %s3817_s24  }
  0xaf   : > { %p3622_p13 = pneg %p3621_p0  ;;  %p3628_p5 = por %p3627_p1, %p3626_p2 }
  0xb1   : > { %p3629_p4 = pnand %p3628_p5, %p3622_p13 }
  0xb3   : > { %3632 = shalt.err (!%p3629_p4)
}
  0xb4   : > { %s4640_s16 = sld [smem:[#allocation52_spill]]  ;;  %s3644_s2 = scalar_lea.vmem %s761_s23, 256 }
  0xb5   : > { %p3645_p9 = scmp.ne.s32.totalorder %s761_s23, %s3644_s2  ;;  %p3652_p10 = scmp.lt.s32.totalorder %s761_s23, %s761_s23 }
  0xb6   : > { %p3653_p12 = scmp.lt.s32.totalorder %s3644_s2, %s3644_s2 }
  0xb7   : > { %p3647_p8 = pnand %p3645_p9, %p4017_p7 }
  0xb8   : > { %p3654_p0 = por %p3653_p12, %p3652_p10 }
  0xb9   : > { %p3648_p11 = pneg %p3647_p8 }
  0xba   : > { %3158 = dma.hbm_to_vmem [thread:$0]  (!%p4009_p6), %s4640_s16, 16, %s740_s22, [#allocation21]  }
  0xbb   : > { %p3655_p3 = pnand %p3654_p0, %p3648_p11 }
  0xbd   : > { %3658 = shalt.err (!%p3655_p3)
}
  0xbe   : > { %s4641_s18 = sld [smem:[#allocation54_spill]]  ;;  %s2759_s3 = sadd.s32 4294967294, %s3811_s28  }
  0xbf   : > { %s4137_s4 = sadd.s32 1, %s3811_s28   ;;  %s108_s22 = sadd.s32 1, %s3807_s27 }
  0xc0   : > { %s105_s7 = ssub.s32 %s3811_s28, %s4137_s4  ;;  %p115_p3 = scmp.ne.s32.totalorder %s3807_s27, %s3803_s26 }
  0xc1   : > { %p106_p7 = scmp.eq.s32.totalorder %s105_s7, 0  ;;  %p116_p13 = scmp.eq.s32.totalorder %s3811_s28, 0 }
  0xc2   : > { %p121_p2 = scmp.ne.s32.totalorder %s3803_s26, %s3799_s5  ;;  %p591_p1 = scmp.eq.s32.totalorder %s3993_s29, 1 }
  0xc3   : > { %s4149_s19 = scalar_select %p106_p7, %s3807_s27, %s108_s22  }
  0xc4   : > { %3164 = dma.hbm_to_vmem [thread:$0]  (!%p4009_p6), %s4641_s18, 256, %s761_s23, [#allocation24], %s4637_s1, %s4637_s1, %s3817_s24  }
  0xc5   : > { %p117_p5 = por %p116_p13, %p115_p3  ;;  %p4642_p4 = scmp.eq.s32.totalorder %s3993_s29, 0 }
  0xc6   : > { %p4157_p6 = por %p591_p1, %p115_p3  ;;  %p597_p8 = scmp.eq.s32.totalorder %s2759_s3, 1 }
  0xc7   : > { %p4153_p9 = por %p4642_p4, %p121_p2  ;;  %p3189_p11 = scmp.lt.s32.totalorder %s3811_s28, 2 }
  0xc8   : > { %s4644_s24 = scalar_select %p4157_p6, 1, 0 }
  0xc9   : > { %s4643_s25 = scalar_select %p4153_p9, 1, 0 }
  0xca   : > { %s803_s1 = sand.u32 1, %s3807_s27   ;;  %p4163_p10 = por %p597_p8, %p121_p2 }
  0xcb   : > { %s4167_s30 = sshll.u32 %s803_s1, 2  ;;  %s2776_s8 = sshll.u32 %s3811_s28, 6 }
  0xcc   : > { %s4645_s23 = scalar_select %p4163_p10, 1, 0 }
  0xcd   : > { %s4646_s6 = sld [smem:[#allocation39_spill]]  ;;  %s807_s7 = scalar_lea.vmem [#allocation2], %s4167_s30 }
  0xce   : > { %s814_s3 = sshll.u32 %s807_s7, 4  ;;  %p4176_p12 = pnand %p3189_p11, %p117_p5  ;;  %s815_s3 = int_to_ptr.vmem [resolvable:$true] %s814_s3 }
  0xcf   : > { %s4648_s13 = sld [smem:[#allocation40_spill]]  ;;  %s804_s2 = scalar_lea.sflag [#allocation3], %s803_s1 }
  0xd0   : > { %p3661_p3 = pneg %p4176_p12 }
  0xd3   : > { %s4173_s22 = scalar_lea.hbm %s4646_s6, %s2776_s8  ;;  %s3664_s16 = scalar_lea.hbm %s4646_s6, 128 }
  0xd4   : > { %s3659_s21 = scalar_lea.hbm %s4173_s22, 64  ;;  %p3665_p2 = scmp.lt.s32.totalorder %s4173_s22, %s4646_s6 }
  0xd5   : > { %s4183_s14 = scalar_lea.hbm %s4648_s13, %s2776_s8  ;;  %p3660_p0 = scmp.ne.s32.totalorder %s4173_s22, %s3659_s21 }
  0xd6   : > { %p3666_p1 = scmp.lt.s32.totalorder %s3664_s16, %s3659_s21 }
  0xd7   : > { %p3662_p7 = pnand %p3661_p3, %p3660_p0 }
  0xd8   : > { %p3667_p5 = por %p3666_p1, %p3665_p2 }
  0xd9   : > { %p3663_p13 = pneg %p3662_p7 }
  0xdb   : > { %p3668_p4 = pnand %p3667_p5, %p3663_p13 }
  0xdd   : > { %3671 = shalt.err (!%p3668_p4)
}
  0xde   : > { %s3672_s11 = scalar_lea.vmem %s815_s3, 64  ;;  %s3828_s12 = smov [#allocation2]  }
  0xdf   : > { %p3673_p8 = scmp.ne.s32.totalorder %s815_s3, %s3672_s11  ;;  %s3677_s1 = sshll.u32 %s3828_s12, 4  ;;  %s3678_s1 = int_to_ptr.vmem [resolvable:$false] %s3677_s1 }
  0xe0   : > { %s3679_s15 = scalar_lea.vmem %s3678_s1, 128  ;;  %p3680_p7 = scmp.lt.s32.totalorder %s815_s3, %s3678_s1 }
  0xe1   : > { %p3675_p11 = pnand %p3673_p8, %p3661_p3  ;;  %p3681_p10 = scmp.lt.s32.totalorder %s3679_s15, %s3672_s11 }
  0xe3   : > { %p3676_p0 = pneg %p3675_p11  ;;  %p3682_p6 = por %p3681_p10, %p3680_p7 }
  0xe5   : > { %p3683_p9 = pnand %p3682_p6, %p3676_p0 }
  0xe7   : > { %3686 = shalt.err (!%p3683_p9)
}
  0xe8   : > { %3168 = dma.hbm_to_vmem [thread:$0]  (!%p4176_p12), %s4173_s22, 64, %s815_s3, %s804_s2  }
  0xe9   : > { %s821_s16 = sand.u32 1, %s3811_s28   ;;  %s825_s17 = scalar_lea.vmem [#allocation5], %s4167_s30 }
  0xea   : > { %s832_s18 = sshll.u32 %s825_s17, 4  ;;  %s822_s8 = scalar_lea.sflag [#allocation6], %s821_s16  ;;  %s833_s18 = int_to_ptr.vmem [resolvable:$true] %s832_s18 }
  0xeb   : > { %s3687_s21 = scalar_lea.hbm %s4183_s14, 64  ;;  %s3692_s12 = scalar_lea.hbm %s4648_s13, 128 }
  0xec   : > { %p3688_p13 = scmp.ne.s32.totalorder %s4183_s14, %s3687_s21  ;;  %p3693_p10 = scmp.lt.s32.totalorder %s4183_s14, %s4648_s13 }
  0xed   : > { %p3694_p2 = scmp.lt.s32.totalorder %s3692_s12, %s3687_s21 }
  0xee   : > { %p3690_p9 = pnand %p3688_p13, %p3661_p3 }
  0xef   : > { %p3695_p1 = por %p3694_p2, %p3693_p10 }
  0xf0   : > { %p3691_p6 = pneg %p3690_p9 }
  0xf2   : > { %p3696_p5 = pnand %p3695_p1, %p3691_p6 }
  0xf4   : > { %3699 = shalt.err (!%p3696_p5)
}
  0xf5   : > { %s3700_s30 = scalar_lea.vmem %s833_s18, 64  ;;  %s3829_s22 = smov [#allocation5]  }
  0xf6   : > { %p3701_p4 = scmp.ne.s32.totalorder %s833_s18, %s3700_s30  ;;  %s3705_s3 = sshll.u32 %s3829_s22, 4  ;;  %s3706_s3 = int_to_ptr.vmem [resolvable:$false] %s3705_s3 }
  0xf7   : > { %s3707_s2 = scalar_lea.vmem %s3706_s3, 128  ;;  %p3708_p0 = scmp.lt.s32.totalorder %s833_s18, %s3706_s3 }
  0xf8   : > { %p3703_p8 = pnand %p3701_p4, %p3661_p3  ;;  %p3709_p7 = scmp.lt.s32.totalorder %s3707_s2, %s3700_s30 }
  0xfa   : > { %p3704_p11 = pneg %p3703_p8  ;;  %p3710_p13 = por %p3709_p7, %p3708_p0 }
  0xfc   : > { %p3711_p9 = pnand %p3710_p13, %p3704_p11 }
  0xfe   : > { %3714 = shalt.err (!%p3711_p9)
}
  0xff   : > { %3171 = dma.hbm_to_vmem [thread:$0]  (!%p4176_p12), %s4183_s14, 64, %s833_s18, %s822_s8  }
 0x100   : > { %p4649_p6 = scmp.ne.s32.totalorder %s4625_s0, 0 }
 0x101   : > { %s4228_s16 = sand.u32 (!%p4649_p6), 1, %s3803_s26   ;;  %p4650_p3 = scmp.ne.s32.totalorder (!%p4649_p6), %s4643_s25, 0 }
 0x102   : > { %841 = sbr.rel (%p4649_p6) target bundleno = 4391 (0x1127), region = 116  ;;  %s2780_s17 = sshll.u32 (!%p4649_p6), %s4228_s16, 2 }
 0x103   : > { %s844_s21 = scalar_lea.sflag (!%p4649_p6), [#allocation3], %s4228_s16  ;;  %s4232_s7 = scalar_lea.vmem (!%p4649_p6), [#allocation2], %s2780_s17 }
 0x107   : > { %3758 = dma.done.wait (%p4650_p3), %s844_s21, 64  }
 0x108   : > { %3760 = vsyncadd (%p4650_p3), %s844_s21, 4294967232  ;;  %s852_s9 = sand.u32 1, %s3993_s29   ;;  %s4239_s0 = scalar_lea.vmem [#allocation5], %s2780_s17 }
 0x109   : > { %s853_s14 = scalar_lea.sflag [#allocation6], %s852_s9 }
 0x10a   : > { %3762 = dma.done.wait (%p4650_p3), %s853_s14, 64  }
 0x10b   : > { %3764 = vsyncadd (%p4650_p3), %s853_s14, 4294967232  ;;  %p4651_p12 = scmp.eq.s32.totalorder %s3993_s29, 0 }
 0x10d   : > { %3766 = dma.done.wait (%p4651_p12), [#allocation6], 16   ;;  %p4652_p10 = pmov %p4651_p12 }
 0x10f   : > { %3768 = vsyncadd (%p4652_p10), [#allocation6], 4294967280  ;;  %p4653_p2 = pmov %p4652_p10 }
 0x111   : > { %3770 = dma.done.wait (%p4653_p2), [#allocation9], 272   ;;  %p4654_p1 = pmov %p4653_p2 }
 0x113   : > { %3772 = vsyncadd (%p4654_p1), [#allocation9], 4294967024  ;;  %p4655_p5 = pmov %p4654_p1 }
 0x114   : > { %p4656_p4 = pmov %p4654_p1 }
 0x115   : > { %3774 = dma.done.wait (%p4655_p5), [#allocation12], 32  }
 0x116   : > { %3776 = vsyncadd (%p4656_p4), [#allocation12], 4294967264  ;;  %p4657_p8 = pmov %p4654_p1 }
 0x117   : > { %p4658_p11 = pmov %p4654_p1 }
 0x118   : > { %3778 = dma.done.wait (%p4657_p8), [#allocation15], 272  }
 0x119   : > { %3780 = vsyncadd (%p4658_p11), [#allocation15], 4294967024  ;;  %p4659_p0 = pmov %p4654_p1 }
 0x11b   : > { %3782 = dma.done.wait (%p4659_p0), [#allocation18], 272   ;;  %p4660_p7 = pmov %p4659_p0 }
 0x11c   : > { %p4661_p13 = pmov %p4659_p0 }
 0x11d   : > { %3784 = vsyncadd (%p4660_p7), [#allocation18], 4294967024 }
 0x11e   : > { %3786 = dma.done.wait (%p4661_p13), [#allocation21], 32   ;;  %p4662_p9 = pmov %p4659_p0 }
 0x11f   : > { %p4663_p6 = pmov %p4659_p0 }
 0x120   : > { %3788 = vsyncadd (%p4662_p9), [#allocation21], 4294967264 }
 0x121   : > { %3790 = dma.done.wait (%p4663_p6), [#allocation24], 272   ;;  %p4664_p3 = pmov %p4659_p0 }
 0x122   : > { %p986_p12 = scmp.lt.s32.totalorder %s3993_s29, 1  ;;  %v3830_v0 = vmov 0.0   ;;  %vm3831_vm0 = vmmov 0   ;;  %s4665_s12 = sld [smem:[#allocation37_spill]]  ;;  %vm1029_vm1 = vcmask 261120   ;;  %vm1077_vm2 = vcmask 64512  }
 0x123   : > { %3792 = vsyncadd (%p4664_p3), [#allocation24], 4294967024  ;;  %2911 = vmatprep.subr.bf16.mxu1 %v3830_v0  ;;  %2915 = vmatprep.mubr.msk.bf16.mxu1 %vm3831_vm0, %v3830_v0  ;;  %s4666_s22 = sld [smem:[#allocation41_spill]]  ;;  %v2800_v5 = vld [vmem:[#allocation7] ss:$0 sm:$0xff]  ;;  %s3832_s17 = smov 120  }
 0x124   : > { %s4278_s25 = scalar_select %p986_p12, %s3993_s29, 1  ;;  %2925 = vmatprep.subr.bf16.mxu0 %v3830_v0  ;;  %2927 = vmatprep.mubr.msk.bf16.mxu0 %vm3831_vm0, %v3830_v0  ;;  %v997_v23 = vld [vmem:[%s4232_s7] sm:$0xf]  ;;  %vm1141_vm3 = vcmask 1043456   ;;  %vm1531_vm4 = vcmask 130048   ;;  %vm1534_vm5 = vcmask 195584  }
 0x125   : > { %s3833_s21 = smov 96   ;;  %s3834_s9 = smov 80   ;;  %v998_v24 = vunpack.c.l.bf16 %v997_v23  ;;  %vm2430_vm6 = vcmask 523264  }
 0x126   : > { %s2796_s18 = sshll.u32 %s4278_s25, 3  ;;  %s3835_s14 = smov 88  }
 0x127   : > { %s3836_s8 = smov 72   ;;  %s3837_s11 = smov 112   ;;  %v2798_v25 = vadd.f32 -1.0, %v998_v24 }
 0x128   : > { %s989_s1 = scalar_lea.vmem %s4665_s12, %s2796_s18  ;;  %s3838_s12 = smov 104  }
 0x129   : > { %v3267_v1 = vld [vmem:[%s4666_s22 + $0x8] sm:$0xff]   ;;  %v3268_v2 = vld [vmem:[%s4666_s22] sm:$0xff]   ;;  %v1000_v26 = vmul.f32 1e+30, %v2798_v25  ;;  %s3839_s7 = smov 56   ;;  %s3841_s15 = smov 40  }
 0x12a   : > { %2912 = vmatpush3.bf16.msra.mxu1 %v3267_v1  ;;  %v4295_v3 = vld [vmem:[%s989_s1] sm:$0xff]  ;;  %s3840_s1 = smov 64   ;;  %s3842_s30 = smov 48  }
 0x12b   : > { %2913 = vmatprep.subr.bf16.mxu1 %v3830_v0  ;;  %v1005_v4 = vpack.c.bf16 %v4295_v3, %v4295_v3  ;;  %s4601_s3 = smov 8   ;;  %s4600_s2 = smov 16  }
 0x12c   : > { %p4676_p2 = scmp.ne.s32.totalorder %s4644_s24, 0 }
 0x12e   : > { %2914 = vmatpush3.bf16.msra.mxu1 %v3268_v2 }
 0x12f   : > { %2919 = vmatprep.subr.bf16.mxu1 %v3830_v0 }
 0x131   : > { %2916 = vmatmul.mubr.msk.bf16.vlgmr.msra.gmra.mxu1 %vm1029_vm1, %v1005_v4 }
 0x132   : > { %2921 = vmatprep.mubr.msk.bf16.mxu1 %vm3831_vm0, %v3830_v0 }
 0x1f1   : > { %v1067_v6 = vpop.f32.mrf.mxu1 }
 0x1f2   : > { %v1068_v7 = vadd.f32 %v2800_v5, %v1067_v6 }
 0x1f3   : > { %v2917_v8 = vpop.f32.mrf.mxu1 }
 0x1f4   : > { %v4304_v9 = vpack.c.bf16 %v1068_v7, %v1068_v7 }
 0x1f5   : > { %v1070_v10 = vpop.f32.mrf.mxu1 }
 0x1f6   : > { %1186 = vrot.lane.b32.xlu1 %v4304_v9, %s3832_s17  ;;  %1075 = vrot.lane.b32.xlu0 %v4304_v9, %s3833_s21 }
 0x1f7   : > { %v2918_v11 = vpop.f32.mrf.mxu1 }
 0x1fa   : > { %1299 = vrot.lane.b32.xlu1 %v4304_v9, %s3834_s9  ;;  %1188 = vrot.lane.b32.xlu0 %v4304_v9, %s3835_s14 }
 0x1fe   : > { %1410 = vrot.lane.b32.xlu1 %v4304_v9, %s3836_s8  ;;  %1297 = vrot.lane.b32.xlu0 %v4304_v9, %s3837_s11 }
 0x202   : > { %1408 = vrot.lane.b32.xlu0 %v4304_v9, %s3838_s12 }
 0x268   : > { %v1076_v12 = vpop.permute.xlu0 %1075  ;;  %v1187_v15 = vpop.permute.xlu1 %1186 }
 0x269   : > { %v1082_v13 = vsel %vm1077_vm2, %v1076_v12, 0 }
 0x26a   : > { %2920 = vmatpush3.bf16.xpose.msra.mxu1 %v1082_v13 }
 0x26b   : > { %2931 = vmatprep.subr.bf16.mxu1 %v3830_v0 }
 0x26c   : > { %v1189_v14 = vpop.permute.xlu0 %1188  ;;  %v1300_v17 = vpop.permute.xlu1 %1299 }
 0x26d   : > { %v1194_v16 = vsel %vm1077_vm2, %v1189_v14, 0  ;;  %v1305_v18 = vsel %vm1077_vm2, %v1300_v17, 0 }
 0x270   : > { %v1411_v19 = vpop.permute.xlu1 %1410  ;;  %v1298_v20 = vpop.permute.xlu0 %1297 }
 0x271   : > { %2922 = vmatmul.mubr.msk.bf16.vlgmr.msra.gmra.mxu1 %vm1077_vm2, %v4304_v9  ;;  %v1416_v21 = vsel %vm1077_vm2, %v1411_v19, 0 }
 0x272   : > { %2932 = vmatpush3.bf16.xpose.msra.mxu1 %v1194_v16  ;;  %2933 = vmatprep.mubr.msk.bf16.mxu1 %vm3831_vm0, %v3830_v0 }
 0x273   : > { %2943 = vmatprep.subr.bf16.mxu1 %v3830_v0 }
 0x274   : > { %v1409_v22 = vpop.permute.xlu0 %1408 }
 0x279   : > { %2934 = vmatmul.mubr.msk.bf16.vlgmr.msra.gmra.mxu1 %vm1077_vm2, %v1187_v15 }
 0x27a   : > { %2944 = vmatpush3.bf16.xpose.msra.mxu1 %v1305_v18  ;;  %2945 = vmatprep.mubr.msk.bf16.mxu1 %vm3831_vm0, %v3830_v0 }
 0x27b   : > { %2955 = vmatprep.subr.bf16.mxu1 %v3830_v0 }
 0x281   : > { %2946 = vmatmul.mubr.msk.bf16.vlgmr.msra.gmra.mxu1 %vm1077_vm2, %v1298_v20 }
 0x282   : > { %2956 = vmatpush3.bf16.xpose.msra.mxu1 %v1416_v21  ;;  %2957 = vmatprep.mubr.msk.bf16.mxu1 %vm3831_vm0, %v3830_v0 }
 0x283   : > { %2967 = vmatprep.subr.bf16.mxu1 %v3830_v0 }
 0x289   : > { %2958 = vmatmul.mubr.msk.bf16.vlgmr.msra.gmra.mxu1 %vm1077_vm2, %v1409_v22 }
 0x28a   : > { %2971 = vmatprep.mubr.msk.bf16.mxu1 %vm3831_vm0, %v3830_v0 }
 0x331   : > { %v1118_v27 = vpop.f32.mrf.mxu1 }
 0x332   : > { %v1119_v28 = vadd.f32 %v1118_v27, %v1000_v26 }
 0x333   : > { %v2923_v29 = vpop.f32.mrf.mxu1 }
 0x334   : > { %v1124_v30 = vsel %vm1077_vm2, %v1119_v28, -inf }
 0x335   : > { %1125 = vmax.xlane.f32.xlu1 %v1124_v30  ;;  %v1121_v31 = vpop.f32.mrf.mxu1 }
 0x337   : > { %v2924_v32 = vpop.f32.mrf.mxu1 }
 0x339   : > { %v1230_v33 = vpop.f32.mrf.mxu1 }
 0x33a   : > { %v1231_v34 = vadd.f32 %v1230_v33, %v1000_v26 }
 0x33b   : > { %v2935_v35 = vpop.f32.mrf.mxu1 }
 0x33c   : > { %v1236_v36 = vsel %vm1077_vm2, %v1231_v34, -inf }
 0x33d   : > { %1237 = vmax.xlane.f32.xlu0 %v1236_v36  ;;  %v1233_v37 = vpop.f32.mrf.mxu1 }
 0x33f   : > { %v2936_v38 = vpop.f32.mrf.mxu1 }
 0x341   : > { %v1341_v39 = vpop.f32.mrf.mxu1 }
 0x342   : > { %v1342_v40 = vadd.f32 %v1341_v39, %v1000_v26 }
 0x343   : > { %v2947_v41 = vpop.f32.mrf.mxu1 }
 0x344   : > { %v1347_v42 = vsel %vm1077_vm2, %v1342_v40, -inf }
 0x345   : > { %1348 = vmax.xlane.f32.xlu0 %v1347_v42  ;;  %v1344_v43 = vpop.f32.mrf.mxu1  ;;  %v3269_v42 = vld [vmem:[#allocation8 + $0x8] sm:$0xff]  }
 0x346   : > { %2968 = vmatpush3.bf16.msra.mxu1 %v3269_v42  ;;  %v3270_v43 = vld [vmem:[#allocation8] sm:$0xff]  }
 0x347   : > { %v2948_v44 = vpop.f32.mrf.mxu1  ;;  %2969 = vmatprep.subr.bf16.mxu1 %v3830_v0 }
 0x349   : > { %v1452_v45 = vpop.f32.mrf.mxu1 }
 0x34a   : > { %v1453_v46 = vadd.f32 %v1452_v45, %v1000_v26  ;;  %2970 = vmatpush3.bf16.msra.mxu1 %v3270_v43 }
 0x34b   : > { %v2959_v47 = vpop.f32.mrf.mxu1  ;;  %2983 = vmatprep.subr.bf16.mxu1 %v3830_v0 }
 0x34c   : > { %v1458_v48 = vsel %vm1077_vm2, %v1453_v46, -inf }
 0x34d   : > { %1459 = vmax.xlane.f32.xlu1 %v1458_v48  ;;  %v1455_v49 = vpop.f32.mrf.mxu1 }
 0x34f   : > { %v2960_v50 = vpop.f32.mrf.mxu1 }
 0x3be   : > { %v1126_v51 = vpop.xlane.xlu1 %1125 }
 0x3bf   : > { %v1127_v52 = vsub.f32 %v1119_v28, %v1126_v51 }
 0x3c1   : > { %v1128_v53 = vmul.f32 1.442695, %v1127_v52 }
 0x3c3   : > { %3283 = vpow2.f32 %v1128_v53 }
 0x3c6   : > { %v1238_v54 = vpop.xlane.xlu0 %1237 }
 0x3c7   : > { %v1239_v55 = vsub.f32 %v1231_v34, %v1238_v54 }
 0x3c9   : > { %v1240_v56 = vmul.f32 1.442695, %v1239_v55 }
 0x3cb   : > { %3285 = vpow2.f32 %v1240_v56 }
 0x3ce   : > { %v1349_v57 = vpop.xlane.xlu0 %1348 }
 0x3cf   : > { %v1350_v58 = vsub.f32 %v1342_v40, %v1349_v57 }
 0x3d0   : > { %v3284_v59 = vpop.eup %3283 }
 0x3d1   : > { %v1351_v60 = vmul.f32 1.442695, %v1350_v58  ;;  %v1130_v61 = vsel %vm1077_vm2, %v3284_v59, 0.0 }
 0x3d2   : > { %1131 = vadd.xlane.f32.xlu0 %v1130_v61  ;;  %v2812_v61 = vld [vmem:[#allocation10] ss:$0 sm:$0xff] }
 0x3d3   : > { %3287 = vpow2.f32 %v1351_v60 }
 0x3d6   : > { %v1460_v4 = vpop.xlane.xlu1 %1459 }
 0x3d7   : > { %v1461_v5 = vsub.f32 %v1453_v46, %v1460_v4 }
 0x3d8   : > { %v3286_v62 = vpop.eup %3285 }
 0x3d9   : > { %v1242_v63 = vsel %vm1077_vm2, %v3286_v62, 0.0  ;;  %v1462_v6 = vmul.f32 1.442695, %v1461_v5 }
 0x3da   : > { %1243 = vadd.xlane.f32.xlu1 %v1242_v63 }
 0x3db   : > { %3289 = vpow2.f32 %v1462_v6 }
 0x3e0   : > { %v3288_v1 = vpop.eup %3287 }
 0x3e1   : > { %v1353_v2 = vsel %vm1077_vm2, %v3288_v1, 0.0 }
 0x3e2   : > { %1354 = vadd.xlane.f32.xlu0 %v1353_v2 }
 0x3e8   : > { %v3290_v7 = vpop.eup %3289 }
 0x3e9   : > { %v1464_v8 = vsel %vm1077_vm2, %v3290_v7, 0.0 }
 0x3eb   : > { %1248 = vrot.lane.b32.xlu1 %v4304_v9, %s3839_s7  ;;  %s4599_s7 = smov 24  }
 0x3f8   : > { %1136 = vrot.lane.b32.xlu0 %v4304_v9, %s3840_s1 }
 0x3fc   : > { %1470 = vrot.lane.b32.xlu0 %v4304_v9, %s3841_s15 }
 0x40f   : > { %1465 = vadd.xlane.f32.xlu1 %v1464_v8 }
 0x420   : > { %1359 = vrot.lane.b32.xlu1 %v4304_v9, %s3842_s30  ;;  %s4667_s30 = sld [smem:[#allocation38_spill]] }
 0x45b   : > { %v1132_v10 = vpop.xlane.xlu0 %1131 }
 0x45c   : > { %3291 = vrcp.f32 %v1132_v10 }
 0x463   : > { %v1244_v11 = vpop.xlane.xlu1 %1243 }
 0x464   : > { %3293 = vrcp.f32 %v1244_v11 }
 0x467   : > { %v1249_v17 = vpop.permute.xlu1 %1248 }
 0x468   : > { %v1254_v20 = vsel %vm1141_vm3, %v1249_v17, 0  ;;  %v3274_v17 = vld [vmem:[%s4574_s10] sm:$0xff]  }
 0x469   : > { %v3292_v12 = vpop.eup %3291 }
 0x46a   : > { %v1134_v14 = vmul.f32 %v3292_v12, %v3284_v59 }
 0x46b   : > { %v1355_v13 = vpop.xlane.xlu0 %1354 }
 0x46c   : > { %v1135_v18 = vpack.c.bf16 %v1134_v14, %v1134_v14  ;;  %3295 = vrcp.f32 %v1355_v13  ;;  %v3271_v13 = vld [vmem:[#allocation16 + $0x8] sm:$0xff]  }
 0x46f   : > { %v1137_v15 = vpop.permute.xlu0 %1136 }
 0x470   : > { %v1143_v16 = vsel %vm1141_vm3, %v1137_v15, 0 }
 0x471   : > { %2926 = vmatpush3.bf16.msra.mxu0 %v1143_v16  ;;  %v3294_v19 = vpop.eup %3293  ;;  %v3273_v16 = vld [vmem:[%s4574_s10 + $0x8] sm:$0xff]  }
 0x472   : > { %2937 = vmatprep.subr.bf16.mxu0 %v3830_v0  ;;  %v1246_v9 = vmul.f32 %v3294_v19, %v3286_v62 }
 0x473   : > { %v1471_v27 = vpop.permute.xlu0 %1470 }
 0x474   : > { %2928 = vmatmul.mubr.msk.bf16.vlgmr.msra.gmra.mxu0 %vm1077_vm2, %v1135_v18  ;;  %v1247_v21 = vpack.c.bf16 %v1246_v9, %v1246_v9  ;;  %v1476_v29 = vsel %vm1141_vm3, %v1471_v27, 0  ;;  %v2822_v27 = vld [vmem:[#allocation17] ss:$0 sm:$0xff] }
 0x475   : > { %2938 = vmatpush3.bf16.msra.mxu0 %v1254_v20  ;;  %2939 = vmatprep.mubr.msk.bf16.mxu0 %vm3831_vm0, %v3830_v0 }
 0x476   : > { %2949 = vmatprep.subr.bf16.mxu0 %v3830_v0 }
 0x479   : > { %v3296_v22 = vpop.eup %3295 }
 0x47a   : > { %v1357_v24 = vmul.f32 %v3296_v22, %v3288_v1 }
 0x47c   : > { %2940 = vmatmul.mubr.msk.bf16.vlgmr.msra.gmra.mxu0 %vm1077_vm2, %v1247_v21  ;;  %v1358_v28 = vpack.c.bf16 %v1357_v24, %v1357_v24  ;;  %v2816_v21 = vld [vmem:[#allocation11] ss:$0 sm:$0xff] }
 0x47d   : > { %2951 = vmatprep.mubr.msk.bf16.mxu0 %vm3831_vm0, %v3830_v0 }
 0x498   : > { %v1466_v23 = vpop.xlane.xlu1 %1465 }
 0x499   : > { %3297 = vrcp.f32 %v1466_v23  ;;  %v2817_v23 = vld [vmem:[#allocation13] ss:$0 sm:$0xff] }
 0x49c   : > { %v1360_v25 = vpop.permute.xlu1 %1359 }
 0x49d   : > { %v1365_v26 = vsel %vm1141_vm3, %v1360_v25, 0 }
 0x49e   : > { %2950 = vmatpush3.bf16.msra.mxu0 %v1365_v26 }
 0x49f   : > { %2961 = vmatprep.subr.bf16.mxu0 %v3830_v0 }
 0x4a1   : > { %2952 = vmatmul.mubr.msk.bf16.vlgmr.msra.gmra.mxu0 %vm1077_vm2, %v1358_v28 }
 0x4a2   : > { %2962 = vmatpush3.bf16.msra.mxu0 %v1476_v29  ;;  %2963 = vmatprep.mubr.msk.bf16.mxu0 %vm3831_vm0, %v3830_v0 }
 0x4a3   : > { %2975 = vmatprep.subr.bf16.mxu0 %v3830_v0 }
 0x4a6   : > { %v3298_v30 = vpop.eup %3297 }
 0x4a7   : > { %v1468_v31 = vmul.f32 %v3298_v30, %v3290_v7 }
 0x4a9   : > { %v1469_v32 = vpack.c.bf16 %v1468_v31, %v1468_v31 }
 0x4ab   : > { %2964 = vmatmul.mubr.msk.bf16.vlgmr.msra.gmra.mxu0 %vm1077_vm2, %v1469_v32 }
 0x4ac   : > { %2979 = vmatprep.mubr.msk.bf16.mxu0 %vm3831_vm0, %v3830_v0  ;;  %2976 = vmatpush3.bf16.msra.mxu0 %v3273_v16 }
 0x4ad   : > { %2977 = vmatprep.subr.bf16.mxu0 %v3830_v0 }
 0x4b0   : > { %2978 = vmatpush3.bf16.msra.mxu0 %v3274_v17 }
 0x4b1   : > { %2991 = vmatprep.subr.bf16.mxu0 %v3830_v0 }
 0x534   : > { %v1179_v33 = vpop.f32.mrf.mxu0 }
 0x535   : > { %v1185_v55 = vpack.c.bf16 %v1179_v33, %v1179_v33 }
 0x536   : > { %v2929_v34 = vpop.f32.mrf.mxu0 }
 0x538   : > { %v1182_v35 = vpop.f32.mrf.mxu0 }
 0x539   : > { %v2818_v35 = vld [vmem:[#allocation14] ss:$0 sm:$0xff] }
 0x53a   : > { %v2930_v36 = vpop.f32.mrf.mxu0 }
 0x53c   : > { %v1290_v37 = vpop.f32.mrf.mxu0 }
 0x53d   : > { %v1296_v38 = vpack.c.bf16 %v1290_v37, %v1290_v37 }
 0x53e   : > { %v2941_v39 = vpop.f32.mrf.mxu0 }
 0x53f   : > { %1520 = vrot.lane.b32.xlu1 %v1296_v38, %s4601_s3  ;;  %s2853_s3 = sshll.u32 %s3993_s29, 7 }
 0x540   : > { %v1293_v40 = vpop.f32.mrf.mxu0 }
 0x542   : > { %v2942_v41 = vpop.f32.mrf.mxu0 }
 0x561   : > { %v1401_v44 = vpop.f32.mrf.mxu0 }
 0x562   : > { %v1407_v45 = vpack.c.bf16 %v1401_v44, %v1401_v44 }
 0x563   : > { %v2953_v46 = vpop.f32.mrf.mxu0 }
 0x564   : > { %1523 = vrot.lane.b32.xlu0 %v1407_v45, %s4600_s2 }
 0x565   : > { %v1404_v47 = vpop.f32.mrf.mxu0 }
 0x567   : > { %v2954_v48 = vpop.f32.mrf.mxu0 }
 0x56b   : > { %v1512_v49 = vpop.f32.mrf.mxu0 }
 0x56c   : > { %v1518_v50 = vpack.c.bf16 %v1512_v49, %v1512_v49 }
 0x56d   : > { %v2965_v51 = vpop.f32.mrf.mxu0 }
 0x56e   : > { %1526 = vrot.lane.b32.xlu1 %v1518_v50, %s4599_s7  ;;  %s993_s7 = scalar_lea.vmem %s4667_s30, %s2796_s18  ;;  %v1001_v51 = vld [vmem:[%s4239_s0] sm:$0xf]  ;;  %s4668_s0 = smov 8  }
 0x56f   : > { %v1515_v52 = vpop.f32.mrf.mxu0  ;;  %v996_v14 = vld [vmem:[%s993_s7] sm:$0xff]  ;;  %s4671_s30 = sld [smem:[#allocation55_spill]]  ;;  %s2506_s18 = scalar_lea.sflag [#allocation4], %s4228_s16 }
 0x570   : > { %v1700_v15 = vpack.c.bf16 %v996_v14, %v996_v14  ;;  %v1002_v52 = vunpack.c.l.bf16 %v1001_v51 }
 0x571   : > { %v2966_v53 = vpop.f32.mrf.mxu0 }
 0x572   : > { %v2799_v53 = vadd.f32 -1.0, %v1002_v52 }
 0x5b1   : > { %v1521_v54 = vpop.permute.xlu1 %1520 }
 0x5b2   : > { %v1530_v57 = vsel %vm1077_vm2, %v1185_v55, %v1521_v54  ;;  %v1004_v54 = vmul.f32 1e+30, %v2799_v53 }
 0x5d6   : > { %v1524_v56 = vpop.permute.xlu0 %1523 }
 0x5d7   : > { %v1533_v58 = vsel %vm1531_vm4, %v1530_v57, %v1524_v56 }
 0x5e0   : > { %v1527_v59 = vpop.permute.xlu1 %1526 }
 0x5e1   : > { %v1536_v60 = vsel %vm1534_vm5, %v1533_v58, %v1527_v59 }
 0x5e2   : > { %2972 = vmatmul.mubr.msk.bf16.vlgmr.msra.gmra.mxu1 %vm1029_vm1, %v1536_v60 }
 0x5e3   : > { %2987 = vmatprep.mubr.msk.bf16.mxu1 %vm3831_vm0, %v3830_v0  ;;  %2984 = vmatpush3.bf16.msra.mxu1 %v3271_v13 }
 0x5e4   : > { %2985 = vmatprep.subr.bf16.mxu1 %v3830_v0 }
 0x6a2   : > { %v1596_v62 = vpop.f32.mrf.mxu1 }
 0x6a3   : > { %v1597_v63 = vadd.f32 %v2812_v61, %v1596_v62 }
 0x6a4   : > { %v2973_v1 = vpop.f32.mrf.mxu1 }
 0x6a5   : > { %v1602_v2 = vadd.f32 %v1597_v63, %v4295_v3  ;;  %v3272_v3 = vld [vmem:[#allocation16] sm:$0xff]  }
 0x6a6   : > { %v1599_v4 = vpop.f32.mrf.mxu1  ;;  %2986 = vmatpush3.bf16.msra.mxu1 %v3272_v3 }
 0x6a7   : > { %v1603_v5 = vsel %vm1029_vm1, %v1602_v2, 0.0  ;;  %2997 = vmatprep.subr.bf16.mxu1 %v3830_v0 }
 0x6a8   : > { %1604 = vadd.xlane.f32.xlu0 %v1603_v5  ;;  %v2974_v6 = vpop.f32.mrf.mxu1 }
 0x6a9   : > { %2988 = vmatmul.mubr.msk.bf16.vlgmr.msra.gmra.mxu1 %vm1029_vm1, %v1700_v15 }
 0x6aa   : > { %2999 = vmatprep.mubr.msk.bf16.mxu1 %vm3831_vm0, %v3830_v0 }
 0x731   : > { %v1605_v7 = vpop.xlane.xlu0 %1604 }
 0x732   : > { %v1607_v8 = vmul.f32 0.03125, %v1605_v7 }
 0x734   : > { %v1608_v10 = vsub.f32 %v1602_v2, %v1607_v8 }
 0x736   : > { %v1609_v11 = vmul.f32 %v1608_v10, %v1608_v10 }
 0x738   : > { %v1610_v12 = vsel %vm1029_vm1, %v1609_v11, 0.0 }
 0x739   : > { %1611 = vadd.xlane.f32.xlu1 %v1610_v12 }
 0x769   : > { %v1761_v28 = vpop.f32.mrf.mxu1 }
 0x76a   : > { %v1762_v29 = vadd.f32 %v2822_v27, %v1761_v28 }
 0x76b   : > { %v2989_v30 = vpop.f32.mrf.mxu1 }
 0x76c   : > { %v4413_v31 = vpack.c.bf16 %v1762_v29, %v1762_v29 }
 0x76d   : > { %v1764_v32 = vpop.f32.mrf.mxu1 }
 0x76e   : > { %1880 = vrot.lane.b32.xlu0 %v4413_v31, %s3832_s17  ;;  %v1773_v33 = vsel %vm1077_vm2, %v4413_v31, 0 }
 0x76f   : > { %v2990_v34 = vpop.f32.mrf.mxu1 }
 0x772   : > { %1991 = vrot.lane.b32.xlu0 %v4413_v31, %s3837_s11 }
 0x776   : > { %2102 = vrot.lane.b32.xlu0 %v4413_v31, %s3838_s12 }
 0x7c2   : > { %v1612_v18 = vpop.xlane.xlu1 %1611 }
 0x7c3   : > { %v1613_v19 = vmul.f32 0.03125, %v1612_v18 }
 0x7c5   : > { %v1614_v20 = vadd.f32 1e-05, %v1613_v19 }
 0x7c7   : > { %3299 = vrsqrt.f32 %v1614_v20 }
 0x7d4   : > { %v3300_v9 = vpop.eup %3299 }
 0x7d5   : > { %v1616_v22 = vmul.f32 %v3300_v9, %v1608_v10 }
 0x7d7   : > { %v1624_v24 = vmul.f32 %v2816_v21, %v1616_v22 }
 0x7d9   : > { %v4406_v25 = vadd.f32 %v2817_v23, %v1624_v24 }
 0x7db   : > { %v1633_v26 = vpack.c.bf16 %v4406_v25, %v4406_v25 }
 0x7dd   : > { %2980 = vmatmul.mubr.msk.bf16.vlgmr.msra.gmra.mxu0 %vm1029_vm1, %v1633_v26 }
 0x7de   : > { %2993 = vmatprep.mubr.msk.bf16.mxu0 %vm3831_vm0, %v3830_v0  ;;  %2992 = vmatpush3.bf16.xpose.msra.mxu0 %v1773_v33 }
 0x7df   : > { %3003 = vmatprep.subr.bf16.mxu0 %v3830_v0 }
 0x7e0   : > { %v1881_v39 = vpop.permute.xlu0 %1880 }
 0x7e1   : > { %v1886_v41 = vsel %vm1077_vm2, %v1881_v39, 0 }
 0x7e4   : > { %v1992_v44 = vpop.permute.xlu0 %1991 }
 0x7e5   : > { %v1997_v46 = vsel %vm1077_vm2, %v1992_v44, 0 }
 0x7e8   : > { %v2103_v47 = vpop.permute.xlu0 %2102 }
 0x7e9   : > { %v2108_v49 = vsel %vm1077_vm2, %v2103_v47, 0 }
 0x89d   : > { %v1694_v36 = vpop.f32.mrf.mxu0 }
 0x89e   : > { %v1695_v37 = vadd.f32 %v2818_v35, %v1694_v36 }
 0x89f   : > { %v2981_v38 = vpop.f32.mrf.mxu0 }
 0x8a0   : > { %v1767_v40 = vpack.c.bf16 %v1695_v37, %v1695_v37 }
 0x8a1   : > { %v1697_v42 = vpop.f32.mrf.mxu0 }
 0x8a2   : > { %1878 = vrot.lane.b32.xlu1 %v1767_v40, %s3832_s17  ;;  %2994 = vmatmul.mubr.msk.bf16.vlgmr.msra.gmra.mxu0 %vm1077_vm2, %v1767_v40  ;;  %s4669_s17 = smov 16  }
 0x8a3   : > { %v2982_v43 = vpop.f32.mrf.mxu0  ;;  %3004 = vmatpush3.bf16.xpose.msra.mxu0 %v1886_v41  ;;  %3005 = vmatprep.mubr.msk.bf16.mxu0 %vm3831_vm0, %v3830_v0 }
 0x8a4   : > { %3015 = vmatprep.subr.bf16.mxu0 %v3830_v0 }
 0x8a6   : > { %1989 = vrot.lane.b32.xlu1 %v1767_v40, %s3837_s11 }
 0x8aa   : > { %2100 = vrot.lane.b32.xlu1 %v1767_v40, %s3838_s12  ;;  %s4674_s12 = sld [smem:[#allocation58_spill]] }
 0x914   : > { %v1879_v45 = vpop.permute.xlu1 %1878 }
 0x915   : > { %3006 = vmatmul.mubr.msk.bf16.vlgmr.msra.gmra.mxu0 %vm1077_vm2, %v1879_v45 }
 0x916   : > { %3016 = vmatpush3.bf16.xpose.msra.mxu0 %v1997_v46  ;;  %3017 = vmatprep.mubr.msk.bf16.mxu0 %vm3831_vm0, %v3830_v0 }
 0x917   : > { %3027 = vmatprep.subr.bf16.mxu0 %v3830_v0 }
 0x918   : > { %v1990_v48 = vpop.permute.xlu1 %1989 }
 0x91c   : > { %v2101_v50 = vpop.permute.xlu1 %2100 }
 0x91d   : > { %3018 = vmatmul.mubr.msk.bf16.vlgmr.msra.gmra.mxu0 %vm1077_vm2, %v1990_v48 }
 0x91e   : > { %3028 = vmatpush3.bf16.xpose.msra.mxu0 %v2108_v49  ;;  %3029 = vmatprep.mubr.msk.bf16.mxu0 %vm3831_vm0, %v3830_v0 }
 0x91f   : > { %3039 = vmatprep.subr.bf16.mxu0 %v3830_v0 }
 0x925   : > { %3030 = vmatmul.mubr.msk.bf16.vlgmr.msra.gmra.mxu0 %vm1077_vm2, %v2101_v50 }
 0x926   : > { %3043 = vmatprep.mubr.msk.bf16.mxu0 %vm3831_vm0, %v3830_v0 }
 0x962   : > { %v1809_v55 = vpop.f32.mrf.mxu0 }
 0x963   : > { %v1810_v56 = vadd.f32 %v1809_v55, %v1004_v54 }
 0x964   : > { %v2995_v57 = vpop.f32.mrf.mxu0 }
 0x965   : > { %v1815_v58 = vsel %vm1077_vm2, %v1810_v56, -inf }
 0x966   : > { %1816 = vmax.xlane.f32.xlu0 %v1815_v58  ;;  %v1812_v59 = vpop.f32.mrf.mxu0 }
 0x968   : > { %v2996_v60 = vpop.f32.mrf.mxu0 }
 0x9d5   : > { %v1922_v61 = vpop.f32.mrf.mxu0 }
 0x9d6   : > { %v1923_v62 = vadd.f32 %v1922_v61, %v1004_v54 }
 0x9d7   : > { %v3007_v63 = vpop.f32.mrf.mxu0 }
 0x9d8   : > { %v1928_v1 = vsel %vm1077_vm2, %v1923_v62, -inf }
 0x9d9   : > { %1929 = vmax.xlane.f32.xlu1 %v1928_v1  ;;  %v1925_v2 = vpop.f32.mrf.mxu0 }
 0x9da   : > { %v3275_v2 = vld [vmem:[#allocation19 + $0x8] sm:$0xff]  }
 0x9db   : > { %v3008_v4 = vpop.f32.mrf.mxu0  ;;  %3040 = vmatpush3.bf16.msra.mxu0 %v3275_v2 }
 0x9dc   : > { %3041 = vmatprep.subr.bf16.mxu0 %v3830_v0 }
 0x9dd   : > { %v2033_v5 = vpop.f32.mrf.mxu0 }
 0x9de   : > { %v2034_v6 = vadd.f32 %v2033_v5, %v1004_v54  ;;  %v3276_v5 = vld [vmem:[#allocation19] sm:$0xff]  }
 0x9df   : > { %v3019_v7 = vpop.f32.mrf.mxu0  ;;  %3042 = vmatpush3.bf16.msra.mxu0 %v3276_v5 }
 0x9e0   : > { %v2039_v8 = vsel %vm1077_vm2, %v2034_v6, -inf  ;;  %3055 = vmatprep.subr.bf16.mxu0 %v3830_v0 }
 0x9e1   : > { %2040 = vmax.xlane.f32.xlu0 %v2039_v8  ;;  %v2036_v10 = vpop.f32.mrf.mxu0 }
 0x9e3   : > { %v3020_v11 = vpop.f32.mrf.mxu0 }
 0x9e5   : > { %v2144_v12 = vpop.f32.mrf.mxu0 }
 0x9e6   : > { %v2145_v13 = vadd.f32 %v2144_v12, %v1004_v54 }
 0x9e7   : > { %v3031_v3 = vpop.f32.mrf.mxu0 }
 0x9e8   : > { %v2150_v14 = vsel %vm1077_vm2, %v2145_v13, -inf }
 0x9e9   : > { %2151 = vmax.xlane.f32.xlu0 %v2150_v14  ;;  %v2147_v15 = vpop.f32.mrf.mxu0 }
 0x9eb   : > { %v3032_v16 = vpop.f32.mrf.mxu0 }
 0x9ef   : > { %v1817_v17 = vpop.xlane.xlu0 %1816 }
 0x9f0   : > { %v1818_v18 = vsub.f32 %v1810_v56, %v1817_v17 }
 0x9f2   : > { %v1819_v19 = vmul.f32 1.442695, %v1818_v18 }
 0x9f4   : > { %3301 = vpow2.f32 %v1819_v19 }
 0xa01   : > { %v3302_v20 = vpop.eup %3301 }
 0xa02   : > { %v1821_v9 = vsel %vm1077_vm2, %v3302_v20, 0.0 }
 0xa03   : > { %1822 = vadd.xlane.f32.xlu1 %v1821_v9 }
 0xa14   : > { %1828 = vrot.lane.b32.xlu1 %v4413_v31, %s3833_s21  ;;  %s4670_s21 = smov 24  }
 0xa62   : > { %v1930_v21 = vpop.xlane.xlu1 %1929 }
 0xa63   : > { %v1931_v22 = vsub.f32 %v1923_v62, %v1930_v21 }
 0xa65   : > { %v1932_v23 = vmul.f32 1.442695, %v1931_v22 }
 0xa67   : > { %3303 = vpow2.f32 %v1932_v23 }
 0xa6a   : > { %v2041_v24 = vpop.xlane.xlu0 %2040 }
 0xa6b   : > { %v2042_v26 = vsub.f32 %v2034_v6, %v2041_v24 }
 0xa6d   : > { %v2043_v27 = vmul.f32 1.442695, %v2042_v26 }
 0xa6f   : > { %3305 = vpow2.f32 %v2043_v27  ;;  %v2834_v27 = vld [vmem:[#allocation20] ss:$0 sm:$0xff] }
 0xa72   : > { %v2152_v28 = vpop.xlane.xlu0 %2151 }
 0xa73   : > { %v2153_v29 = vsub.f32 %v2145_v13, %v2152_v28 }
 0xa74   : > { %v3304_v30 = vpop.eup %3303 }
 0xa75   : > { %v2154_v32 = vmul.f32 1.442695, %v2153_v29  ;;  %v1934_v33 = vsel %vm1077_vm2, %v3304_v30, 0.0 }
 0xa76   : > { %1935 = vadd.xlane.f32.xlu0 %v1934_v33 }
 0xa77   : > { %3307 = vpow2.f32 %v2154_v32 }
 0xa7c   : > { %v3306_v34 = vpop.eup %3305 }
 0xa7d   : > { %v2045_v35 = vsel %vm1077_vm2, %v3306_v34, 0.0 }
 0xa7e   : > { %2046 = vadd.xlane.f32.xlu1 %v2045_v35 }
 0xa84   : > { %v3308_v36 = vpop.eup %3307 }
 0xa85   : > { %v2156_v37 = vsel %vm1077_vm2, %v3308_v36, 0.0 }
 0xa86   : > { %2157 = vadd.xlane.f32.xlu0 %v2156_v37 }
 0xa8c   : > { %v1823_v38 = vpop.xlane.xlu1 %1822 }
 0xa8d   : > { %3309 = vrcp.f32 %v1823_v38 }
 0xa8f   : > { %2051 = vrot.lane.b32.xlu1 %v4413_v31, %s3834_s9 }
 0xa90   : > { %v1829_v39 = vpop.permute.xlu1 %1828 }
 0xa91   : > { %v1834_v40 = vsel %vm1141_vm3, %v1829_v39, 0 }
 0xa92   : > { %2998 = vmatpush3.bf16.msra.mxu1 %v1834_v40 }
 0xa93   : > { %2162 = vrot.lane.b32.xlu1 %v4413_v31, %s3836_s8  ;;  %3009 = vmatprep.subr.bf16.mxu1 %v3830_v0 }
 0xa9a   : > { %v3310_v41 = vpop.eup %3309 }
 0xa9b   : > { %v1825_v42 = vmul.f32 %v3310_v41, %v3302_v20  ;;  %v3277_v41 = vld [vmem:[#allocation25 + $0x8] sm:$0xff]  }
 0xa9c   : > { %1940 = vrot.lane.b32.xlu0 %v4413_v31, %s3835_s14  ;;  %s4673_s14 = sld [smem:[#allocation57_spill]] }
 0xa9d   : > { %v1826_v43 = vpack.c.bf16 %v1825_v42, %v1825_v42  ;;  %v3278_v42 = vld [vmem:[#allocation25] sm:$0xff]  }
 0xa9f   : > { %3000 = vmatmul.mubr.msk.bf16.vlgmr.msra.gmra.mxu1 %vm1077_vm2, %v1826_v43  ;;  %v3280_v43 = vld [vmem:[%s4584_s20 + $0x10] sm:$0xff]  }
 0xaa0   : > { %3011 = vmatprep.mubr.msk.bf16.mxu1 %vm3831_vm0, %v3830_v0 }
 0xaff   : > { %v1936_v44 = vpop.xlane.xlu0 %1935 }
 0xb00   : > { %3311 = vrcp.f32 %v1936_v44 }
 0xb07   : > { %v2047_v45 = vpop.xlane.xlu1 %2046 }
 0xb08   : > { %3313 = vrcp.f32 %v2047_v45 }
 0xb0b   : > { %v2052_v51 = vpop.permute.xlu1 %2051 }
 0xb0c   : > { %v2057_v53 = vsel %vm1141_vm3, %v2052_v51, 0 }
 0xb0d   : > { %v3312_v46 = vpop.eup %3311 }
 0xb0e   : > { %v1938_v48 = vmul.f32 %v3312_v46, %v3304_v30 }
 0xb0f   : > { %v2158_v47 = vpop.xlane.xlu0 %2157  ;;  %v2163_v55 = vpop.permute.xlu1 %2162 }
 0xb10   : > { %3315 = vrcp.f32 %v2158_v47  ;;  %v1939_v31 = vpack.c.bf16 %v1938_v48, %v1938_v48  ;;  %v2168_v58 = vsel %vm1141_vm3, %v2163_v55, 0  ;;  %v2838_v48 = vld [vmem:[#allocation22] ss:$0 sm:$0xff]  ;;  %v2840_v55 = vld [vmem:[%s4671_s30] ss:$0 sm:$0xff]  ;;  %s4675_s30 = sld [smem:[#allocation59_spill]] }
 0xb13   : > { %v1941_v49 = vpop.permute.xlu0 %1940 }
 0xb14   : > { %v1946_v50 = vsel %vm1141_vm3, %v1941_v49, 0 }
 0xb15   : > { %3010 = vmatpush3.bf16.msra.mxu1 %v1946_v50  ;;  %v3314_v52 = vpop.eup %3313  ;;  %v2839_v50 = vld [vmem:[#allocation23] ss:$0 sm:$0xff] }
 0xb16   : > { %3021 = vmatprep.subr.bf16.mxu1 %v3830_v0  ;;  %v2049_v54 = vmul.f32 %v3314_v52, %v3306_v34  ;;  %s2517_s25 = scalar_lea.hbm %s4675_s30, %s2853_s3 }
 0xb18   : > { %3012 = vmatmul.mubr.msk.bf16.vlgmr.msra.gmra.mxu1 %vm1077_vm2, %v1939_v31  ;;  %v2050_v56 = vpack.c.bf16 %v2049_v54, %v2049_v54  ;;  %v3282_v54 = vld [vmem:[%s4584_s20] sm:$0xff]  }
 0xb19   : > { %3022 = vmatpush3.bf16.msra.mxu1 %v2057_v53  ;;  %3023 = vmatprep.mubr.msk.bf16.mxu1 %vm3831_vm0, %v3830_v0  ;;  %v3281_v53 = vld [vmem:[%s4584_s20 + $0x8] sm:$0xff]  }
 0xb1a   : > { %3033 = vmatprep.subr.bf16.mxu1 %v3830_v0 }
 0xb1d   : > { %v3316_v57 = vpop.eup %3315 }
 0xb1e   : > { %v2160_v59 = vmul.f32 %v3316_v57, %v3308_v36 }
 0xb20   : > { %3024 = vmatmul.mubr.msk.bf16.vlgmr.msra.gmra.mxu1 %vm1077_vm2, %v2050_v56  ;;  %v2161_v60 = vpack.c.bf16 %v2160_v59, %v2160_v59 }
 0xb21   : > { %3034 = vmatpush3.bf16.msra.mxu1 %v2168_v58  ;;  %3035 = vmatprep.mubr.msk.bf16.mxu1 %vm3831_vm0, %v3830_v0 }
 0xb22   : > { %3047 = vmatprep.subr.bf16.mxu1 %v3830_v0 }
 0xb28   : > { %3036 = vmatmul.mubr.msk.bf16.vlgmr.msra.gmra.mxu1 %vm1077_vm2, %v2161_v60 }
 0xb29   : > { %3051 = vmatprep.mubr.msk.bf16.mxu1 %vm3831_vm0, %v3830_v0  ;;  %3048 = vmatpush3.bf16.msra.mxu1 %v3277_v41 }
 0xb2a   : > { %3049 = vmatprep.subr.bf16.mxu1 %v3830_v0 }
 0xb2d   : > { %3050 = vmatpush3.bf16.msra.mxu1 %v3278_v42 }
 0xb5f   : > { %v1870_v61 = vpop.f32.mrf.mxu1 }
 0xb60   : > { %v1876_v9 = vpack.c.bf16 %v1870_v61, %v1870_v61 }
 0xb61   : > { %v3001_v62 = vpop.f32.mrf.mxu1 }
 0xb63   : > { %v1873_v63 = vpop.f32.mrf.mxu1 }
 0xb65   : > { %v3002_v1 = vpop.f32.mrf.mxu1 }
 0xbd8   : > { %v1982_v4 = vpop.f32.mrf.mxu1 }
 0xbd9   : > { %v1988_v6 = vpack.c.bf16 %v1982_v4, %v1982_v4 }
 0xbda   : > { %v3013_v7 = vpop.f32.mrf.mxu1 }
 0xbdb   : > { %2212 = vrot.lane.b32.xlu0 %v1988_v6, %s4668_s0  ;;  %s4672_s0 = sld [smem:[#allocation56_spill]] }
 0xbdc   : > { %v1985_v8 = vpop.f32.mrf.mxu1 }
 0xbde   : > { %v3014_v10 = vpop.f32.mrf.mxu1 }
 0xbe0   : > { %v2093_v11 = vpop.f32.mrf.mxu1 }
 0xbe1   : > { %v2099_v12 = vpack.c.bf16 %v2093_v11, %v2093_v11 }
 0xbe2   : > { %v3025_v13 = vpop.f32.mrf.mxu1 }
 0xbe3   : > { %2215 = vrot.lane.b32.xlu1 %v2099_v12, %s4669_s17  ;;  %s2795_s17 = sshll.u32 %s4228_s16, 3 }
 0xbe4   : > { %v2096_v3 = vpop.f32.mrf.mxu1  ;;  %s985_s2 = scalar_lea.vmem [#allocation26], %s2795_s17 }
 0xbe5   : > { %s2519_s7 = sshll.u32 %s985_s2, 4  ;;  %s2520_s7 = int_to_ptr.vmem [resolvable:$true] %s2519_s7 }
 0xbe6   : > { %v3026_v14 = vpop.f32.mrf.mxu1 }
 0xbe8   : > { %v2204_v15 = vpop.f32.mrf.mxu1 }
 0xbe9   : > { %v2210_v16 = vpack.c.bf16 %v2204_v15, %v2204_v15 }
 0xbea   : > { %v3037_v17 = vpop.f32.mrf.mxu1 }
 0xbeb   : > { %2218 = vrot.lane.b32.xlu0 %v2210_v16, %s4670_s21  ;;  %v2850_v17 = vld [vmem:[%s4673_s14] ss:$0 sm:$0xff]  ;;  %s3846_s21 = smov [#allocation26]  }
 0xbec   : > { %v2207_v18 = vpop.f32.mrf.mxu1  ;;  %s3719_s9 = sshll.u32 %s3846_s21, 4  ;;  %s3720_s9 = int_to_ptr.vmem [resolvable:$false] %s3719_s9 }
 0xbed   : > { %s3721_s29 = scalar_lea.vmem %s3720_s9, 256  ;;  %p3722_p4 = scmp.lt.s32.totalorder %s2520_s7, %s3720_s9 }
 0xbee   : > { %v3038_v19 = vpop.f32.mrf.mxu1 }
 0xbef   : > { %v2851_v19 = vld [vmem:[%s4674_s12] ss:$0 sm:$0xff] }
 0xc4d   : > { %v2213_v20 = vpop.permute.xlu0 %2212 }
 0xc4e   : > { %v2222_v22 = vsel %vm1077_vm2, %v1876_v9, %v2213_v20 }
 0xc55   : > { %v2216_v21 = vpop.permute.xlu1 %2215 }
 0xc56   : > { %v2224_v23 = vsel %vm1531_vm4, %v2222_v22, %v2216_v21 }
 0xc5d   : > { %v2219_v24 = vpop.permute.xlu0 %2218 }
 0xc5e   : > { %v2226_v26 = vsel %vm1534_vm5, %v2224_v23, %v2219_v24 }
 0xc5f   : > { %3044 = vmatmul.mubr.msk.bf16.vlgmr.msra.gmra.mxu0 %vm1029_vm1, %v2226_v26 }
 0xc60   : > { %3063 = vmatprep.mubr.msk.bf16.mxu0 %vm3831_vm0, %v3830_v0 }
 0xd1f   : > { %v2286_v28 = vpop.f32.mrf.mxu0 }
 0xd20   : > { %v2287_v29 = vadd.f32 %v2834_v27, %v2286_v28 }
 0xd21   : > { %v3045_v30 = vpop.f32.mrf.mxu0 }
 0xd22   : > { %v2292_v32 = vadd.f32 %v2287_v29, %v4406_v25  ;;  %v3279_v25 = vld [vmem:[%s4584_s20 + $0x18] sm:$0xff]  }
 0xd23   : > { %v2289_v33 = vpop.f32.mrf.mxu0  ;;  %3056 = vmatpush3.bf16.msra.mxu0 %v3279_v25 }
 0xd24   : > { %v2293_v34 = vsel %vm1029_vm1, %v2292_v32, 0.0  ;;  %3057 = vmatprep.subr.bf16.mxu0 %v3830_v0 }
 0xd25   : > { %2294 = vadd.xlane.f32.xlu1 %v2293_v34  ;;  %v3046_v35 = vpop.f32.mrf.mxu0 }
 0xd27   : > { %3058 = vmatpush3.bf16.msra.mxu0 %v3280_v43 }
 0xd28   : > { %3059 = vmatprep.subr.bf16.mxu0 %v3830_v0 }
 0xd2b   : > { %3060 = vmatpush3.bf16.msra.mxu0 %v3281_v53 }
 0xd2c   : > { %3061 = vmatprep.subr.bf16.mxu0 %v3830_v0  ;;  %v2844_v0 = vld [vmem:[%s4672_s0] ss:$0 sm:$0xff]  ;;  %s3715_s0 = scalar_lea.vmem %s2520_s7, 128 }
 0xd2d   : > { %p3716_p10 = scmp.ne.s32.totalorder %s2520_s7, %s3715_s0  ;;  %p3723_p8 = scmp.lt.s32.totalorder %s3721_s29, %s3715_s0 }
 0xd2f   : > { %3062 = vmatpush3.bf16.msra.mxu0 %v3282_v54  ;;  %p3717_p1 = pnand %p3716_p10, %p4676_p2  ;;  %p3724_p11 = por %p3723_p8, %p3722_p4 }
 0xd31   : > { %p3718_p5 = pneg %p3717_p1 }
 0xd33   : > { %p3725_p0 = pnand %p3724_p11, %p3718_p5 }
 0xdae   : > { %v2295_v36 = vpop.xlane.xlu1 %2294 }
 0xdaf   : > { %v2296_v37 = vmul.f32 0.03125, %v2295_v36 }
 0xdb1   : > { %v2297_v38 = vsub.f32 %v2292_v32, %v2296_v37 }
 0xdb3   : > { %v2298_v39 = vmul.f32 %v2297_v38, %v2297_v38 }
 0xdb5   : > { %v2299_v40 = vsel %vm1029_vm1, %v2298_v39, 0.0 }
 0xdb6   : > { %2300 = vadd.xlane.f32.xlu0 %v2299_v40 }
 0xe3f   : > { %v2301_v44 = vpop.xlane.xlu0 %2300 }
 0xe40   : > { %v2302_v45 = vmul.f32 0.03125, %v2301_v44 }
 0xe42   : > { %v2303_v46 = vadd.f32 1e-05, %v2302_v45 }
 0xe44   : > { %3317 = vrsqrt.f32 %v2303_v46 }
 0xe51   : > { %v3318_v47 = vpop.eup %3317 }
 0xe52   : > { %v2305_v49 = vmul.f32 %v3318_v47, %v2297_v38 }
 0xe54   : > { %v2313_v51 = vmul.f32 %v2838_v48, %v2305_v49 }
 0xe56   : > { %v2321_v31 = vadd.f32 %v2839_v50, %v2313_v51 }
 0xe58   : > { %v2322_v52 = vpack.c.bf16 %v2321_v31, %v2321_v31 }
 0xe5a   : > { %3052 = vmatmul.mubr.msk.bf16.vlgmr.msra.gmra.mxu1 %vm1029_vm1, %v2322_v52 }
 0xf1a   : > { %v2383_v56 = vpop.f32.mrf.mxu1 }
 0xf1b   : > { %v2384_v57 = vadd.f32 %v2840_v55, %v2383_v56 }
 0xf1c   : > { %v3053_v58 = vpop.f32.mrf.mxu1 }
 0xf1d   : > { %v2389_v59 = vmax.f32 %v2384_v57, 0.0 }
 0xf1e   : > { %v2386_v60 = vpop.f32.mrf.mxu1 }
 0xf1f   : > { %v2390_v61 = vpack.c.bf16 %v2389_v59, %v2389_v59 }
 0xf20   : > { %v3054_v62 = vpop.f32.mrf.mxu1 }
 0xf21   : > { %3064 = vmatmul.mubr.msk.bf16.vlgmr.msra.gmra.mxu0 %vm2430_vm6, %v2390_v61 }
 0xfe1   : > { %v2468_v63 = vpop.f32.mrf.mxu0 }
 0xfe2   : > { %v2469_v1 = vadd.f32 %v2844_v0, %v2468_v63 }
 0xfe3   : > { %v3065_v2 = vpop.f32.mrf.mxu0 }
 0xfe4   : > { %v2474_v4 = vadd.f32 %v2469_v1, %v2321_v31 }
 0xfe5   : > { %v2471_v5 = vpop.f32.mrf.mxu0 }
 0xfe6   : > { %v2475_v6 = vsel %vm1029_vm1, %v2474_v4, 0.0 }
 0xfe7   : > { %2476 = vadd.xlane.f32.xlu0 %v2475_v6  ;;  %v3066_v7 = vpop.f32.mrf.mxu0 }
0x1070   : > { %v2477_v8 = vpop.xlane.xlu0 %2476 }
0x1071   : > { %v2478_v10 = vmul.f32 0.03125, %v2477_v8 }
0x1073   : > { %v2479_v11 = vsub.f32 %v2474_v4, %v2478_v10 }
0x1075   : > { %v2480_v12 = vmul.f32 %v2479_v11, %v2479_v11 }
0x1077   : > { %v2481_v13 = vsel %vm1029_vm1, %v2480_v12, 0.0 }
0x1078   : > { %2482 = vadd.xlane.f32.xlu1 %v2481_v13 }
0x1101   : > { %v2483_v3 = vpop.xlane.xlu1 %2482 }
0x1102   : > { %v2484_v14 = vmul.f32 0.03125, %v2483_v3 }
0x1104   : > { %v2485_v15 = vadd.f32 1e-05, %v2484_v14 }
0x1106   : > { %3319 = vrsqrt.f32 %v2485_v15 }
0x1113   : > { %v3320_v16 = vpop.eup %3319 }
0x1114   : > { %v2487_v18 = vmul.f32 %v3320_v16, %v2479_v11 }
0x1116   : > { %v2495_v20 = vmul.f32 %v2850_v17, %v2487_v18 }
0x1118   : > { %v2503_v9 = vadd.f32 %v2851_v19, %v2495_v20 }
0x111a   : > { %2504 = vst.msk [vmem:[%s985_s2] sm:$0xff] %vm1029_vm1, %v2503_v9 }
0x111b   : > { %3728 = shalt.err (!%p3725_p0)
}
0x111c   : > { %s3729_s17 = scalar_lea.hbm %s2517_s25, 128  ;;  %s3733_s8 = scalar_lea.hbm %s4675_s30, 256 }
0x111d   : > { %p3730_p7 = scmp.ne.s32.totalorder %s2517_s25, %s3729_s17  ;;  %p3734_p6 = scmp.lt.s32.totalorder %s2517_s25, %s4675_s30 }
0x111e   : > { %p3735_p3 = scmp.lt.s32.totalorder %s3733_s8, %s3729_s17 }
0x111f   : > { %p3731_p13 = pnand %p3730_p7, %p4676_p2 }
0x1120   : > { %p3736_p12 = por %p3735_p3, %p3734_p6 }
0x1121   : > { %p3732_p9 = pneg %p3731_p13 }
0x1123   : > { %p3737_p10 = pnand %p3736_p12, %p3732_p9 }
0x1125   : > { %3740 = shalt.err (!%p3737_p10)
}
0x1126   : > { %3123 = dma.vmem_to_hbm [thread:$0]  (%p4676_p2), %s2520_s7, 128, %s2517_s25, %s2506_s18  }
0x1127 PF: > { %s2531_s3 = sand.u32 1, %s3799_s5   ;;  %p4677_p1 = scmp.ne.s32.totalorder %s4645_s23, 0 }
0x1128   : > { %p4678_p5 = scmp.ge.s32.totalorder %s3811_s28, 2  ;;  %s2532_s2 = scalar_lea.sflag [#allocation4], %s2531_s3 }
0x112a   : > { %p3173_p4 = pnand %p4678_p5, %p4677_p1 }
0x112c   : > { %p3174_p8 = pneg %p3173_p4 }
0x112e   : > { %3794 = dma.done.wait (%p3174_p8), %s2532_s2, 128  }
0x112f   : > { %3796 = vsyncadd (%p3174_p8), %s2532_s2, 4294967168  ;;  %p46_p11 = scmp.ge.s32.totalorder %s4137_s4, 4   ;;  %s4679_s5 = smov %s3803_s26 }
0x1130   : > { %s4680_s26 = smov %s3807_s27  ;;  %s4681_s27 = smov %s4149_s19 }
0x1131   : > { %s4682_s28 = smov %s4137_s4  ;;  %48 = sbr.rel (!%p46_p11) target bundleno = 37 (0x25), region = 232 }
0x1136   :  { %2537 = vsyncpa [#allocation3], 1 }
0x1137   :  { %2539 = vsyncpa [#allocation3 + $0x1], 1 }
0x1138   :  { %2540 = vsyncpa [#allocation6], 1 }
0x1139   :  { %2542 = vsyncpa [#allocation6 + $0x1], 1 }
0x113a   :  { %2543 = vsyncpa [#allocation9], 1 }
0x113b   :  { %2544 = vsyncpa [#allocation12], 1 }
0x113c   :  { %2545 = vsyncpa [#allocation15], 1 }
0x113d   :  { %2546 = vsyncpa [#allocation18], 1 }
0x113e   :  { %2547 = vsyncpa [#allocation21], 1 }
0x113f   :  { %2548 = vsyncpa [#allocation24], 1 }
0x1140   :  { %2549 = vsyncpa [#allocation4], 1 }
0x1141   :  { %2551 = vsyncpa [#allocation4 + $0x1], 1 }

// kernel: tpu_custom_call.1
= control target key start
LH: loop header
LB: loop body
LE: loop exit
PB: predicated region body
PF: predicated region fallthrough
CT: control target
= control target key end

     0   :  { %s4564_s0 = inlined_call_operand.vmem [shape: f32[2,8,32], index: 0, kind: input, shape index: {}]   ;;  %s4565_s1 = inlined_call_operand.vmem [shape: f32[2,8,32], index: 1, kind: input, shape index: {}]   ;;  %s4566_s2 = inlined_call_operand.hbm [shape: bf16[2,8,8], index: 2, kind: input, shape index: {}]   ;;  %s4567_s3 = inlined_call_operand.hbm [shape: bf16[2,8,8], index: 3, kind: input, shape index: {}]   ;;  %s4568_s4 = inlined_call_operand.vmem [shape: bf16[32,96], index: 4, kind: input, shape index: {}]   ;;  %s4569_s5 = inlined_call_operand.hbm [shape: f32[1,96], index: 5, kind: input, shape index: {}]   ;;  %s4570_s6 = inlined_call_operand.hbm [shape: bf16[32,32], index: 6, kind: input, shape index: {}]   ;;  %s4571_s7 = inlined_call_operand.hbm [shape: f32[1,32], index: 7, kind: input, shape index: {}]   ;;  %s4572_s8 = inlined_call_operand.hbm [shape: f32[1,32], index: 8, kind: input, shape index: {}]   ;;  %s4573_s9 = inlined_call_operand.hbm [shape: f32[1,32], index: 9, kind: input, shape index: {}]   ;;  %s4574_s10 = inlined_call_operand.vmem [shape: bf16[32,32], index: 10, kind: input, shape index: {}]   ;;  %s4575_s11 = inlined_call_operand.hbm [shape: f32[1,32], index: 11, kind: input, shape index: {}]   ;;  %s4576_s12 = inlined_call_operand.hbm [shape: bf16[32,64], index: 12, kind: input, shape index: {}]   ;;  %s4577_s13 = inlined_call_operand.hbm [shape: f32[1,64], index: 13, kind: input, shape index: {}]   ;;  %s4578_s14 = inlined_call_operand.hbm [shape: bf16[32,32], index: 14, kind: input, shape index: {}]   ;;  %s4579_s15 = inlined_call_operand.hbm [shape: f32[1,32], index: 15, kind: input, shape index: {}]   ;;  %s4580_s16 = inlined_call_operand.hbm [shape: f32[1,32], index: 16, kind: input, shape index: {}]   ;;  %s4581_s17 = inlined_call_operand.hbm [shape: f32[1,32], index: 17, kind: input, shape index: {}]   ;;  %s4582_s18 = inlined_call_operand.hbm [shape: bf16[32,64], index: 18, kind: input, shape index: {}]   ;;  %s4583_s19 = inlined_call_operand.vmem [shape: f32[1,64], index: 19, kind: input, shape index: {}]   ;;  %s4584_s20 = inlined_call_operand.vmem [shape: bf16[64,32], index: 20, kind: input, shape index: {}]   ;;  %s4585_s21 = inlined_call_operand.vmem [shape: f32[1,32], index: 21, kind: input, shape index: {}]   ;;  %s4586_s22 = inlined_call_operand.vmem [shape: f32[1,32], index: 22, kind: input, shape index: {}]   ;;  %s4587_s23 = inlined_call_operand.vmem [shape: f32[1,32], index: 23, kind: input, shape index: {}]   ;;  %s4588_s24 = inlined_call_operand.hbm [shape: f32[2,8,32], index: 24, kind: output, shape index: {}]  }
   0x1   :  { %4602 = sst [smem:[#allocation37_spill]] %s4564_s0 }
   0x2   :  { %4603 = sst [smem:[#allocation38_spill]] %s4565_s1 }
   0x3   :  { %4604 = sst [smem:[#allocation39_spill]] %s4566_s2 }
   0x4   :  { %4605 = sst [smem:[#allocation40_spill]] %s4567_s3 }
   0x5   :  { %4606 = sst [smem:[#allocation41_spill]] %s4568_s4 }
   0x6   :  { %4607 = sst [smem:[#allocation42_spill]] %s4569_s5 }
   0x7   :  { %4608 = sst [smem:[#allocation43_spill]] %s4570_s6 }
   0x8   :  { %4609 = sst [smem:[#allocation44_spill]] %s4571_s7 }
   0x9   :  { %4610 = sst [smem:[#allocation45_spill]] %s4572_s8 }
   0xa   :  { %4611 = sst [smem:[#allocation46_spill]] %s4573_s9 }
   0xb   :  { %4612 = sst [smem:[#allocation47_spill]] %s4575_s11 }
   0xc   :  { %4613 = sst [smem:[#allocation48_spill]] %s4576_s12 }
   0xd   :  { %4614 = sst [smem:[#allocation49_spill]] %s4577_s13 }
   0xe   :  { %4615 = sst [smem:[#allocation50_spill]] %s4578_s14 }
   0xf   :  { %4616 = sst [smem:[#allocation51_spill]] %s4579_s15 }
  0x10   :  { %4617 = sst [smem:[#allocation52_spill]] %s4580_s16 }
  0x11   :  { %4618 = sst [smem:[#allocation53_spill]] %s4581_s17 }
  0x12   :  { %4619 = sst [smem:[#allocation54_spill]] %s4582_s18 }
  0x13   :  { %4620 = sst [smem:[#allocation55_spill]] %s4583_s19 }
  0x14   :  { %4621 = sst [smem:[#allocation56_spill]] %s4585_s21 }
  0x15   :  { %4622 = sst [smem:[#allocation57_spill]] %s4586_s22 }
  0x16   :  { %4623 = sst [smem:[#allocation58_spill]] %s4587_s23 }
  0x17   :  { %4624 = sst [smem:[#allocation59_spill]] %s4588_s24 }
  0x18   :  { %29 = vsyncpa [#allocation3], 0 }
  0x19   :  { %31 = vsyncpa [#allocation3 + $0x1], 0 }
  0x1a   :  { %32 = vsyncpa [#allocation6], 0 }
  0x1b   :  { %34 = vsyncpa [#allocation6 + $0x1], 0 }
  0x1c   :  { %35 = vsyncpa [#allocation9], 0 }
  0x1d   :  { %36 = vsyncpa [#allocation12], 0 }
  0x1e   :  { %37 = vsyncpa [#allocation15], 0 }
  0x1f   :  { %38 = vsyncpa [#allocation18], 0 }
  0x20   :  { %39 = vsyncpa [#allocation21], 0 }
  0x21   :  { %40 = vsyncpa [#allocation24], 0 }
  0x22   :  { %41 = vsyncpa [#allocation4], 0 }
  0x23   :  { %43 = vsyncpa [#allocation4 + $0x1], 0  ;;  %s3972_s5 = smov 0   ;;  %s3974_s26 = smov 0  }
  0x24   :  { %s3976_s27 = smov 0   ;;  %s3978_s28 = smov 0  }
  0x25 LB: > { %s3813_s6 = smov [#allocation7]   ;;  %s3993_s29 = sadd.s32 4294967295, %s3811_s28   ;;  %s3811_s28 = sphi %s3978_s28, %s4682_s28   ;;  %s3807_s27 = sphi %s3976_s27, %s4681_s27   ;;  %s3803_s26 = sphi %s3974_s26, %s4680_s26   ;;  %s3799_s5 = sphi %s3972_s5, %s4679_s5  }
  0x26   : > { %s620_s2 = sshll.u32 %s3813_s6, 4  ;;  %p2760_p0 = scmp.ge.s32.totalorder %s3811_s28, 1  ;;  %s621_s2 = int_to_ptr.vmem [resolvable:$true] %s620_s2 }
  0x27   : > { %p4595_p1 = scmp.eq.s32.totalorder %s3993_s29, 0  ;;  %p604_p2 = scmp.lt.s32.totalorder %s3811_s28, 3 }
  0x28   : > { %s3814_s7 = smov [#allocation8]   ;;  %s3815_s25 = smov [#allocation11]  }
  0x29   : > { %p3998_p3 = pnand %p2760_p0, %p604_p2  ;;  %s630_s30 = sshll.u32 %s3814_s7, 4  ;;  %s4005_s30 = int_to_ptr.vmem [resolvable:$true] %s630_s30 }
  0x2a   : > { %s655_s8 = sshll.u32 %s3815_s25, 4  ;;  %s3332_s1 = scalar_lea.vmem %s621_s2, 16  ;;  %s4013_s8 = int_to_ptr.vmem [resolvable:$true] %s655_s8 }
  0x2b   : > { %s4625_s0 = scalar_select %p3998_p3, 1, 0 }
  0x2c   : > { %p3125_p5 = pneg %p3998_p3  ;;  %p3333_p8 = scmp.ne.s32.totalorder %s621_s2, %s3332_s1 }
  0x2d   : > { %s3339_s6 = scalar_lea.vmem %s621_s2, 32  ;;  %p3340_p11 = scmp.lt.s32.totalorder %s621_s2, %s621_s2 }
  0x2e   : > { %p4009_p6 = pnand %p3125_p5, %p4595_p1  ;;  %p3341_p12 = scmp.lt.s32.totalorder %s3339_s6, %s3332_s1 }
  0x30   : > { %p4017_p7 = pneg %p4009_p6  ;;  %p3342_p13 = por %p3341_p12, %p3340_p11 }
  0x32   : > { %p3335_p9 = pnand %p3333_p8, %p4017_p7 }
  0x34   : > { %p3336_p10 = pneg %p3335_p9 }
  0x36   : > { %p3343_p0 = pnand %p3342_p13, %p3336_p10 }
  0x38   : > { %3346 = shalt.err (!%p3343_p0)
}
  0x39   : > { %s4628_s24 = sld [smem:[#allocation42_spill]]  ;;  %s3358_s23 = scalar_lea.vmem %s4005_s30, 256 }
  0x3a   : > { %p3359_p2 = scmp.ne.s32.totalorder %s4005_s30, %s3358_s23  ;;  %p3366_p9 = scmp.lt.s32.totalorder %s4005_s30, %s4005_s30 }
  0x3b   : > { %p3367_p11 = scmp.lt.s32.totalorder %s3358_s23, %s3358_s23 }
  0x3c   : > { %p3361_p5 = pnand %p3359_p2, %p4017_p7 }
  0x3d   : > { %p3368_p10 = por %p3367_p11, %p3366_p9 }
  0x3e   : > { %p3362_p8 = pneg %p3361_p5 }
  0x3f   : > { %3128 = dma.hbm_to_vmem [thread:$0]  (!%p4009_p6), %s4628_s24, 16, %s621_s2, [#allocation6]  }
  0x40   : > { %p3369_p12 = pnand %p3368_p10, %p3362_p8 }
  0x42   : > { %3372 = shalt.err (!%p3369_p12)
}
  0x43   : > { %s4593_s1 = smov 64   ;;  %s3817_s24 = smov 4  }
  0x44   : > { %s4629_s7 = sld [smem:[#allocation43_spill]]  ;;  %s3384_s23 = scalar_lea.vmem %s4013_s8, 16 }
  0x45   : > { %p3385_p13 = scmp.ne.s32.totalorder %s4013_s8, %s3384_s23  ;;  %s3391_s25 = scalar_lea.vmem %s4013_s8, 32 }
  0x46   : > { %p3392_p5 = scmp.lt.s32.totalorder %s4013_s8, %s4013_s8  ;;  %p3393_p8 = scmp.lt.s32.totalorder %s3391_s25, %s3384_s23 }
  0x47   : > { %p3387_p0 = pnand %p3385_p13, %p4017_p7 }
  0x48   : > { %p3394_p9 = por %p3393_p8, %p3392_p5 }
  0x49   : > { %p3388_p2 = pneg %p3387_p0 }
  0x4a   : > { %3131 = dma.hbm_to_vmem [thread:$0]  (!%p4009_p6), %s4629_s7, 256, %s4005_s30, [#allocation9], %s4593_s1, %s4593_s1, %s3817_s24  }
  0x4b   : > { %p3395_p11 = pnand %p3394_p9, %p3388_p2 }
  0x4d   : > { %3398 = shalt.err (!%p3395_p11)
}
  0x4e   : > { %s4630_s19 = sld [smem:[#allocation45_spill]]  ;;  %s3818_s30 = smov [#allocation14]  }
  0x4f   : > { %s680_s2 = sshll.u32 %s3818_s30, 4  ;;  %s3819_s6 = smov [#allocation17]   ;;  %s681_s2 = int_to_ptr.vmem [resolvable:$true] %s680_s2 }
  0x50   : > { %s704_s7 = sshll.u32 %s3819_s6, 4  ;;  %s3410_s1 = scalar_lea.vmem %s681_s2, 16  ;;  %s705_s7 = int_to_ptr.vmem [resolvable:$true] %s704_s7 }
  0x51   : > { %p3411_p10 = scmp.ne.s32.totalorder %s681_s2, %s3410_s1  ;;  %s3417_s23 = scalar_lea.vmem %s681_s2, 32 }
  0x52   : > { %p3418_p0 = scmp.lt.s32.totalorder %s681_s2, %s681_s2  ;;  %p3419_p2 = scmp.lt.s32.totalorder %s3417_s23, %s3410_s1 }
  0x53   : > { %p3413_p12 = pnand %p3411_p10, %p4017_p7 }
  0x54   : > { %3137 = dma.hbm_to_vmem [thread:$0]  (!%p4009_p6), %s4630_s19, 16, %s4013_s8, [#allocation12]  }
  0x55   : > { %p3414_p13 = pneg %p3413_p12  ;;  %p3420_p5 = por %p3419_p2, %p3418_p0 }
  0x57   : > { %p3421_p8 = pnand %p3420_p5, %p3414_p13 }
  0x59   : > { %3424 = shalt.err (!%p3421_p8)
}
  0x5a   : > { %s4631_s11 = sld [smem:[#allocation47_spill]]  ;;  %s3436_s22 = scalar_lea.vmem %s705_s7, 16 }
  0x5b   : > { %p3437_p9 = scmp.ne.s32.totalorder %s705_s7, %s3436_s22  ;;  %s3443_s8 = scalar_lea.vmem %s705_s7, 32 }
  0x5c   : > { %p3444_p12 = scmp.lt.s32.totalorder %s705_s7, %s705_s7  ;;  %p3445_p4 = scmp.lt.s32.totalorder %s3443_s8, %s3436_s22 }
  0x5d   : > { %p3439_p11 = pnand %p3437_p9, %p4017_p7 }
  0x5e   : > { %p3446_p1 = por %p3445_p4, %p3444_p12 }
  0x5f   : > { %p3440_p10 = pneg %p3439_p11 }
  0x60   : > { %3143 = dma.hbm_to_vmem [thread:$0]  (!%p4009_p6), %s4631_s11, 16, %s681_s2, [#allocation15]  }
  0x61   : > { %p3447_p0 = pnand %p3446_p1, %p3440_p10 }
  0x63   : > { %3450 = shalt.err (!%p3447_p0)
}
  0x64   : > { %s4632_s13 = sld [smem:[#allocation49_spill]]  ;;  %s3820_s30 = smov [#allocation20]  }
  0x65   : > { %s728_s2 = sshll.u32 %s3820_s30, 4  ;;  %s3821_s6 = smov [#allocation23]   ;;  %s729_s2 = int_to_ptr.vmem [resolvable:$true] %s728_s2 }
  0x66   : > { %s750_s23 = sshll.u32 %s3821_s6, 4  ;;  %s3462_s21 = scalar_lea.vmem %s729_s2, 16  ;;  %s751_s23 = int_to_ptr.vmem [resolvable:$true] %s750_s23 }
  0x67   : > { %p3463_p13 = scmp.ne.s32.totalorder %s729_s2, %s3462_s21  ;;  %s3469_s19 = scalar_lea.vmem %s729_s2, 32 }
  0x68   : > { %p3470_p1 = scmp.lt.s32.totalorder %s729_s2, %s729_s2  ;;  %p3471_p4 = scmp.lt.s32.totalorder %s3469_s19, %s3462_s21 }
  0x69   : > { %p3465_p2 = pnand %p3463_p13, %p4017_p7 }
  0x6a   : > { %3149 = dma.hbm_to_vmem [thread:$0]  (!%p4009_p6), %s4632_s13, 16, %s705_s7, [#allocation18]  }
  0x6b   : > { %p3466_p5 = pneg %p3465_p2  ;;  %p3472_p8 = por %p3471_p4, %p3470_p1 }
  0x6d   : > { %p3473_p9 = pnand %p3472_p8, %p3466_p5 }
  0x6f   : > { %3476 = shalt.err (!%p3473_p9)
}
  0x70   : > { %s4633_s15 = sld [smem:[#allocation51_spill]]  ;;  %s3488_s8 = scalar_lea.vmem %s751_s23, 16 }
  0x71   : > { %p3489_p11 = scmp.ne.s32.totalorder %s751_s23, %s3488_s8  ;;  %s3495_s1 = scalar_lea.vmem %s751_s23, 32 }
  0x72   : > { %p3496_p0 = scmp.lt.s32.totalorder %s751_s23, %s751_s23  ;;  %p3497_p13 = scmp.lt.s32.totalorder %s3495_s1, %s3488_s8 }
  0x73   : > { %p3491_p10 = pnand %p3489_p11, %p4017_p7 }
  0x74   : > { %p3498_p2 = por %p3497_p13, %p3496_p0 }
  0x75   : > { %p3492_p12 = pneg %p3491_p10 }
  0x76   : > { %3155 = dma.hbm_to_vmem [thread:$0]  (!%p4009_p6), %s4633_s15, 16, %s729_s2, [#allocation21]  }
  0x77   : > { %p3499_p1 = pnand %p3498_p2, %p3492_p12 }
  0x79   : > { %3502 = shalt.err (!%p3499_p1)
}
  0x7a   : > { %s4634_s17 = sld [smem:[#allocation53_spill]]  ;;  %s3822_s2 = smov [#allocation10]  }
  0x7b   : > { %s644_s6 = sshll.u32 %s3822_s2, 4  ;;  %s3823_s21 = smov [#allocation13]   ;;  %s645_s6 = int_to_ptr.vmem [resolvable:$true] %s644_s6 }
  0x7c   : > { %s666_s19 = sshll.u32 %s3823_s21, 4  ;;  %s3514_s22 = scalar_lea.vmem %s645_s6, 16  ;;  %s667_s19 = int_to_ptr.vmem [resolvable:$true] %s666_s19 }
  0x7d   : > { %p3515_p5 = scmp.ne.s32.totalorder %s645_s6, %s3514_s22  ;;  %s3521_s7 = scalar_lea.vmem %s645_s6, 32 }
  0x7e   : > { %p3522_p9 = scmp.lt.s32.totalorder %s645_s6, %s645_s6  ;;  %p3523_p11 = scmp.lt.s32.totalorder %s3521_s7, %s3514_s22 }
  0x7f   : > { %p3517_p4 = pnand %p3515_p5, %p4017_p7 }
  0x80   : > { %3161 = dma.hbm_to_vmem [thread:$0]  (!%p4009_p6), %s4634_s17, 16, %s751_s23, [#allocation24]  }
  0x81   : > { %p3518_p8 = pneg %p3517_p4  ;;  %p3524_p10 = por %p3523_p11, %p3522_p9 }
  0x83   : > { %p3525_p12 = pnand %p3524_p10, %p3518_p8 }
  0x85   : > { %3528 = shalt.err (!%p3525_p12)
}
  0x86   : > { %s4635_s1 = sld [smem:[#allocation44_spill]]  ;;  %s3540_s25 = scalar_lea.vmem %s667_s19, 16 }
  0x87   : > { %p3541_p0 = scmp.ne.s32.totalorder %s667_s19, %s3540_s25  ;;  %s3547_s30 = scalar_lea.vmem %s667_s19, 32 }
  0x88   : > { %p3548_p1 = scmp.lt.s32.totalorder %s667_s19, %s667_s19  ;;  %p3549_p5 = scmp.lt.s32.totalorder %s3547_s30, %s3540_s25 }
  0x89   : > { %p3543_p13 = pnand %p3541_p0, %p4017_p7 }
  0x8a   : > { %p3550_p4 = por %p3549_p5, %p3548_p1 }
  0x8b   : > { %p3544_p2 = pneg %p3543_p13 }
  0x8c   : > { %3134 = dma.hbm_to_vmem [thread:$0]  (!%p4009_p6), %s4635_s1, 16, %s645_s6, [#allocation9]  }
  0x8d   : > { %p3551_p9 = pnand %p3550_p4, %p3544_p2 }
  0x8f   : > { %3554 = shalt.err (!%p3551_p9)
}
  0x90   : > { %s4636_s9 = sld [smem:[#allocation46_spill]]  ;;  %s3824_s6 = smov [#allocation16]  }
  0x91   : > { %s690_s22 = sshll.u32 %s3824_s6, 4  ;;  %s3825_s7 = smov [#allocation19]   ;;  %s691_s22 = int_to_ptr.vmem [resolvable:$true] %s690_s22 }
  0x92   : > { %s714_s8 = sshll.u32 %s3825_s7, 4  ;;  %s3566_s23 = scalar_lea.vmem %s691_s22, 256  ;;  %s715_s8 = int_to_ptr.vmem [resolvable:$true] %s714_s8 }
  0x93   : > { %p3567_p8 = scmp.ne.s32.totalorder %s691_s22, %s3566_s23  ;;  %p3574_p12 = scmp.lt.s32.totalorder %s691_s22, %s691_s22 }
  0x94   : > { %p3575_p0 = scmp.lt.s32.totalorder %s3566_s23, %s3566_s23 }
  0x95   : > { %p3569_p11 = pnand %p3567_p8, %p4017_p7 }
  0x96   : > { %3140 = dma.hbm_to_vmem [thread:$0]  (!%p4009_p6), %s4636_s9, 16, %s667_s19, [#allocation12]  }
  0x97   : > { %p3570_p10 = pneg %p3569_p11  ;;  %p3576_p13 = por %p3575_p0, %p3574_p12 }
  0x99   : > { %p3577_p2 = pnand %p3576_p13, %p3570_p10 }
  0x9b   : > { %3580 = shalt.err (!%p3577_p2)
}
  0x9c   : > { %s4637_s1 = smov 64   ;;  %s4638_s12 = sld [smem:[#allocation48_spill]] }
  0x9d   : > { %s3592_s30 = scalar_lea.vmem %s715_s8, 256  ;;  %p3600_p9 = scmp.lt.s32.totalorder %s715_s8, %s715_s8 }
  0x9e   : > { %p3593_p1 = scmp.ne.s32.totalorder %s715_s8, %s3592_s30  ;;  %p3601_p8 = scmp.lt.s32.totalorder %s3592_s30, %s3592_s30 }
  0xa0   : > { %p3595_p5 = pnand %p3593_p1, %p4017_p7  ;;  %p3602_p11 = por %p3601_p8, %p3600_p9 }
  0xa2   : > { %3146 = dma.hbm_to_vmem [thread:$0]  (!%p4009_p6), %s4638_s12, 256, %s691_s22, [#allocation15], %s4637_s1, %s4637_s1, %s3817_s24  }
  0xa3   : > { %p3596_p4 = pneg %p3595_p5 }
  0xa5   : > { %p3603_p10 = pnand %p3602_p11, %p3596_p4 }
  0xa7   : > { %3606 = shalt.err (!%p3603_p10)
}
  0xa8   : > { %s4639_s14 = sld [smem:[#allocation50_spill]]  ;;  %s3826_s6 = smov [#allocation22]  }
  0xa9   : > { %s739_s22 = sshll.u32 %s3826_s6, 4  ;;  %s3827_s7 = smov [#allocation25]   ;;  %s740_s22 = int_to_ptr.vmem [resolvable:$true] %s739_s22 }
  0xaa   : > { %s760_s23 = sshll.u32 %s3827_s7, 4  ;;  %s3618_s19 = scalar_lea.vmem %s740_s22, 16  ;;  %s761_s23 = int_to_ptr.vmem [resolvable:$true] %s760_s23 }
  0xab   : > { %p3619_p12 = scmp.ne.s32.totalorder %s740_s22, %s3618_s19  ;;  %s3625_s25 = scalar_lea.vmem %s740_s22, 32 }
  0xac   : > { %p3626_p2 = scmp.lt.s32.totalorder %s740_s22, %s740_s22  ;;  %p3627_p1 = scmp.lt.s32.totalorder %s3625_s25, %s3618_s19 }
  0xad   : > { %p3621_p0 = pnand %p3619_p12, %p4017_p7 }
  0xae   : > { %3152 = dma.hbm_to_vmem [thread:$0]  (!%p4009_p6), %s4639_s14, 256, %s715_s8, [#allocation18], %s4637_s1, %s4637_s1, %s3817_s24  }
  0xaf   : > { %p3622_p13 = pneg %p3621_p0  ;;  %p3628_p5 = por %p3627_p1, %p3626_p2 }
  0xb1   : > { %p3629_p4 = pnand %p3628_p5, %p3622_p13 }
  0xb3   : > { %3632 = shalt.err (!%p3629_p4)
}
  0xb4   : > { %s4640_s16 = sld [smem:[#allocation52_spill]]  ;;  %s3644_s2 = scalar_lea.vmem %s761_s23, 256 }
  0xb5   : > { %p3645_p9 = scmp.ne.s32.totalorder %s761_s23, %s3644_s2  ;;  %p3652_p10 = scmp.lt.s32.totalorder %s761_s23, %s761_s23 }
  0xb6   : > { %p3653_p12 = scmp.lt.s32.totalorder %s3644_s2, %s3644_s2 }
  0xb7   : > { %p3647_p8 = pnand %p3645_p9, %p4017_p7 }
  0xb8   : > { %p3654_p0 = por %p3653_p12, %p3652_p10 }
  0xb9   : > { %p3648_p11 = pneg %p3647_p8 }
  0xba   : > { %3158 = dma.hbm_to_vmem [thread:$0]  (!%p4009_p6), %s4640_s16, 16, %s740_s22, [#allocation21]  }
  0xbb   : > { %p3655_p3 = pnand %p3654_p0, %p3648_p11 }
  0xbd   : > { %3658 = shalt.err (!%p3655_p3)
}
  0xbe   : > { %s4641_s18 = sld [smem:[#allocation54_spill]]  ;;  %s2759_s3 = sadd.s32 4294967294, %s3811_s28  }
  0xbf   : > { %s4137_s4 = sadd.s32 1, %s3811_s28   ;;  %s108_s22 = sadd.s32 1, %s3807_s27 }
  0xc0   : > { %s105_s7 = ssub.s32 %s3811_s28, %s4137_s4  ;;  %p115_p3 = scmp.ne.s32.totalorder %s3807_s27, %s3803_s26 }
  0xc1   : > { %p106_p7 = scmp.eq.s32.totalorder %s105_s7, 0  ;;  %p116_p13 = scmp.eq.s32.totalorder %s3811_s28, 0 }
  0xc2   : > { %p121_p2 = scmp.ne.s32.totalorder %s3803_s26, %s3799_s5  ;;  %p591_p1 = scmp.eq.s32.totalorder %s3993_s29, 1 }
  0xc3   : > { %s4149_s19 = scalar_select %p106_p7, %s3807_s27, %s108_s22  }
  0xc4   : > { %3164 = dma.hbm_to_vmem [thread:$0]  (!%p4009_p6), %s4641_s18, 256, %s761_s23, [#allocation24], %s4637_s1, %s4637_s1, %s3817_s24  }
  0xc5   : > { %p117_p5 = por %p116_p13, %p115_p3  ;;  %p4642_p4 = scmp.eq.s32.totalorder %s3993_s29, 0 }
  0xc6   : > { %p4157_p6 = por %p591_p1, %p115_p3  ;;  %p597_p8 = scmp.eq.s32.totalorder %s2759_s3, 1 }
  0xc7   : > { %p4153_p9 = por %p4642_p4, %p121_p2  ;;  %p3189_p11 = scmp.lt.s32.totalorder %s3811_s28, 2 }
  0xc8   : > { %s4644_s24 = scalar_select %p4157_p6, 1, 0 }
  0xc9   : > { %s4643_s25 = scalar_select %p4153_p9, 1, 0 }
  0xca   : > { %s803_s1 = sand.u32 1, %s3807_s27   ;;  %p4163_p10 = por %p597_p8, %p121_p2 }
  0xcb   : > { %s4167_s30 = sshll.u32 %s803_s1, 2  ;;  %s2776_s8 = sshll.u32 %s3811_s28, 6 }
  0xcc   : > { %s4645_s23 = scalar_select %p4163_p10, 1, 0 }
  0xcd   : > { %s4646_s6 = sld [smem:[#allocation39_spill]]  ;;  %s807_s7 = scalar_lea.vmem [#allocation2], %s4167_s30 }
  0xce   : > { %s814_s3 = sshll.u32 %s807_s7, 4  ;;  %p4176_p12 = pnand %p3189_p11, %p117_p5  ;;  %s815_s3 = int_to_ptr.vmem [resolvable:$true] %s814_s3 }
  0xcf   : > { %s4648_s13 = sld [smem:[#allocation40_spill]]  ;;  %s804_s2 = scalar_lea.sflag [#allocation3], %s803_s1 }
  0xd0   : > { %p3661_p3 = pneg %p4176_p12 }
  0xd3   : > { %s4173_s22 = scalar_lea.hbm %s4646_s6, %s2776_s8  ;;  %s3664_s16 = scalar_lea.hbm %s4646_s6, 128 }
  0xd4   : > { %s3659_s21 = scalar_lea.hbm %s4173_s22, 64  ;;  %p3665_p2 = scmp.lt.s32.totalorder %s4173_s22, %s4646_s6 }
  0xd5   : > { %s4183_s14 = scalar_lea.hbm %s4648_s13, %s2776_s8  ;;  %p3660_p0 = scmp.ne.s32.totalorder %s4173_s22, %s3659_s21 }
  0xd6   : > { %p3666_p1 = scmp.lt.s32.totalorder %s3664_s16, %s3659_s21 }
  0xd7   : > { %p3662_p7 = pnand %p3661_p3, %p3660_p0 }
  0xd8   : > { %p3667_p5 = por %p3666_p1, %p3665_p2 }
  0xd9   : > { %p3663_p13 = pneg %p3662_p7 }
  0xdb   : > { %p3668_p4 = pnand %p3667_p5, %p3663_p13 }
  0xdd   : > { %3671 = shalt.err (!%p3668_p4)
}
  0xde   : > { %s3672_s11 = scalar_lea.vmem %s815_s3, 64  ;;  %s3828_s12 = smov [#allocation2]  }
  0xdf   : > { %p3673_p8 = scmp.ne.s32.totalorder %s815_s3, %s3672_s11  ;;  %s3677_s1 = sshll.u32 %s3828_s12, 4  ;;  %s3678_s1 = int_to_ptr.vmem [resolvable:$false] %s3677_s1 }
  0xe0   : > { %s3679_s15 = scalar_lea.vmem %s3678_s1, 128  ;;  %p3680_p7 = scmp.lt.s32.totalorder %s815_s3, %s3678_s1 }
  0xe1   : > { %p3675_p11 = pnand %p3673_p8, %p3661_p3  ;;  %p3681_p10 = scmp.lt.s32.totalorder %s3679_s15, %s3672_s11 }
  0xe3   : > { %p3676_p0 = pneg %p3675_p11  ;;  %p3682_p6 = por %p3681_p10, %p3680_p7 }
  0xe5   : > { %p3683_p9 = pnand %p3682_p6, %p3676_p0 }
  0xe7   : > { %3686 = shalt.err (!%p3683_p9)
}
  0xe8   : > { %3168 = dma.hbm_to_vmem [thread:$0]  (!%p4176_p12), %s4173_s22, 64, %s815_s3, %s804_s2  }
  0xe9   : > { %s821_s16 = sand.u32 1, %s3811_s28   ;;  %s825_s17 = scalar_lea.vmem [#allocation5], %s4167_s30 }
  0xea   : > { %s832_s18 = sshll.u32 %s825_s17, 4  ;;  %s822_s8 = scalar_lea.sflag [#allocation6], %s821_s16  ;;  %s833_s18 = int_to_ptr.vmem [resolvable:$true] %s832_s18 }
  0xeb   : > { %s3687_s21 = scalar_lea.hbm %s4183_s14, 64  ;;  %s3692_s12 = scalar_lea.hbm %s4648_s13, 128 }
  0xec   : > { %p3688_p13 = scmp.ne.s32.totalorder %s4183_s14, %s3687_s21  ;;  %p3693_p10 = scmp.lt.s32.totalorder %s4183_s14, %s4648_s13 }
  0xed   : > { %p3694_p2 = scmp.lt.s32.totalorder %s3692_s12, %s3687_s21 }
  0xee   : > { %p3690_p9 = pnand %p3688_p13, %p3661_p3 }
  0xef   : > { %p3695_p1 = por %p3694_p2, %p3693_p10 }
  0xf0   : > { %p3691_p6 = pneg %p3690_p9 }
  0xf2   : > { %p3696_p5 = pnand %p3695_p1, %p3691_p6 }
  0xf4   : > { %3699 = shalt.err (!%p3696_p5)
}
  0xf5   : > { %s3700_s30 = scalar_lea.vmem %s833_s18, 64  ;;  %s3829_s22 = smov [#allocation5]  }
  0xf6   : > { %p3701_p4 = scmp.ne.s32.totalorder %s833_s18, %s3700_s30  ;;  %s3705_s3 = sshll.u32 %s3829_s22, 4  ;;  %s3706_s3 = int_to_ptr.vmem [resolvable:$false] %s3705_s3 }
  0xf7   : > { %s3707_s2 = scalar_lea.vmem %s3706_s3, 128  ;;  %p3708_p0 = scmp.lt.s32.totalorder %s833_s18, %s3706_s3 }
  0xf8   : > { %p3703_p8 = pnand %p3701_p4, %p3661_p3  ;;  %p3709_p7 = scmp.lt.s32.totalorder %s3707_s2, %s3700_s30 }
  0xfa   : > { %p3704_p11 = pneg %p3703_p8  ;;  %p3710_p13 = por %p3709_p7, %p3708_p0 }
  0xfc   : > { %p3711_p9 = pnand %p3710_p13, %p3704_p11 }
  0xfe   : > { %3714 = shalt.err (!%p3711_p9)
}
  0xff   : > { %3171 = dma.hbm_to_vmem [thread:$0]  (!%p4176_p12), %s4183_s14, 64, %s833_s18, %s822_s8  }
 0x100   : > { %p4649_p6 = scmp.ne.s32.totalorder %s4625_s0, 0 }
 0x101   : > { %s4228_s16 = sand.u32 (!%p4649_p6), 1, %s3803_s26   ;;  %p4650_p3 = scmp.ne.s32.totalorder (!%p4649_p6), %s4643_s25, 0 }
 0x102   : > { %841 = sbr.rel (%p4649_p6) target bundleno = 4391 (0x1127), region = 116  ;;  %s2780_s17 = sshll.u32 (!%p4649_p6), %s4228_s16, 2 }
 0x103   : > { %s844_s21 = scalar_lea.sflag (!%p4649_p6), [#allocation3], %s4228_s16  ;;  %s4232_s7 = scalar_lea.vmem (!%p4649_p6), [#allocation2], %s2780_s17 }
 0x107   : > { %3758 = dma.done.wait (%p4650_p3), %s844_s21, 64  }
 0x108   : > { %3760 = vsyncadd (%p4650_p3), %s844_s21, 4294967232  ;;  %s852_s9 = sand.u32 1, %s3993_s29   ;;  %s4239_s0 = scalar_lea.vmem [#allocation5], %s2780_s17 }
 0x109   : > { %s853_s14 = scalar_lea.sflag [#allocation6], %s852_s9 }
 0x10a   : > { %3762 = dma.done.wait (%p4650_p3), %s853_s14, 64  }
 0x10b   : > { %3764 = vsyncadd (%p4650_p3), %s853_s14, 4294967232  ;;  %p4651_p12 = scmp.eq.s32.totalorder %s3993_s29, 0 }
 0x10d   : > { %3766 = dma.done.wait (%p4651_p12), [#allocation6], 16   ;;  %p4652_p10 = pmov %p4651_p12 }
 0x10f   : > { %3768 = vsyncadd (%p4652_p10), [#allocation6], 4294967280  ;;  %p4653_p2 = pmov %p4652_p10 }
 0x111   : > { %3770 = dma.done.wait (%p4653_p2), [#allocation9], 272   ;;  %p4654_p1 = pmov %p4653_p2 }
 0x113   : > { %3772 = vsyncadd (%p4654_p1), [#allocation9], 4294967024  ;;  %p4655_p5 = pmov %p4654_p1 }
 0x114   : > { %p4656_p4 = pmov %p4654_p1 }
 0x115   : > { %3774 = dma.done.wait (%p4655_p5), [#allocation12], 32  }
 0x116   : > { %3776 = vsyncadd (%p4656_p4), [#allocation12], 4294967264  ;;  %p4657_p8 = pmov %p4654_p1 }
 0x117   : > { %p4658_p11 = pmov %p4654_p1 }
 0x118   : > { %3778 = dma.done.wait (%p4657_p8), [#allocation15], 272  }
 0x119   : > { %3780 = vsyncadd (%p4658_p11), [#allocation15], 4294967024  ;;  %p4659_p0 = pmov %p4654_p1 }
 0x11b   : > { %3782 = dma.done.wait (%p4659_p0), [#allocation18], 272   ;;  %p4660_p7 = pmov %p4659_p0 }
 0x11c   : > { %p4661_p13 = pmov %p4659_p0 }
 0x11d   : > { %3784 = vsyncadd (%p4660_p7), [#allocation18], 4294967024 }
 0x11e   : > { %3786 = dma.done.wait (%p4661_p13), [#allocation21], 32   ;;  %p4662_p9 = pmov %p4659_p0 }
 0x11f   : > { %p4663_p6 = pmov %p4659_p0 }
 0x120   : > { %3788 = vsyncadd (%p4662_p9), [#allocation21], 4294967264 }
 0x121   : > { %3790 = dma.done.wait (%p4663_p6), [#allocation24], 272   ;;  %p4664_p3 = pmov %p4659_p0 }
 0x122   : > { %p986_p12 = scmp.lt.s32.totalorder %s3993_s29, 1  ;;  %v3830_v0 = vmov 0.0   ;;  %vm3831_vm0 = vmmov 0   ;;  %s4665_s12 = sld [smem:[#allocation37_spill]]  ;;  %vm1029_vm1 = vcmask 261120   ;;  %vm1077_vm2 = vcmask 64512  }
 0x123   : > { %3792 = vsyncadd (%p4664_p3), [#allocation24], 4294967024  ;;  %2911 = vmatprep.subr.bf16.mxu1 %v3830_v0  ;;  %2915 = vmatprep.mubr.msk.bf16.mxu1 %vm3831_vm0, %v3830_v0  ;;  %s4666_s22 = sld [smem:[#allocation41_spill]]  ;;  %v2800_v5 = vld [vmem:[#allocation7] ss:$0 sm:$0xff]  ;;  %s3832_s17 = smov 120  }
 0x124   : > { %s4278_s25 = scalar_select %p986_p12, %s3993_s29, 1  ;;  %2925 = vmatprep.subr.bf16.mxu0 %v3830_v0  ;;  %2927 = vmatprep.mubr.msk.bf16.mxu0 %vm3831_vm0, %v3830_v0  ;;  %v997_v23 = vld [vmem:[%s4232_s7] sm:$0xf]  ;;  %vm1141_vm3 = vcmask 1043456   ;;  %vm1531_vm4 = vcmask 130048   ;;  %vm1534_vm5 = vcmask 195584  }
 0x125   : > { %s3833_s21 = smov 96   ;;  %s3834_s9 = smov 80   ;;  %v998_v24 = vunpack.c.l.bf16 %v997_v23  ;;  %vm2430_vm6 = vcmask 523264  }
 0x126   : > { %s2796_s18 = sshll.u32 %s4278_s25, 3  ;;  %s3835_s14 = smov 88  }
 0x127   : > { %s3836_s8 = smov 72   ;;  %s3837_s11 = smov 112   ;;  %v2798_v25 = vadd.f32 -1.0, %v998_v24 }
 0x128   : > { %s989_s1 = scalar_lea.vmem %s4665_s12, %s2796_s18  ;;  %s3838_s12 = smov 104  }
 0x129   : > { %v3267_v1 = vld [vmem:[%s4666_s22 + $0x8] sm:$0xff]   ;;  %v3268_v2 = vld [vmem:[%s4666_s22] sm:$0xff]   ;;  %v1000_v26 = vmul.f32 1e+30, %v2798_v25  ;;  %s3839_s7 = smov 56   ;;  %s3841_s15 = smov 40  }
 0x12a   : > { %2912 = vmatpush3.bf16.msra.mxu1 %v3267_v1  ;;  %v4295_v3 = vld [vmem:[%s989_s1] sm:$0xff]  ;;  %s3840_s1 = smov 64   ;;  %s3842_s30 = smov 48  }
 0x12b   : > { %2913 = vmatprep.subr.bf16.mxu1 %v3830_v0  ;;  %v1005_v4 = vpack.c.bf16 %v4295_v3, %v4295_v3  ;;  %s4601_s3 = smov 8   ;;  %s4600_s2 = smov 16  }
 0x12c   : > { %p4676_p2 = scmp.ne.s32.totalorder %s4644_s24, 0 }
 0x12e   : > { %2914 = vmatpush3.bf16.msra.mxu1 %v3268_v2 }
 0x12f   : > { %2919 = vmatprep.subr.bf16.mxu1 %v3830_v0 }
 0x131   : > { %2916 = vmatmul.mubr.msk.bf16.vlgmr.msra.gmra.mxu1 %vm1029_vm1, %v1005_v4 }
 0x132   : > { %2921 = vmatprep.mubr.msk.bf16.mxu1 %vm3831_vm0, %v3830_v0 }
 0x1f1   : > { %v1067_v6 = vpop.f32.mrf.mxu1 }
 0x1f2   : > { %v1068_v7 = vadd.f32 %v2800_v5, %v1067_v6 }
 0x1f3   : > { %v2917_v8 = vpop.f32.mrf.mxu1 }
 0x1f4   : > { %v4304_v9 = vpack.c.bf16 %v1068_v7, %v1068_v7 }
 0x1f5   : > { %v1070_v10 = vpop.f32.mrf.mxu1 }
 0x1f6   : > { %1186 = vrot.lane.b32.xlu1 %v4304_v9, %s3832_s17  ;;  %1075 = vrot.lane.b32.xlu0 %v4304_v9, %s3833_s21 }
 0x1f7   : > { %v2918_v11 = vpop.f32.mrf.mxu1 }
 0x1fa   : > { %1299 = vrot.lane.b32.xlu1 %v4304_v9, %s3834_s9  ;;  %1188 = vrot.lane.b32.xlu0 %v4304_v9, %s3835_s14 }
 0x1fe   : > { %1410 = vrot.lane.b32.xlu1 %v4304_v9, %s3836_s8  ;;  %1297 = vrot.lane.b32.xlu0 %v4304_v9, %s3837_s11 }
 0x202   : > { %1408 = vrot.lane.b32.xlu0 %v4304_v9, %s3838_s12 }
 0x268   : > { %v1076_v12 = vpop.permute.xlu0 %1075  ;;  %v1187_v15 = vpop.permute.xlu1 %1186 }
 0x269   : > { %v1082_v13 = vsel %vm1077_vm2, %v1076_v12, 0 }
 0x26a   : > { %2920 = vmatpush3.bf16.xpose.msra.mxu1 %v1082_v13 }
 0x26b   : > { %2931 = vmatprep.subr.bf16.mxu1 %v3830_v0 }
 0x26c   : > { %v1189_v14 = vpop.permute.xlu0 %1188  ;;  %v1300_v17 = vpop.permute.xlu1 %1299 }
 0x26d   : > { %v1194_v16 = vsel %vm1077_vm2, %v1189_v14, 0  ;;  %v1305_v18 = vsel %vm1077_vm2, %v1300_v17, 0 }
 0x270   : > { %v1411_v19 = vpop.permute.xlu1 %1410  ;;  %v1298_v20 = vpop.permute.xlu0 %1297 }
 0x271   : > { %2922 = vmatmul.mubr.msk.bf16.vlgmr.msra.gmra.mxu1 %vm1077_vm2, %v4304_v9  ;;  %v1416_v21 = vsel %vm1077_vm2, %v1411_v19, 0 }
 0x272   : > { %2932 = vmatpush3.bf16.xpose.msra.mxu1 %v1194_v16  ;;  %2933 = vmatprep.mubr.msk.bf16.mxu1 %vm3831_vm0, %v3830_v0 }
 0x273   : > { %2943 = vmatprep.subr.bf16.mxu1 %v3830_v0 }
 0x274   : > { %v1409_v22 = vpop.permute.xlu0 %1408 }
 0x279   : > { %2934 = vmatmul.mubr.msk.bf16.vlgmr.msra.gmra.mxu1 %vm1077_vm2, %v1187_v15 }
 0x27a   : > { %2944 = vmatpush3.bf16.xpose.msra.mxu1 %v1305_v18  ;;  %2945 = vmatprep.mubr.msk.bf16.mxu1 %vm3831_vm0, %v3830_v0 }
 0x27b   : > { %2955 = vmatprep.subr.bf16.mxu1 %v3830_v0 }
 0x281   : > { %2946 = vmatmul.mubr.msk.bf16.vlgmr.msra.gmra.mxu1 %vm1077_vm2, %v1298_v20 }
 0x282   : > { %2956 = vmatpush3.bf16.xpose.msra.mxu1 %v1416_v21  ;;  %2957 = vmatprep.mubr.msk.bf16.mxu1 %vm3831_vm0, %v3830_v0 }
 0x283   : > { %2967 = vmatprep.subr.bf16.mxu1 %v3830_v0 }
 0x289   : > { %2958 = vmatmul.mubr.msk.bf16.vlgmr.msra.gmra.mxu1 %vm1077_vm2, %v1409_v22 }
 0x28a   : > { %2971 = vmatprep.mubr.msk.bf16.mxu1 %vm3831_vm0, %v3830_v0 }
 0x331   : > { %v1118_v27 = vpop.f32.mrf.mxu1 }
 0x332   : > { %v1119_v28 = vadd.f32 %v1118_v27, %v1000_v26 }
 0x333   : > { %v2923_v29 = vpop.f32.mrf.mxu1 }
 0x334   : > { %v1124_v30 = vsel %vm1077_vm2, %v1119_v28, -inf }
 0x335   : > { %1125 = vmax.xlane.f32.xlu1 %v1124_v30  ;;  %v1121_v31 = vpop.f32.mrf.mxu1 }
 0x337   : > { %v2924_v32 = vpop.f32.mrf.mxu1 }
 0x339   : > { %v1230_v33 = vpop.f32.mrf.mxu1 }
 0x33a   : > { %v1231_v34 = vadd.f32 %v1230_v33, %v1000_v26 }
 0x33b   : > { %v2935_v35 = vpop.f32.mrf.mxu1 }
 0x33c   : > { %v1236_v36 = vsel %vm1077_vm2, %v1231_v34, -inf }
 0x33d   : > { %1237 = vmax.xlane.f32.xlu0 %v1236_v36  ;;  %v1233_v37 = vpop.f32.mrf.mxu1 }
 0x33f   : > { %v2936_v38 = vpop.f32.mrf.mxu1 }
 0x341   : > { %v1341_v39 = vpop.f32.mrf.mxu1 }
 0x342   : > { %v1342_v40 = vadd.f32 %v1341_v39, %v1000_v26 }
 0x343   : > { %v2947_v41 = vpop.f32.mrf.mxu1 }
 0x344   : > { %v1347_v42 = vsel %vm1077_vm2, %v1342_v40, -inf }
 0x345   : > { %1348 = vmax.xlane.f32.xlu0 %v1347_v42  ;;  %v1344_v43 = vpop.f32.mrf.mxu1  ;;  %v3269_v42 = vld [vmem:[#allocation8 + $0x8] sm:$0xff]  }
 0x346   : > { %2968 = vmatpush3.bf16.msra.mxu1 %v3269_v42  ;;  %v3270_v43 = vld [vmem:[#allocation8] sm:$0xff]  }
 0x347   : > { %v2948_v44 = vpop.f32.mrf.mxu1  ;;  %2969 = vmatprep.subr.bf16.mxu1 %v3830_v0 }
 0x349   : > { %v1452_v45 = vpop.f32.mrf.mxu1 }
 0x34a   : > { %v1453_v46 = vadd.f32 %v1452_v45, %v1000_v26  ;;  %2970 = vmatpush3.bf16.msra.mxu1 %v3270_v43 }
 0x34b   : > { %v2959_v47 = vpop.f32.mrf.mxu1  ;;  %2983 = vmatprep.subr.bf16.mxu1 %v3830_v0 }
 0x34c   : > { %v1458_v48 = vsel %vm1077_vm2, %v1453_v46, -inf }
 0x34d   : > { %1459 = vmax.xlane.f32.xlu1 %v1458_v48  ;;  %v1455_v49 = vpop.f32.mrf.mxu1 }
 0x34f   : > { %v2960_v50 = vpop.f32.mrf.mxu1 }
 0x3be   : > { %v1126_v51 = vpop.xlane.xlu1 %1125 }
 0x3bf   : > { %v1127_v52 = vsub.f32 %v1119_v28, %v1126_v51 }
 0x3c1   : > { %v1128_v53 = vmul.f32 1.442695, %v1127_v52 }
 0x3c3   : > { %3283 = vpow2.f32 %v1128_v53 }
 0x3c6   : > { %v1238_v54 = vpop.xlane.xlu0 %1237 }
 0x3c7   : > { %v1239_v55 = vsub.f32 %v1231_v34, %v1238_v54 }
 0x3c9   : > { %v1240_v56 = vmul.f32 1.442695, %v1239_v55 }
 0x3cb   : > { %3285 = vpow2.f32 %v1240_v56 }
 0x3ce   : > { %v1349_v57 = vpop.xlane.xlu0 %1348 }
 0x3cf   : > { %v1350_v58 = vsub.f32 %v1342_v40, %v1349_v57 }
 0x3d0   : > { %v3284_v59 = vpop.eup %3283 }
 0x3d1   : > { %v1351_v60 = vmul.f32 1.442695, %v1350_v58  ;;  %v1130_v61 = vsel %vm1077_vm2, %v3284_v59, 0.0 }
 0x3d2   : > { %1131 = vadd.xlane.f32.xlu0 %v1130_v61  ;;  %v2812_v61 = vld [vmem:[#allocation10] ss:$0 sm:$0xff] }
 0x3d3   : > { %3287 = vpow2.f32 %v1351_v60 }
 0x3d6   : > { %v1460_v4 = vpop.xlane.xlu1 %1459 }
 0x3d7   : > { %v1461_v5 = vsub.f32 %v1453_v46, %v1460_v4 }
 0x3d8   : > { %v3286_v62 = vpop.eup %3285 }
 0x3d9   : > { %v1242_v63 = vsel %vm1077_vm2, %v3286_v62, 0.0  ;;  %v1462_v6 = vmul.f32 1.442695, %v1461_v5 }
 0x3da   : > { %1243 = vadd.xlane.f32.xlu1 %v1242_v63 }
 0x3db   : > { %3289 = vpow2.f32 %v1462_v6 }
 0x3e0   : > { %v3288_v1 = vpop.eup %3287 }
 0x3e1   : > { %v1353_v2 = vsel %vm1077_vm2, %v3288_v1, 0.0 }
 0x3e2   : > { %1354 = vadd.xlane.f32.xlu0 %v1353_v2 }
 0x3e8   : > { %v3290_v7 = vpop.eup %3289 }
 0x3e9   : > { %v1464_v8 = vsel %vm1077_vm2, %v3290_v7, 0.0 }
 0x3eb   : > { %1248 = vrot.lane.b32.xlu1 %v4304_v9, %s3839_s7  ;;  %s4599_s7 = smov 24  }
 0x3f8   : > { %1136 = vrot.lane.b32.xlu0 %v4304_v9, %s3840_s1 }
 0x3fc   : > { %1470 = vrot.lane.b32.xlu0 %v4304_v9, %s3841_s15 }
 0x40f   : > { %1465 = vadd.xlane.f32.xlu1 %v1464_v8 }
 0x420   : > { %1359 = vrot.lane.b32.xlu1 %v4304_v9, %s3842_s30  ;;  %s4667_s30 = sld [smem:[#allocation38_spill]] }
 0x45b   : > { %v1132_v10 = vpop.xlane.xlu0 %1131 }
 0x45c   : > { %3291 = vrcp.f32 %v1132_v10 }
 0x463   : > { %v1244_v11 = vpop.xlane.xlu1 %1243 }
 0x464   : > { %3293 = vrcp.f32 %v1244_v11 }
 0x467   : > { %v1249_v17 = vpop.permute.xlu1 %1248 }
 0x468   : > { %v1254_v20 = vsel %vm1141_vm3, %v1249_v17, 0  ;;  %v3274_v17 = vld [vmem:[%s4574_s10] sm:$0xff]  }
 0x469   : > { %v3292_v12 = vpop.eup %3291 }
 0x46a   : > { %v1134_v14 = vmul.f32 %v3292_v12, %v3284_v59 }
 0x46b   : > { %v1355_v13 = vpop.xlane.xlu0 %1354 }
 0x46c   : > { %v1135_v18 = vpack.c.bf16 %v1134_v14, %v1134_v14  ;;  %3295 = vrcp.f32 %v1355_v13  ;;  %v3271_v13 = vld [vmem:[#allocation16 + $0x8] sm:$0xff]  }
 0x46f   : > { %v1137_v15 = vpop.permute.xlu0 %1136 }
 0x470   : > { %v1143_v16 = vsel %vm1141_vm3, %v1137_v15, 0 }
 0x471   : > { %2926 = vmatpush3.bf16.msra.mxu0 %v1143_v16  ;;  %v3294_v19 = vpop.eup %3293  ;;  %v3273_v16 = vld [vmem:[%s4574_s10 + $0x8] sm:$0xff]  }
 0x472   : > { %2937 = vmatprep.subr.bf16.mxu0 %v3830_v0  ;;  %v1246_v9 = vmul.f32 %v3294_v19, %v3286_v62 }
 0x473   : > { %v1471_v27 = vpop.permute.xlu0 %1470 }
 0x474   : > { %2928 = vmatmul.mubr.msk.bf16.vlgmr.msra.gmra.mxu0 %vm1077_vm2, %v1135_v18  ;;  %v1247_v21 = vpack.c.bf16 %v1246_v9, %v1246_v9  ;;  %v1476_v29 = vsel %vm1141_vm3, %v1471_v27, 0  ;;  %v2822_v27 = vld [vmem:[#allocation17] ss:$0 sm:$0xff] }
 0x475   : > { %2938 = vmatpush3.bf16.msra.mxu0 %v1254_v20  ;;  %2939 = vmatprep.mubr.msk.bf16.mxu0 %vm3831_vm0, %v3830_v0 }
 0x476   : > { %2949 = vmatprep.subr.bf16.mxu0 %v3830_v0 }
 0x479   : > { %v3296_v22 = vpop.eup %3295 }
 0x47a   : > { %v1357_v24 = vmul.f32 %v3296_v22, %v3288_v1 }
 0x47c   : > { %2940 = vmatmul.mubr.msk.bf16.vlgmr.msra.gmra.mxu0 %vm1077_vm2, %v1247_v21  ;;  %v1358_v28 = vpack.c.bf16 %v1357_v24, %v1357_v24  ;;  %v2816_v21 = vld [vmem:[#allocation11] ss:$0 sm:$0xff] }
 0x47d   : > { %2951 = vmatprep.mubr.msk.bf16.mxu0 %vm3831_vm0, %v3830_v0 }
 0x498   : > { %v1466_v23 = vpop.xlane.xlu1 %1465 }
 0x499   : > { %3297 = vrcp.f32 %v1466_v23  ;;  %v2817_v23 = vld [vmem:[#allocation13] ss:$0 sm:$0xff] }
 0x49c   : > { %v1360_v25 = vpop.permute.xlu1 %1359 }
 0x49d   : > { %v1365_v26 = vsel %vm1141_vm3, %v1360_v25, 0 }
 0x49e   : > { %2950 = vmatpush3.bf16.msra.mxu0 %v1365_v26 }
 0x49f   : > { %2961 = vmatprep.subr.bf16.mxu0 %v3830_v0 }
 0x4a1   : > { %2952 = vmatmul.mubr.msk.bf16.vlgmr.msra.gmra.mxu0 %vm1077_vm2, %v1358_v28 }
 0x4a2   : > { %2962 = vmatpush3.bf16.msra.mxu0 %v1476_v29  ;;  %2963 = vmatprep.mubr.msk.bf16.mxu0 %vm3831_vm0, %v3830_v0 }
 0x4a3   : > { %2975 = vmatprep.subr.bf16.mxu0 %v3830_v0 }
 0x4a6   : > { %v3298_v30 = vpop.eup %3297 }
 0x4a7   : > { %v1468_v31 = vmul.f32 %v3298_v30, %v3290_v7 }
 0x4a9   : > { %v1469_v32 = vpack.c.bf16 %v1468_v31, %v1468_v31 }
 0x4ab   : > { %2964 = vmatmul.mubr.msk.bf16.vlgmr.msra.gmra.mxu0 %vm1077_vm2, %v1469_v32 }
 0x4ac   : > { %2979 = vmatprep.mubr.msk.bf16.mxu0 %vm3831_vm0, %v3830_v0  ;;  %2976 = vmatpush3.bf16.msra.mxu0 %v3273_v16 }
 0x4ad   : > { %2977 = vmatprep.subr.bf16.mxu0 %v3830_v0 }
 0x4b0   : > { %2978 = vmatpush3.bf16.msra.mxu0 %v3274_v17 }
 0x4b1   : > { %2991 = vmatprep.subr.bf16.mxu0 %v3830_v0 }
 0x534   : > { %v1179_v33 = vpop.f32.mrf.mxu0 }
 0x535   : > { %v1185_v55 = vpack.c.bf16 %v1179_v33, %v1179_v33 }
 0x536   : > { %v2929_v34 = vpop.f32.mrf.mxu0 }
 0x538   : > { %v1182_v35 = vpop.f32.mrf.mxu0 }
 0x539   : > { %v2818_v35 = vld [vmem:[#allocation14] ss:$0 sm:$0xff] }
 0x53a   : > { %v2930_v36 = vpop.f32.mrf.mxu0 }
 0x53c   : > { %v1290_v37 = vpop.f32.mrf.mxu0 }
 0x53d   : > { %v1296_v38 = vpack.c.bf16 %v1290_v37, %v1290_v37 }
 0x53e   : > { %v2941_v39 = vpop.f32.mrf.mxu0 }
 0x53f   : > { %1520 = vrot.lane.b32.xlu1 %v1296_v38, %s4601_s3  ;;  %s2853_s3 = sshll.u32 %s3993_s29, 7 }
 0x540   : > { %v1293_v40 = vpop.f32.mrf.mxu0 }
 0x542   : > { %v2942_v41 = vpop.f32.mrf.mxu0 }
 0x561   : > { %v1401_v44 = vpop.f32.mrf.mxu0 }
 0x562   : > { %v1407_v45 = vpack.c.bf16 %v1401_v44, %v1401_v44 }
 0x563   : > { %v2953_v46 = vpop.f32.mrf.mxu0 }
 0x564   : > { %1523 = vrot.lane.b32.xlu0 %v1407_v45, %s4600_s2 }
 0x565   : > { %v1404_v47 = vpop.f32.mrf.mxu0 }
 0x567   : > { %v2954_v48 = vpop.f32.mrf.mxu0 }
 0x56b   : > { %v1512_v49 = vpop.f32.mrf.mxu0 }
 0x56c   : > { %v1518_v50 = vpack.c.bf16 %v1512_v49, %v1512_v49 }
 0x56d   : > { %v2965_v51 = vpop.f32.mrf.mxu0 }
 0x56e   : > { %1526 = vrot.lane.b32.xlu1 %v1518_v50, %s4599_s7  ;;  %s993_s7 = scalar_lea.vmem %s4667_s30, %s2796_s18  ;;  %v1001_v51 = vld [vmem:[%s4239_s0] sm:$0xf]  ;;  %s4668_s0 = smov 8  }
 0x56f   : > { %v1515_v52 = vpop.f32.mrf.mxu0  ;;  %v996_v14 = vld [vmem:[%s993_s7] sm:$0xff]  ;;  %s4671_s30 = sld [smem:[#allocation55_spill]]  ;;  %s2506_s18 = scalar_lea.sflag [#allocation4], %s4228_s16 }
 0x570   : > { %v1700_v15 = vpack.c.bf16 %v996_v14, %v996_v14  ;;  %v1002_v52 = vunpack.c.l.bf16 %v1001_v51 }
 0x571   : > { %v2966_v53 = vpop.f32.mrf.mxu0 }
 0x572   : > { %v2799_v53 = vadd.f32 -1.0, %v1002_v52 }
 0x5b1   : > { %v1521_v54 = vpop.permute.xlu1 %1520 }
 0x5b2   : > { %v1530_v57 = vsel %vm1077_vm2, %v1185_v55, %v1521_v54  ;;  %v1004_v54 = vmul.f32 1e+30, %v2799_v53 }
 0x5d6   : > { %v1524_v56 = vpop.permute.xlu0 %1523 }
 0x5d7   : > { %v1533_v58 = vsel %vm1531_vm4, %v1530_v57, %v1524_v56 }
 0x5e0   : > { %v1527_v59 = vpop.permute.xlu1 %1526 }
 0x5e1   : > { %v1536_v60 = vsel %vm1534_vm5, %v1533_v58, %v1527_v59 }
 0x5e2   : > { %2972 = vmatmul.mubr.msk.bf16.vlgmr.msra.gmra.mxu1 %vm1029_vm1, %v1536_v60 }
 0x5e3   : > { %2987 = vmatprep.mubr.msk.bf16.mxu1 %vm3831_vm0, %v3830_v0  ;;  %2984 = vmatpush3.bf16.msra.mxu1 %v3271_v13 }
 0x5e4   : > { %2985 = vmatprep.subr.bf16.mxu1 %v3830_v0 }
 0x6a2   : > { %v1596_v62 = vpop.f32.mrf.mxu1 }
 0x6a3   : > { %v1597_v63 = vadd.f32 %v2812_v61, %v1596_v62 }
 0x6a4   : > { %v2973_v1 = vpop.f32.mrf.mxu1 }
 0x6a5   : > { %v1602_v2 = vadd.f32 %v1597_v63, %v4295_v3  ;;  %v3272_v3 = vld [vmem:[#allocation16] sm:$0xff]  }
 0x6a6   : > { %v1599_v4 = vpop.f32.mrf.mxu1  ;;  %2986 = vmatpush3.bf16.msra.mxu1 %v3272_v3 }
 0x6a7   : > { %v1603_v5 = vsel %vm1029_vm1, %v1602_v2, 0.0  ;;  %2997 = vmatprep.subr.bf16.mxu1 %v3830_v0 }
 0x6a8   : > { %1604 = vadd.xlane.f32.xlu0 %v1603_v5  ;;  %v2974_v6 = vpop.f32.mrf.mxu1 }
 0x6a9   : > { %2988 = vmatmul.mubr.msk.bf16.vlgmr.msra.gmra.mxu1 %vm1029_vm1, %v1700_v15 }
 0x6aa   : > { %2999 = vmatprep.mubr.msk.bf16.mxu1 %vm3831_vm0, %v3830_v0 }
 0x731   : > { %v1605_v7 = vpop.xlane.xlu0 %1604 }
 0x732   : > { %v1607_v8 = vmul.f32 0.03125, %v1605_v7 }
 0x734   : > { %v1608_v10 = vsub.f32 %v1602_v2, %v1607_v8 }
 0x736   : > { %v1609_v11 = vmul.f32 %v1608_v10, %v1608_v10 }
 0x738   : > { %v1610_v12 = vsel %vm1029_vm1, %v1609_v11, 0.0 }
 0x739   : > { %1611 = vadd.xlane.f32.xlu1 %v1610_v12 }
 0x769   : > { %v1761_v28 = vpop.f32.mrf.mxu1 }
 0x76a   : > { %v1762_v29 = vadd.f32 %v2822_v27, %v1761_v28 }
 0x76b   : > { %v2989_v30 = vpop.f32.mrf.mxu1 }
 0x76c   : > { %v4413_v31 = vpack.c.bf16 %v1762_v29, %v1762_v29 }
 0x76d   : > { %v1764_v32 = vpop.f32.mrf.mxu1 }
 0x76e   : > { %1880 = vrot.lane.b32.xlu0 %v4413_v31, %s3832_s17  ;;  %v1773_v33 = vsel %vm1077_vm2, %v4413_v31, 0 }
 0x76f   : > { %v2990_v34 = vpop.f32.mrf.mxu1 }
 0x772   : > { %1991 = vrot.lane.b32.xlu0 %v4413_v31, %s3837_s11 }
 0x776   : > { %2102 = vrot.lane.b32.xlu0 %v4413_v31, %s3838_s12 }
 0x7c2   : > { %v1612_v18 = vpop.xlane.xlu1 %1611 }
 0x7c3   : > { %v1613_v19 = vmul.f32 0.03125, %v1612_v18 }
 0x7c5   : > { %v1614_v20 = vadd.f32 1e-05, %v1613_v19 }
 0x7c7   : > { %3299 = vrsqrt.f32 %v1614_v20 }
 0x7d4   : > { %v3300_v9 = vpop.eup %3299 }
 0x7d5   : > { %v1616_v22 = vmul.f32 %v3300_v9, %v1608_v10 }
 0x7d7   : > { %v1624_v24 = vmul.f32 %v2816_v21, %v1616_v22 }
 0x7d9   : > { %v4406_v25 = vadd.f32 %v2817_v23, %v1624_v24 }
 0x7db   : > { %v1633_v26 = vpack.c.bf16 %v4406_v25, %v4406_v25 }
 0x7dd   : > { %2980 = vmatmul.mubr.msk.bf16.vlgmr.msra.gmra.mxu0 %vm1029_vm1, %v1633_v26 }
 0x7de   : > { %2993 = vmatprep.mubr.msk.bf16.mxu0 %vm3831_vm0, %v3830_v0  ;;  %2992 = vmatpush3.bf16.xpose.msra.mxu0 %v1773_v33 }
 0x7df   : > { %3003 = vmatprep.subr.bf16.mxu0 %v3830_v0 }
 0x7e0   : > { %v1881_v39 = vpop.permute.xlu0 %1880 }
 0x7e1   : > { %v1886_v41 = vsel %vm1077_vm2, %v1881_v39, 0 }
 0x7e4   : > { %v1992_v44 = vpop.permute.xlu0 %1991 }
 0x7e5   : > { %v1997_v46 = vsel %vm1077_vm2, %v1992_v44, 0 }
 0x7e8   : > { %v2103_v47 = vpop.permute.xlu0 %2102 }
 0x7e9   : > { %v2108_v49 = vsel %vm1077_vm2, %v2103_v47, 0 }
 0x89d   : > { %v1694_v36 = vpop.f32.mrf.mxu0 }
 0x89e   : > { %v1695_v37 = vadd.f32 %v2818_v35, %v1694_v36 }
 0x89f   : > { %v2981_v38 = vpop.f32.mrf.mxu0 }
 0x8a0   : > { %v1767_v40 = vpack.c.bf16 %v1695_v37, %v1695_v37 }
 0x8a1   : > { %v1697_v42 = vpop.f32.mrf.mxu0 }
 0x8a2   : > { %1878 = vrot.lane.b32.xlu1 %v1767_v40, %s3832_s17  ;;  %2994 = vmatmul.mubr.msk.bf16.vlgmr.msra.gmra.mxu0 %vm1077_vm2, %v1767_v40  ;;  %s4669_s17 = smov 16  }
 0x8a3   : > { %v2982_v43 = vpop.f32.mrf.mxu0  ;;  %3004 = vmatpush3.bf16.xpose.msra.mxu0 %v1886_v41  ;;  %3005 = vmatprep.mubr.msk.bf16.mxu0 %vm3831_vm0, %v3830_v0 }
 0x8a4   : > { %3015 = vmatprep.subr.bf16.mxu0 %v3830_v0 }
 0x8a6   : > { %1989 = vrot.lane.b32.xlu1 %v1767_v40, %s3837_s11 }
 0x8aa   : > { %2100 = vrot.lane.b32.xlu1 %v1767_v40, %s3838_s12  ;;  %s4674_s12 = sld [smem:[#allocation58_spill]] }
 0x914   : > { %v1879_v45 = vpop.permute.xlu1 %1878 }
 0x915   : > { %3006 = vmatmul.mubr.msk.bf16.vlgmr.msra.gmra.mxu0 %vm1077_vm2, %v1879_v45 }
 0x916   : > { %3016 = vmatpush3.bf16.xpose.msra.mxu0 %v1997_v46  ;;  %3017 = vmatprep.mubr.msk.bf16.mxu0 %vm3831_vm0, %v3830_v0 }
 0x917   : > { %3027 = vmatprep.subr.bf16.mxu0 %v3830_v0 }
 0x918   : > { %v1990_v48 = vpop.permute.xlu1 %1989 }
 0x91c   : > { %v2101_v50 = vpop.permute.xlu1 %2100 }
 0x91d   : > { %3018 = vmatmul.mubr.msk.bf16.vlgmr.msra.gmra.mxu0 %vm1077_vm2, %v1990_v48 }
 0x91e   : > { %3028 = vmatpush3.bf16.xpose.msra.mxu0 %v2108_v49  ;;  %3029 = vmatprep.mubr.msk.bf16.mxu0 %vm3831_vm0, %v3830_v0 }
 0x91f   : > { %3039 = vmatprep.subr.bf16.mxu0 %v3830_v0 }
 0x925   : > { %3030 = vmatmul.mubr.msk.bf16.vlgmr.msra.gmra.mxu0 %vm1077_vm2, %v2101_v50 }
 0x926   : > { %3043 = vmatprep.mubr.msk.bf16.mxu0 %vm3831_vm0, %v3830_v0 }
 0x962   : > { %v1809_v55 = vpop.f32.mrf.mxu0 }
 0x963   : > { %v1810_v56 = vadd.f32 %v1809_v55, %v1004_v54 }
 0x964   : > { %v2995_v57 = vpop.f32.mrf.mxu0 }
 0x965   : > { %v1815_v58 = vsel %vm1077_vm2, %v1810_v56, -inf }
 0x966   : > { %1816 = vmax.xlane.f32.xlu0 %v1815_v58  ;;  %v1812_v59 = vpop.f32.mrf.mxu0 }
 0x968   : > { %v2996_v60 = vpop.f32.mrf.mxu0 }
 0x9d5   : > { %v1922_v61 = vpop.f32.mrf.mxu0 }
 0x9d6   : > { %v1923_v62 = vadd.f32 %v1922_v61, %v1004_v54 }
 0x9d7   : > { %v3007_v63 = vpop.f32.mrf.mxu0 }
 0x9d8   : > { %v1928_v1 = vsel %vm1077_vm2, %v1923_v62, -inf }
 0x9d9   : > { %1929 = vmax.xlane.f32.xlu1 %v1928_v1  ;;  %v1925_v2 = vpop.f32.mrf.mxu0 }
 0x9da   : > { %v3275_v2 = vld [vmem:[#allocation19 + $0x8] sm:$0xff]  }
 0x9db   : > { %v3008_v4 = vpop.f32.mrf.mxu0  ;;  %3040 = vmatpush3.bf16.msra.mxu0 %v3275_v2 }
 0x9dc   : > { %3041 = vmatprep.subr.bf16.mxu0 %v3830_v0 }
 0x9dd   : > { %v2033_v5 = vpop.f32.mrf.mxu0 }
 0x9de   : > { %v2034_v6 = vadd.f32 %v2033_v5, %v1004_v54  ;;  %v3276_v5 = vld [vmem:[#allocation19] sm:$0xff]  }
 0x9df   : > { %v3019_v7 = vpop.f32.mrf.mxu0  ;;  %3042 = vmatpush3.bf16.msra.mxu0 %v3276_v5 }
 0x9e0   : > { %v2039_v8 = vsel %vm1077_vm2, %v2034_v6, -inf  ;;  %3055 = vmatprep.subr.bf16.mxu0 %v3830_v0 }
 0x9e1   : > { %2040 = vmax.xlane.f32.xlu0 %v2039_v8  ;;  %v2036_v10 = vpop.f32.mrf.mxu0 }
 0x9e3   : > { %v3020_v11 = vpop.f32.mrf.mxu0 }
 0x9e5   : > { %v2144_v12 = vpop.f32.mrf.mxu0 }
 0x9e6   : > { %v2145_v13 = vadd.f32 %v2144_v12, %v1004_v54 }
 0x9e7   : > { %v3031_v3 = vpop.f32.mrf.mxu0 }
 0x9e8   : > { %v2150_v14 = vsel %vm1077_vm2, %v2145_v13, -inf }
 0x9e9   : > { %2151 = vmax.xlane.f32.xlu0 %v2150_v14  ;;  %v2147_v15 = vpop.f32.mrf.mxu0 }
 0x9eb   : > { %v3032_v16 = vpop.f32.mrf.mxu0 }
 0x9ef   : > { %v1817_v17 = vpop.xlane.xlu0 %1816 }
 0x9f0   : > { %v1818_v18 = vsub.f32 %v1810_v56, %v1817_v17 }
 0x9f2   : > { %v1819_v19 = vmul.f32 1.442695, %v1818_v18 }
 0x9f4   : > { %3301 = vpow2.f32 %v1819_v19 }
 0xa01   : > { %v3302_v20 = vpop.eup %3301 }
 0xa02   : > { %v1821_v9 = vsel %vm1077_vm2, %v3302_v20, 0.0 }
 0xa03   : > { %1822 = vadd.xlane.f32.xlu1 %v1821_v9 }
 0xa14   : > { %1828 = vrot.lane.b32.xlu1 %v4413_v31, %s3833_s21  ;;  %s4670_s21 = smov 24  }
 0xa62   : > { %v1930_v21 = vpop.xlane.xlu1 %1929 }
 0xa63   : > { %v1931_v22 = vsub.f32 %v1923_v62, %v1930_v21 }
 0xa65   : > { %v1932_v23 = vmul.f32 1.442695, %v1931_v22 }
 0xa67   : > { %3303 = vpow2.f32 %v1932_v23 }
 0xa6a   : > { %v2041_v24 = vpop.xlane.xlu0 %2040 }
 0xa6b   : > { %v2042_v26 = vsub.f32 %v2034_v6, %v2041_v24 }
 0xa6d   : > { %v2043_v27 = vmul.f32 1.442695, %v2042_v26 }
 0xa6f   : > { %3305 = vpow2.f32 %v2043_v27  ;;  %v2834_v27 = vld [vmem:[#allocation20] ss:$0 sm:$0xff] }
 0xa72   : > { %v2152_v28 = vpop.xlane.xlu0 %2151 }
 0xa73   : > { %v2153_v29 = vsub.f32 %v2145_v13, %v2152_v28 }
 0xa74   : > { %v3304_v30 = vpop.eup %3303 }
 0xa75   : > { %v2154_v32 = vmul.f32 1.442695, %v2153_v29  ;;  %v1934_v33 = vsel %vm1077_vm2, %v3304_v30, 0.0 }
 0xa76   : > { %1935 = vadd.xlane.f32.xlu0 %v1934_v33 }
 0xa77   : > { %3307 = vpow2.f32 %v2154_v32 }
 0xa7c   : > { %v3306_v34 = vpop.eup %3305 }
 0xa7d   : > { %v2045_v35 = vsel %vm1077_vm2, %v3306_v34, 0.0 }
 0xa7e   : > { %2046 = vadd.xlane.f32.xlu1 %v2045_v35 }
 0xa84   : > { %v3308_v36 = vpop.eup %3307 }
 0xa85   : > { %v2156_v37 = vsel %vm1077_vm2, %v3308_v36, 0.0 }
 0xa86   : > { %2157 = vadd.xlane.f32.xlu0 %v2156_v37 }
 0xa8c   : > { %v1823_v38 = vpop.xlane.xlu1 %1822 }
 0xa8d   : > { %3309 = vrcp.f32 %v1823_v38 }
 0xa8f   : > { %2051 = vrot.lane.b32.xlu1 %v4413_v31, %s3834_s9 }
 0xa90   : > { %v1829_v39 = vpop.permute.xlu1 %1828 }
 0xa91   : > { %v1834_v40 = vsel %vm1141_vm3, %v1829_v39, 0 }
 0xa92   : > { %2998 = vmatpush3.bf16.msra.mxu1 %v1834_v40 }
 0xa93   : > { %2162 = vrot.lane.b32.xlu1 %v4413_v31, %s3836_s8  ;;  %3009 = vmatprep.subr.bf16.mxu1 %v3830_v0 }
 0xa9a   : > { %v3310_v41 = vpop.eup %3309 }
 0xa9b   : > { %v1825_v42 = vmul.f32 %v3310_v41, %v3302_v20  ;;  %v3277_v41 = vld [vmem:[#allocation25 + $0x8] sm:$0xff]  }
 0xa9c   : > { %1940 = vrot.lane.b32.xlu0 %v4413_v31, %s3835_s14  ;;  %s4673_s14 = sld [smem:[#allocation57_spill]] }
 0xa9d   : > { %v1826_v43 = vpack.c.bf16 %v1825_v42, %v1825_v42  ;;  %v3278_v42 = vld [vmem:[#allocation25] sm:$0xff]  }
 0xa9f   : > { %3000 = vmatmul.mubr.msk.bf16.vlgmr.msra.gmra.mxu1 %vm1077_vm2, %v1826_v43  ;;  %v3280_v43 = vld [vmem:[%s4584_s20 + $0x10] sm:$0xff]  }
 0xaa0   : > { %3011 = vmatprep.mubr.msk.bf16.mxu1 %vm3831_vm0, %v3830_v0 }
 0xaff   : > { %v1936_v44 = vpop.xlane.xlu0 %1935 }
 0xb00   : > { %3311 = vrcp.f32 %v1936_v44 }
 0xb07   : > { %v2047_v45 = vpop.xlane.xlu1 %2046 }
 0xb08   : > { %3313 = vrcp.f32 %v2047_v45 }
 0xb0b   : > { %v2052_v51 = vpop.permute.xlu1 %2051 }
 0xb0c   : > { %v2057_v53 = vsel %vm1141_vm3, %v2052_v51, 0 }
 0xb0d   : > { %v3312_v46 = vpop.eup %3311 }
 0xb0e   : > { %v1938_v48 = vmul.f32 %v3312_v46, %v3304_v30 }
 0xb0f   : > { %v2158_v47 = vpop.xlane.xlu0 %2157  ;;  %v2163_v55 = vpop.permute.xlu1 %2162 }
 0xb10   : > { %3315 = vrcp.f32 %v2158_v47  ;;  %v1939_v31 = vpack.c.bf16 %v1938_v48, %v1938_v48  ;;  %v2168_v58 = vsel %vm1141_vm3, %v2163_v55, 0  ;;  %v2838_v48 = vld [vmem:[#allocation22] ss:$0 sm:$0xff]  ;;  %v2840_v55 = vld [vmem:[%s4671_s30] ss:$0 sm:$0xff]  ;;  %s4675_s30 = sld [smem:[#allocation59_spill]] }
 0xb13   : > { %v1941_v49 = vpop.permute.xlu0 %1940 }
 0xb14   : > { %v1946_v50 = vsel %vm1141_vm3, %v1941_v49, 0 }
 0xb15   : > { %3010 = vmatpush3.bf16.msra.mxu1 %v1946_v50  ;;  %v3314_v52 = vpop.eup %3313  ;;  %v2839_v50 = vld [vmem:[#allocation23] ss:$0 sm:$0xff] }
 0xb16   : > { %3021 = vmatprep.subr.bf16.mxu1 %v3830_v0  ;;  %v2049_v54 = vmul.f32 %v3314_v52, %v3306_v34  ;;  %s2517_s25 = scalar_lea.hbm %s4675_s30, %s2853_s3 }
 0xb18   : > { %3012 = vmatmul.mubr.msk.bf16.vlgmr.msra.gmra.mxu1 %vm1077_vm2, %v1939_v31  ;;  %v2050_v56 = vpack.c.bf16 %v2049_v54, %v2049_v54  ;;  %v3282_v54 = vld [vmem:[%s4584_s20] sm:$0xff]  }
 0xb19   : > { %3022 = vmatpush3.bf16.msra.mxu1 %v2057_v53  ;;  %3023 = vmatprep.mubr.msk.bf16.mxu1 %vm3831_vm0, %v3830_v0  ;;  %v3281_v53 = vld [vmem:[%s4584_s20 + $0x8] sm:$0xff]  }
 0xb1a   : > { %3033 = vmatprep.subr.bf16.mxu1 %v3830_v0 }
 0xb1d   : > { %v3316_v57 = vpop.eup %3315 }
 0xb1e   : > { %v2160_v59 = vmul.f32 %v3316_v57, %v3308_v36 }
 0xb20   : > { %3024 = vmatmul.mubr.msk.bf16.vlgmr.msra.gmra.mxu1 %vm1077_vm2, %v2050_v56  ;;  %v2161_v60 = vpack.c.bf16 %v2160_v59, %v2160_v59 }
 0xb21   : > { %3034 = vmatpush3.bf16.msra.mxu1 %v2168_v58  ;;  %3035 = vmatprep.mubr.msk.bf16.mxu1 %vm3831_vm0, %v3830_v0 }
 0xb22   : > { %3047 = vmatprep.subr.bf16.mxu1 %v3830_v0 }
 0xb28   : > { %3036 = vmatmul.mubr.msk.bf16.vlgmr.msra.gmra.mxu1 %vm1077_vm2, %v2161_v60 }
 0xb29   : > { %3051 = vmatprep.mubr.msk.bf16.mxu1 %vm3831_vm0, %v3830_v0  ;;  %3048 = vmatpush3.bf16.msra.mxu1 %v3277_v41 }
 0xb2a   : > { %3049 = vmatprep.subr.bf16.mxu1 %v3830_v0 }
 0xb2d   : > { %3050 = vmatpush3.bf16.msra.mxu1 %v3278_v42 }
 0xb5f   : > { %v1870_v61 = vpop.f32.mrf.mxu1 }
 0xb60   : > { %v1876_v9 = vpack.c.bf16 %v1870_v61, %v1870_v61 }
 0xb61   : > { %v3001_v62 = vpop.f32.mrf.mxu1 }
 0xb63   : > { %v1873_v63 = vpop.f32.mrf.mxu1 }
 0xb65   : > { %v3002_v1 = vpop.f32.mrf.mxu1 }
 0xbd8   : > { %v1982_v4 = vpop.f32.mrf.mxu1 }
 0xbd9   : > { %v1988_v6 = vpack.c.bf16 %v1982_v4, %v1982_v4 }
 0xbda   : > { %v3013_v7 = vpop.f32.mrf.mxu1 }
 0xbdb   : > { %2212 = vrot.lane.b32.xlu0 %v1988_v6, %s4668_s0  ;;  %s4672_s0 = sld [smem:[#allocation56_spill]] }
 0xbdc   : > { %v1985_v8 = vpop.f32.mrf.mxu1 }
 0xbde   : > { %v3014_v10 = vpop.f32.mrf.mxu1 }
 0xbe0   : > { %v2093_v11 = vpop.f32.mrf.mxu1 }
 0xbe1   : > { %v2099_v12 = vpack.c.bf16 %v2093_v11, %v2093_v11 }
 0xbe2   : > { %v3025_v13 = vpop.f32.mrf.mxu1 }
 0xbe3   : > { %2215 = vrot.lane.b32.xlu1 %v2099_v12, %s4669_s17  ;;  %s2795_s17 = sshll.u32 %s4228_s16, 3 }
 0xbe4   : > { %v2096_v3 = vpop.f32.mrf.mxu1  ;;  %s985_s2 = scalar_lea.vmem [#allocation26], %s2795_s17 }
 0xbe5   : > { %s2519_s7 = sshll.u32 %s985_s2, 4  ;;  %s2520_s7 = int_to_ptr.vmem [resolvable:$true] %s2519_s7 }
 0xbe6   : > { %v3026_v14 = vpop.f32.mrf.mxu1 }
 0xbe8   : > { %v2204_v15 = vpop.f32.mrf.mxu1 }
 0xbe9   : > { %v2210_v16 = vpack.c.bf16 %v2204_v15, %v2204_v15 }
 0xbea   : > { %v3037_v17 = vpop.f32.mrf.mxu1 }
 0xbeb   : > { %2218 = vrot.lane.b32.xlu0 %v2210_v16, %s4670_s21  ;;  %v2850_v17 = vld [vmem:[%s4673_s14] ss:$0 sm:$0xff]  ;;  %s3846_s21 = smov [#allocation26]  }
 0xbec   : > { %v2207_v18 = vpop.f32.mrf.mxu1  ;;  %s3719_s9 = sshll.u32 %s3846_s21, 4  ;;  %s3720_s9 = int_to_ptr.vmem [resolvable:$false] %s3719_s9 }
 0xbed   : > { %s3721_s29 = scalar_lea.vmem %s3720_s9, 256  ;;  %p3722_p4 = scmp.lt.s32.totalorder %s2520_s7, %s3720_s9 }
 0xbee   : > { %v3038_v19 = vpop.f32.mrf.mxu1 }
 0xbef   : > { %v2851_v19 = vld [vmem:[%s4674_s12] ss:$0 sm:$0xff] }
 0xc4d   : > { %v2213_v20 = vpop.permute.xlu0 %2212 }
 0xc4e   : > { %v2222_v22 = vsel %vm1077_vm2, %v1876_v9, %v2213_v20 }
 0xc55   : > { %v2216_v21 = vpop.permute.xlu1 %2215 }
 0xc56   : > { %v2224_v23 = vsel %vm1531_vm4, %v2222_v22, %v2216_v21 }
 0xc5d   : > { %v2219_v24 = vpop.permute.xlu0 %2218 }
 0xc5e   : > { %v2226_v26 = vsel %vm1534_vm5, %v2224_v23, %v2219_v24 }
 0xc5f   : > { %3044 = vmatmul.mubr.msk.bf16.vlgmr.msra.gmra.mxu0 %vm1029_vm1, %v2226_v26 }
 0xc60   : > { %3063 = vmatprep.mubr.msk.bf16.mxu0 %vm3831_vm0, %v3830_v0 }
 0xd1f   : > { %v2286_v28 = vpop.f32.mrf.mxu0 }
 0xd20   : > { %v2287_v29 = vadd.f32 %v2834_v27, %v2286_v28 }
 0xd21   : > { %v3045_v30 = vpop.f32.mrf.mxu0 }
 0xd22   : > { %v2292_v32 = vadd.f32 %v2287_v29, %v4406_v25  ;;  %v3279_v25 = vld [vmem:[%s4584_s20 + $0x18] sm:$0xff]  }
 0xd23   : > { %v2289_v33 = vpop.f32.mrf.mxu0  ;;  %3056 = vmatpush3.bf16.msra.mxu0 %v3279_v25 }
 0xd24   : > { %v2293_v34 = vsel %vm1029_vm1, %v2292_v32, 0.0  ;;  %3057 = vmatprep.subr.bf16.mxu0 %v3830_v0 }
 0xd25   : > { %2294 = vadd.xlane.f32.xlu1 %v2293_v34  ;;  %v3046_v35 = vpop.f32.mrf.mxu0 }
 0xd27   : > { %3058 = vmatpush3.bf16.msra.mxu0 %v3280_v43 }
 0xd28   : > { %3059 = vmatprep.subr.bf16.mxu0 %v3830_v0 }
 0xd2b   : > { %3060 = vmatpush3.bf16.msra.mxu0 %v3281_v53 }
 0xd2c   : > { %3061 = vmatprep.subr.bf16.mxu0 %v3830_v0  ;;  %v2844_v0 = vld [vmem:[%s4672_s0] ss:$0 sm:$0xff]  ;;  %s3715_s0 = scalar_lea.vmem %s2520_s7, 128 }
 0xd2d   : > { %p3716_p10 = scmp.ne.s32.totalorder %s2520_s7, %s3715_s0  ;;  %p3723_p8 = scmp.lt.s32.totalorder %s3721_s29, %s3715_s0 }
 0xd2f   : > { %3062 = vmatpush3.bf16.msra.mxu0 %v3282_v54  ;;  %p3717_p1 = pnand %p3716_p10, %p4676_p2  ;;  %p3724_p11 = por %p3723_p8, %p3722_p4 }
 0xd31   : > { %p3718_p5 = pneg %p3717_p1 }
 0xd33   : > { %p3725_p0 = pnand %p3724_p11, %p3718_p5 }
 0xdae   : > { %v2295_v36 = vpop.xlane.xlu1 %2294 }
 0xdaf   : > { %v2296_v37 = vmul.f32 0.03125, %v2295_v36 }
 0xdb1   : > { %v2297_v38 = vsub.f32 %v2292_v32, %v2296_v37 }
 0xdb3   : > { %v2298_v39 = vmul.f32 %v2297_v38, %v2297_v38 }
 0xdb5   : > { %v2299_v40 = vsel %vm1029_vm1, %v2298_v39, 0.0 }
 0xdb6   : > { %2300 = vadd.xlane.f32.xlu0 %v2299_v40 }
 0xe3f   : > { %v2301_v44 = vpop.xlane.xlu0 %2300 }
 0xe40   : > { %v2302_v45 = vmul.f32 0.03125, %v2301_v44 }
 0xe42   : > { %v2303_v46 = vadd.f32 1e-05, %v2302_v45 }
 0xe44   : > { %3317 = vrsqrt.f32 %v2303_v46 }
 0xe51   : > { %v3318_v47 = vpop.eup %3317 }
 0xe52   : > { %v2305_v49 = vmul.f32 %v3318_v47, %v2297_v38 }
 0xe54   : > { %v2313_v51 = vmul.f32 %v2838_v48, %v2305_v49 }
 0xe56   : > { %v2321_v31 = vadd.f32 %v2839_v50, %v2313_v51 }
 0xe58   : > { %v2322_v52 = vpack.c.bf16 %v2321_v31, %v2321_v31 }
 0xe5a   : > { %3052 = vmatmul.mubr.msk.bf16.vlgmr.msra.gmra.mxu1 %vm1029_vm1, %v2322_v52 }
 0xf1a   : > { %v2383_v56 = vpop.f32.mrf.mxu1 }
 0xf1b   : > { %v2384_v57 = vadd.f32 %v2840_v55, %v2383_v56 }
 0xf1c   : > { %v3053_v58 = vpop.f32.mrf.mxu1 }
 0xf1d   : > { %v2389_v59 = vmax.f32 %v2384_v57, 0.0 }
 0xf1e   : > { %v2386_v60 = vpop.f32.mrf.mxu1 }
 0xf1f   : > { %v2390_v61 = vpack.c.bf16 %v2389_v59, %v2389_v59 }
 0xf20   : > { %v3054_v62 = vpop.f32.mrf.mxu1 }
 0xf21   : > { %3064 = vmatmul.mubr.msk.bf16.vlgmr.msra.gmra.mxu0 %vm2430_vm6, %v2390_v61 }
 0xfe1   : > { %v2468_v63 = vpop.f32.mrf.mxu0 }
 0xfe2   : > { %v2469_v1 = vadd.f32 %v2844_v0, %v2468_v63 }
 0xfe3   : > { %v3065_v2 = vpop.f32.mrf.mxu0 }
 0xfe4   : > { %v2474_v4 = vadd.f32 %v2469_v1, %v2321_v31 }
 0xfe5   : > { %v2471_v5 = vpop.f32.mrf.mxu0 }
 0xfe6   : > { %v2475_v6 = vsel %vm1029_vm1, %v2474_v4, 0.0 }
 0xfe7   : > { %2476 = vadd.xlane.f32.xlu0 %v2475_v6  ;;  %v3066_v7 = vpop.f32.mrf.mxu0 }
0x1070   : > { %v2477_v8 = vpop.xlane.xlu0 %2476 }
0x1071   : > { %v2478_v10 = vmul.f32 0.03125, %v2477_v8 }
0x1073   : > { %v2479_v11 = vsub.f32 %v2474_v4, %v2478_v10 }
0x1075   : > { %v2480_v12 = vmul.f32 %v2479_v11, %v2479_v11 }
0x1077   : > { %v2481_v13 = vsel %vm1029_vm1, %v2480_v12, 0.0 }
0x1078   : > { %2482 = vadd.xlane.f32.xlu1 %v2481_v13 }
0x1101   : > { %v2483_v3 = vpop.xlane.xlu1 %2482 }
0x1102   : > { %v2484_v14 = vmul.f32 0.03125, %v2483_v3 }
0x1104   : > { %v2485_v15 = vadd.f32 1e-05, %v2484_v14 }
0x1106   : > { %3319 = vrsqrt.f32 %v2485_v15 }
0x1113   : > { %v3320_v16 = vpop.eup %3319 }
0x1114   : > { %v2487_v18 = vmul.f32 %v3320_v16, %v2479_v11 }
0x1116   : > { %v2495_v20 = vmul.f32 %v2850_v17, %v2487_v18 }
0x1118   : > { %v2503_v9 = vadd.f32 %v2851_v19, %v2495_v20 }
0x111a   : > { %2504 = vst.msk [vmem:[%s985_s2] sm:$0xff] %vm1029_vm1, %v2503_v9 }
0x111b   : > { %3728 = shalt.err (!%p3725_p0)
}
0x111c   : > { %s3729_s17 = scalar_lea.hbm %s2517_s25, 128  ;;  %s3733_s8 = scalar_lea.hbm %s4675_s30, 256 }
0x111d   : > { %p3730_p7 = scmp.ne.s32.totalorder %s2517_s25, %s3729_s17  ;;  %p3734_p6 = scmp.lt.s32.totalorder %s2517_s25, %s4675_s30 }
0x111e   : > { %p3735_p3 = scmp.lt.s32.totalorder %s3733_s8, %s3729_s17 }
0x111f   : > { %p3731_p13 = pnand %p3730_p7, %p4676_p2 }
0x1120   : > { %p3736_p12 = por %p3735_p3, %p3734_p6 }
0x1121   : > { %p3732_p9 = pneg %p3731_p13 }
0x1123   : > { %p3737_p10 = pnand %p3736_p12, %p3732_p9 }
0x1125   : > { %3740 = shalt.err (!%p3737_p10)
}
0x1126   : > { %3123 = dma.vmem_to_hbm [thread:$0]  (%p4676_p2), %s2520_s7, 128, %s2517_s25, %s2506_s18  }
0x1127 PF: > { %s2531_s3 = sand.u32 1, %s3799_s5   ;;  %p4677_p1 = scmp.ne.s32.totalorder %s4645_s23, 0 }
0x1128   : > { %p4678_p5 = scmp.ge.s32.totalorder %s3811_s28, 2  ;;  %s2532_s2 = scalar_lea.sflag [#allocation4], %s2531_s3 }
0x112a   : > { %p3173_p4 = pnand %p4678_p5, %p4677_p1 }
0x112c   : > { %p3174_p8 = pneg %p3173_p4 }
0x112e   : > { %3794 = dma.done.wait (%p3174_p8), %s2532_s2, 128  }
0x112f   : > { %3796 = vsyncadd (%p3174_p8), %s2532_s2, 4294967168  ;;  %p46_p11 = scmp.ge.s32.totalorder %s4137_s4, 4   ;;  %s4679_s5 = smov %s3803_s26 }
0x1130   : > { %s4680_s26 = smov %s3807_s27  ;;  %s4681_s27 = smov %s4149_s19 }
0x1131   : > { %s4682_s28 = smov %s4137_s4  ;;  %48 = sbr.rel (!%p46_p11) target bundleno = 37 (0x25), region = 232 }
0x1136   :  { %2537 = vsyncpa [#allocation3], 1 }
0x1137   :  { %2539 = vsyncpa [#allocation3 + $0x1], 1 }
0x1138   :  { %2540 = vsyncpa [#allocation6], 1 }
0x1139   :  { %2542 = vsyncpa [#allocation6 + $0x1], 1 }
0x113a   :  { %2543 = vsyncpa [#allocation9], 1 }
0x113b   :  { %2544 = vsyncpa [#allocation12], 1 }
0x113c   :  { %2545 = vsyncpa [#allocation15], 1 }
0x113d   :  { %2546 = vsyncpa [#allocation18], 1 }
0x113e   :  { %2547 = vsyncpa [#allocation21], 1 }
0x113f   :  { %2548 = vsyncpa [#allocation24], 1 }
0x1140   :  { %2549 = vsyncpa [#allocation4], 1 }
0x1141   :  { %2551 = vsyncpa [#allocation4 + $0x1], 1 }

</bundles_post_ra>
